<compile_context>
chip_gen: v7x
topology: tpu7x:2x2x1
jax: 0.10.0
libtpu: 0.0.40
codegen_flags: <defaults>
</compile_context>

<pallas_src>
import functools

import jax
import jax.numpy as jnp
import numpy as np
from jax.experimental import pallas as pl
from jax.experimental.pallas import tpu as pltpu

TILE_B = 8  # one sublane group per batch tile


def _gru_fc_kernel(x_ref,
                   wih0_ref, whh0_ref, b0_ref, bhn0_ref,
                   w1_ref, b1_ref,
                   wfc_ref, bfc_ref,
                   out_ref,
                   *, seq_len, tile_b, hp):
    T, B, Hp = seq_len, tile_b, hp
    G2, G3 = 2 * Hp, 3 * Hp

    def sigmoid(u):
        # one EUP tanh instead of exp + reciprocal; mul/add ride free in VALU slots
        return 0.5 * jnp.tanh(0.5 * u) + 0.5

    # ---- Hoisted layer-0 input projection: one (T*B, I) x (I, 3Hp) matmul.
    #      b0 already contains b_ih_l0 (all gates) + b_hh_l0 (r,z gates only).
    gi0_all = jnp.dot(x_ref[...], wih0_ref[...],
                      preferred_element_type=jnp.float32) + b0_ref[...]

    whh0 = whh0_ref[...]                                   # (Hp, 3Hp)
    w1 = w1_ref[...]                                       # (2Hp, 4Hp) fused [Wih1 ; Whh1]
    b1 = jnp.broadcast_to(b1_ref[...], (B, 4 * Hp))        # hoisted bias broadcast
    bhn0 = jnp.broadcast_to(bhn0_ref[...], (B, Hp))        # layer-0 b_hn (must stay in r*(...))

    h0 = jnp.zeros((B, Hp), jnp.float32)
    h1 = jnp.zeros((B, Hp), jnp.float32)

    for t in range(T):                                     # fully unrolled: T static & tiny
        # ---- layer 0, step t: single (B,Hp)x(Hp,3Hp) recurrent matmul ----
        gh0 = jnp.dot(h0, whh0, preferred_element_type=jnp.float32)
        g0 = gi0_all[t * B:(t + 1) * B]                    # (B, 3Hp) sublane-aligned slice
        rz0 = sigmoid(g0[:, :G2] + gh0[:, :G2])            # r,z in one EUP pass
        r0 = rz0[:, :Hp]
        z0 = rz0[:, Hp:]
        n0 = jnp.tanh(g0[:, G2:] + r0 * (gh0[:, G2:] + bhn0))
        h0 = n0 + z0 * (h0 - n0)                           # (1-z)*n + z*h

        # ---- layer 1, step t: single fused matmul on [h0_t | h1_{t-1}] ----
        # independent of layer-0's matmul for step t+1 -> wavefront overlap on the MXU/EUP
        g1 = jnp.dot(jnp.concatenate([h0, h1], axis=1), w1,
                     preferred_element_type=jnp.float32) + b1   # (B,4Hp): [rz | gi_n | gh_n]
        rz1 = sigmoid(g1[:, :G2])
        r1 = rz1[:, :Hp]
        z1 = rz1[:, Hp:]
        n1 = jnp.tanh(g1[:, G2:G3] + r1 * g1[:, G3:])
        h1 = n1 + z1 * (h1 - n1)

    # ---- fc(ReLU(last hidden of top layer)), lane-dense (B, 128) store ----
    act = jnp.maximum(h1, 0.0)
    out = jnp.dot(act, wfc_ref[...], preferred_element_type=jnp.float32) + bfc_ref[...]
    out_ref[...] = out.astype(out_ref.dtype)


def pack_params(params, output_size):
    """Pad/fuse raw (PyTorch-layout, pre-transposed) params into the kernel layout."""
    H = params["w_hh_l0"].shape[0]
    Hp = ((H + 127) // 128) * 128
    Op = ((output_size + 127) // 128) * 128

    def gate_pad_cols(w, n_gates):
        # (rows, n_gates*H) -> (rows, n_gates*Hp): each gate aligned to a 128-lane boundary
        rows = w.shape[0]
        out = jnp.zeros((rows, n_gates * Hp), jnp.float32)
        for g in range(n_gates):
            out = out.at[:, g * Hp:g * Hp + H].set(w[:, g * H:(g + 1) * H])
        return out

    def row_pad(w, rows_p):
        return jnp.pad(w, ((0, rows_p - w.shape[0]), (0, 0)))

    # ---- layer 0 ----
    w_ih0 = gate_pad_cols(params["w_ih_l0"], 3)                      # (I, 3Hp)
    w_hh0 = row_pad(gate_pad_cols(params["w_hh_l0"], 3), Hp)         # (Hp, 3Hp)
    b_ih0, b_hh0 = params["b_ih_l0"], params["b_hh_l0"]              # (1, 3H)
    # fold b_hh (r,z) into the hoisted bias; keep b_hn separate (lives inside r*(...))
    b0 = gate_pad_cols(jnp.concatenate(
        [b_ih0[:, :2 * H] + b_hh0[:, :2 * H], b_ih0[:, 2 * H:]], axis=1), 3)   # (1, 3Hp)
    b_hn0 = gate_pad_cols(b_hh0[:, 2 * H:], 1)                                 # (1, Hp)

    # ---- layer 1 fused: [h0 | h1] @ w1 -> [r | z | gi_n | gh_n] (each Hp wide) ----
    w_ih1, w_hh1 = params["w_ih_l1"], params["w_hh_l1"]              # (H, 3H) each
    zeros_hh = jnp.zeros((H, H), jnp.float32)
    top = jnp.concatenate([w_ih1[:, :2 * H], w_ih1[:, 2 * H:], zeros_hh], axis=1)  # from h0
    bot = jnp.concatenate([w_hh1[:, :2 * H], zeros_hh, w_hh1[:, 2 * H:]], axis=1)  # from h1_prev
    w1 = jnp.concatenate([row_pad(gate_pad_cols(top, 4), Hp),
                          row_pad(gate_pad_cols(bot, 4), Hp)], axis=0)             # (2Hp, 4Hp)
    b_ih1, b_hh1 = params["b_ih_l1"], params["b_hh_l1"]
    b1 = gate_pad_cols(jnp.concatenate(
        [b_ih1[:, :2 * H] + b_hh1[:, :2 * H], b_ih1[:, 2 * H:], b_hh1[:, 2 * H:]],
        axis=1), 4)                                                                # (1, 4Hp)

    # ---- fc (lane-dense padded output) ----
    w_fc = jnp.pad(params["w_fc"], ((0, Hp - H), (0, Op - output_size)))           # (Hp, Op)
    b_fc = jnp.pad(params["b_fc"], ((0, 0), (0, Op - output_size)))                # (1, Op)

    return dict(w_ih0=w_ih0, w_hh0=w_hh0, b0=b0, b_hn0=b_hn0,
                w1=w1, b1=b1, w_fc=w_fc, b_fc=b_fc,
                hp=Hp, op=Op, out_size=output_size)


def _full_spec(shape):
    nd = len(shape)
    return pl.BlockSpec(shape, lambda j, _n=nd: (0,) * _n)


def bus_classifier_gru_forward(x, packed):
    """x: (B, T, I) batch_first float32. Returns (B, output_size)."""
    B, T, I = x.shape
    Hp, Op, O = packed["hp"], packed["op"], packed["out_size"]

    # Pad batch to a multiple of the 8-row tile; padded rows never touch real rows.
    Bp = ((B + TILE_B - 1) // TILE_B) * TILE_B
    if Bp != B:
        x = jnp.pad(x, ((0, Bp - B), (0, 0), (0, 0)))
    nb = Bp // TILE_B

    # Per-batch-tile, time-major layout (layout plumbing only):
    # (Bp, T, I) -> (nb, T*TILE_B, I), rows within a tile ordered t-major.
    xt = jnp.transpose(x, (1, 0, 2)).reshape(T, nb, TILE_B, I)
    xt = jnp.transpose(xt, (1, 0, 2, 3)).reshape(nb, T * TILE_B, I)

    kernel = functools.partial(_gru_fc_kernel, seq_len=T, tile_b=TILE_B, hp=Hp)

    w_args = (packed["w_ih0"], packed["w_hh0"], packed["b0"], packed["b_hn0"],
              packed["w1"], packed["b1"], packed["w_fc"], packed["b_fc"])

    out = pl.pallas_call(
        kernel,
        out_shape=jax.ShapeDtypeStruct((Bp, Op), jnp.float32),
        grid=(nb,),
        in_specs=[pl.BlockSpec((None, T * TILE_B, I), lambda j: (j, 0, 0))]
                 + [_full_spec(w.shape) for w in w_args],
        out_specs=pl.BlockSpec((TILE_B, Op), lambda j: (j, 0)),
        compiler_params=pltpu.CompilerParams(
            dimension_semantics=("parallel",)),     # shards batch tiles across v7x's 2 TCs
    )(xt, *w_args)
    return out[:B, :O]


def init_params(key, input_size, hidden_size, output_size):
    """Deterministic synthetic params, matching PyTorch shapes (pre-transposed)."""
    H = hidden_size
    k = 1.0 / np.sqrt(H)
    keys = jax.random.split(key, 10)

    def u(kk, shape):
        return jax.random.uniform(kk, shape, jnp.float32, -k, k)

    return {
        # layer 0: W_ih (3H, I) stored transposed as (I, 3H); W_hh as (H, 3H)
        "w_ih_l0": u(keys[0], (input_size, 3 * H)),
        "w_hh_l0": u(keys[1], (H, 3 * H)),
        "b_ih_l0": u(keys[2], (1, 3 * H)),
        "b_hh_l0": u(keys[3], (1, 3 * H)),
        # layer 1: input is hidden of layer 0
        "w_ih_l1": u(keys[4], (H, 3 * H)),
        "w_hh_l1": u(keys[5], (H, 3 * H)),
        "b_ih_l1": u(keys[6], (1, 3 * H)),
        "b_hh_l1": u(keys[7], (1, 3 * H)),
        # fc: Linear(H -> output_size), weight stored transposed (H, O)
        "w_fc": u(keys[8], (H, output_size)),
        "b_fc": u(keys[9], (1, output_size)),
    }


def reference_forward(x, params):
    """Pure-JAX reference of the same forward pass (for correctness check)."""
    B, T, I = x.shape
    H = params["w_hh_l0"].shape[0]

    def cell(x_t, h, wih, whh, bih, bhh):
        gi = x_t @ wih + bih
        gh = h @ whh + bhh
        r = jax.nn.sigmoid(gi[:, :H] + gh[:, :H])
        z = jax.nn.sigmoid(gi[:, H:2 * H] + gh[:, H:2 * H])
        n = jnp.tanh(gi[:, 2 * H:] + r * gh[:, 2 * H:])
        return (1.0 - z) * n + z * h

    h0 = jnp.zeros((B, H), jnp.float32)
    h1 = jnp.zeros((B, H), jnp.float32)
    for t in range(T):
        x_t = x[:, t, :]
        h0 = cell(x_t, h0, params["w_ih_l0"], params["w_hh_l0"],
                  params["b_ih_l0"], params["b_hh_l0"])
        h1 = cell(h0, h1, params["w_ih_l1"], params["w_hh_l1"],
                  params["b_ih_l1"], params["b_hh_l1"])
    return jnp.maximum(h1, 0.0) @ params["w_fc"] + params["b_fc"]


if __name__ == "__main__":
    batch = 8          # fills the 8-sublane dim; padding path handles any B
    seq_len = 8
    input_size = 16
    hidden_size = 32
    output_size = 2

    key = jax.random.PRNGKey(0)
    kx, kp = jax.random.split(key)
    x = jax.random.normal(kx, (batch, seq_len, input_size), jnp.float32)
    params = init_params(kp, input_size, hidden_size, output_size)
    packed = pack_params(params, output_size)

    out = bus_classifier_gru_forward(x, packed)
    out = jax.block_until_ready(out)

    ref = reference_forward(x, params)
    np.testing.assert_allclose(np.asarray(out), np.asarray(ref),
                               rtol=2e-5, atol=2e-5)

    print("KERNEL_OK")
</pallas_src>

<mosaic_0001>
module attributes {stable_mosaic.version = 11 : i64} {
  func.func @_gru_fc_kernel(%arg0: i32, %arg1: memref<1x64x16xf32, #tpu.memory_space<vmem>>, %arg2: memref<16x384xf32, #tpu.memory_space<vmem>>, %arg3: memref<128x384xf32, #tpu.memory_space<vmem>>, %arg4: memref<1x384xf32, #tpu.memory_space<vmem>>, %arg5: memref<1x128xf32, #tpu.memory_space<vmem>>, %arg6: memref<256x512xf32, #tpu.memory_space<vmem>>, %arg7: memref<1x512xf32, #tpu.memory_space<vmem>>, %arg8: memref<128x128xf32, #tpu.memory_space<vmem>>, %arg9: memref<1x128xf32, #tpu.memory_space<vmem>>, %arg10: memref<8x128xf32, #tpu.memory_space<vmem>>) attributes {dimension_semantics = [#tpu.dimension_semantics<parallel>], iteration_bounds = array<i64: 1>, scalar_prefetch = 0 : i64, scratch_operands = 0 : i64, tpu.core_type = #tpu.core_type<tc>, window_params = [{transform_indices = @transform_0, window_bounds = array<i64: 1, 64, 16>}, {pipeline_mode = #tpu.pipeline_mode<synchronous>, transform_indices = @transform_1, window_bounds = array<i64: 16, 384>}, {pipeline_mode = #tpu.pipeline_mode<synchronous>, transform_indices = @transform_2, window_bounds = array<i64: 128, 384>}, {pipeline_mode = #tpu.pipeline_mode<synchronous>, transform_indices = @transform_3, window_bounds = array<i64: 1, 384>}, {pipeline_mode = #tpu.pipeline_mode<synchronous>, transform_indices = @transform_4, window_bounds = array<i64: 1, 128>}, {pipeline_mode = #tpu.pipeline_mode<synchronous>, transform_indices = @transform_5, window_bounds = array<i64: 256, 512>}, {pipeline_mode = #tpu.pipeline_mode<synchronous>, transform_indices = @transform_6, window_bounds = array<i64: 1, 512>}, {pipeline_mode = #tpu.pipeline_mode<synchronous>, transform_indices = @transform_7, window_bounds = array<i64: 128, 128>}, {pipeline_mode = #tpu.pipeline_mode<synchronous>, transform_indices = @transform_8, window_bounds = array<i64: 1, 128>}, {transform_indices = @transform_9, window_bounds = array<i64: 8, 128>}]} {
    %c0 = arith.constant 0 : index
    %c0_0 = arith.constant 0 : index
    %c0_1 = arith.constant 0 : index
    %0 = vector.load %arg1[%c0, %c0_0, %c0_1] : memref<1x64x16xf32, #tpu.memory_space<vmem>>, vector<1x64x16xf32>
    %1 = vector.shape_cast %0 : vector<1x64x16xf32> to vector<64x16xf32>
    %c0_2 = arith.constant 0 : index
    %c0_3 = arith.constant 0 : index
    %2 = vector.load %arg2[%c0_2, %c0_3] : memref<16x384xf32, #tpu.memory_space<vmem>>, vector<16x384xf32>
    %cst = arith.constant dense<0.000000e+00> : vector<64x384xf32>
    %3 = tpu.matmul %1, %2, %cst {dimension_numbers = #tpu.dot_dimension_numbers<[1], [0], [0], [1], [0, 0, 1, 1], [], []>} : vector<64x16xf32>, vector<16x384xf32>, vector<64x384xf32> -> vector<64x384xf32>
    %c0_4 = arith.constant 0 : index
    %c0_5 = arith.constant 0 : index
    %4 = vector.load %arg4[%c0_4, %c0_5] : memref<1x384xf32, #tpu.memory_space<vmem>>, vector<1x384xf32>
    %5 = vector.broadcast %4 : vector<1x384xf32> to vector<64x384xf32>
    %6 = arith.addf %3, %5 : vector<64x384xf32>
    %c0_6 = arith.constant 0 : index
    %c0_7 = arith.constant 0 : index
    %7 = vector.load %arg3[%c0_6, %c0_7] : memref<128x384xf32, #tpu.memory_space<vmem>>, vector<128x384xf32>
    %c0_8 = arith.constant 0 : index
    %c0_9 = arith.constant 0 : index
    %8 = vector.load %arg6[%c0_8, %c0_9] : memref<256x512xf32, #tpu.memory_space<vmem>>, vector<256x512xf32>
    %c0_10 = arith.constant 0 : index
    %c0_11 = arith.constant 0 : index
    %9 = vector.load %arg7[%c0_10, %c0_11] : memref<1x512xf32, #tpu.memory_space<vmem>>, vector<1x512xf32>
    %10 = vector.shape_cast %9 : vector<1x512xf32> to vector<1x512xf32>
    %11 = vector.broadcast %10 : vector<1x512xf32> to vector<8x512xf32>
    %c0_12 = arith.constant 0 : index
    %c0_13 = arith.constant 0 : index
    %12 = vector.load %arg5[%c0_12, %c0_13] : memref<1x128xf32, #tpu.memory_space<vmem>>, vector<1x128xf32>
    %13 = vector.shape_cast %12 : vector<1x128xf32> to vector<1x128xf32>
    %14 = vector.broadcast %13 : vector<1x128xf32> to vector<8x128xf32>
    %cst_14 = arith.constant 0.000000e+00 : f32
    %15 = vector.broadcast %cst_14 : f32 to vector<8x128xf32>
    %cst_15 = arith.constant 0.000000e+00 : f32
    %16 = vector.broadcast %cst_15 : f32 to vector<8x128xf32>
    %cst_16 = arith.constant dense<0.000000e+00> : vector<8x384xf32>
    %17 = tpu.matmul %15, %7, %cst_16 {dimension_numbers = #tpu.dot_dimension_numbers<[1], [0], [0], [1], [0, 0, 1, 1], [], []>} : vector<8x128xf32>, vector<128x384xf32>, vector<8x384xf32> -> vector<8x384xf32>
    %18 = vector.extract_strided_slice %6 {offsets = [0, 0], sizes = [8, 384], strides = [1, 1]} : vector<64x384xf32> to vector<8x384xf32>
    %19 = vector.extract_strided_slice %18 {offsets = [0, 0], sizes = [8, 256], strides = [1, 1]} : vector<8x384xf32> to vector<8x256xf32>
    %20 = vector.extract_strided_slice %17 {offsets = [0, 0], sizes = [8, 256], strides = [1, 1]} : vector<8x384xf32> to vector<8x256xf32>
    %21 = arith.addf %19, %20 : vector<8x256xf32>
    %cst_17 = arith.constant 5.000000e-01 : f32
    %22 = vector.broadcast %cst_17 : f32 to vector<8x256xf32>
    %23 = arith.mulf %22, %21 : vector<8x256xf32>
    %24 = math.tanh %23 : vector<8x256xf32>
    %cst_18 = arith.constant 5.000000e-01 : f32
    %25 = vector.broadcast %cst_18 : f32 to vector<8x256xf32>
    %26 = arith.mulf %25, %24 : vector<8x256xf32>
    %cst_19 = arith.constant 5.000000e-01 : f32
    %27 = vector.broadcast %cst_19 : f32 to vector<8x256xf32>
    %28 = arith.addf %26, %27 : vector<8x256xf32>
    %29 = vector.extract_strided_slice %28 {offsets = [0, 0], sizes = [8, 128], strides = [1, 1]} : vector<8x256xf32> to vector<8x128xf32>
    %30 = vector.extract_strided_slice %28 {offsets = [0, 128], sizes = [8, 128], strides = [1, 1]} : vector<8x256xf32> to vector<8x128xf32>
    %31 = vector.extract_strided_slice %18 {offsets = [0, 256], sizes = [8, 128], strides = [1, 1]} : vector<8x384xf32> to vector<8x128xf32>
    %32 = vector.extract_strided_slice %17 {offsets = [0, 256], sizes = [8, 128], strides = [1, 1]} : vector<8x384xf32> to vector<8x128xf32>
    %33 = arith.addf %32, %14 : vector<8x128xf32>
    %34 = arith.mulf %29, %33 : vector<8x128xf32>
    %35 = arith.addf %31, %34 : vector<8x128xf32>
    %36 = math.tanh %35 : vector<8x128xf32>
    %37 = arith.subf %15, %36 : vector<8x128xf32>
    %38 = arith.mulf %30, %37 : vector<8x128xf32>
    %39 = arith.addf %36, %38 : vector<8x128xf32>
    %40 = tpu.concatenate %39, %16 in 1 : vector<8x128xf32>, vector<8x128xf32> -> vector<8x256xf32>
    %cst_20 = arith.constant dense<0.000000e+00> : vector<8x512xf32>
    %41 = tpu.matmul %40, %8, %cst_20 {dimension_numbers = #tpu.dot_dimension_numbers<[1], [0], [0], [1], [0, 0, 1, 1], [], []>} : vector<8x256xf32>, vector<256x512xf32>, vector<8x512xf32> -> vector<8x512xf32>
    %42 = arith.addf %41, %11 : vector<8x512xf32>
    %43 = vector.extract_strided_slice %42 {offsets = [0, 0], sizes = [8, 256], strides = [1, 1]} : vector<8x512xf32> to vector<8x256xf32>
    %cst_21 = arith.constant 5.000000e-01 : f32
    %44 = vector.broadcast %cst_21 : f32 to vector<8x256xf32>
    %45 = arith.mulf %44, %43 : vector<8x256xf32>
    %46 = math.tanh %45 : vector<8x256xf32>
    %cst_22 = arith.constant 5.000000e-01 : f32
    %47 = vector.broadcast %cst_22 : f32 to vector<8x256xf32>
    %48 = arith.mulf %47, %46 : vector<8x256xf32>
    %cst_23 = arith.constant 5.000000e-01 : f32
    %49 = vector.broadcast %cst_23 : f32 to vector<8x256xf32>
    %50 = arith.addf %48, %49 : vector<8x256xf32>
    %51 = vector.extract_strided_slice %50 {offsets = [0, 0], sizes = [8, 128], strides = [1, 1]} : vector<8x256xf32> to vector<8x128xf32>
    %52 = vector.extract_strided_slice %50 {offsets = [0, 128], sizes = [8, 128], strides = [1, 1]} : vector<8x256xf32> to vector<8x128xf32>
    %53 = vector.extract_strided_slice %42 {offsets = [0, 256], sizes = [8, 128], strides = [1, 1]} : vector<8x512xf32> to vector<8x128xf32>
    %54 = vector.extract_strided_slice %42 {offsets = [0, 384], sizes = [8, 128], strides = [1, 1]} : vector<8x512xf32> to vector<8x128xf32>
    %55 = arith.mulf %51, %54 : vector<8x128xf32>
    %56 = arith.addf %53, %55 : vector<8x128xf32>
    %57 = math.tanh %56 : vector<8x128xf32>
    %58 = arith.subf %16, %57 : vector<8x128xf32>
    %59 = arith.mulf %52, %58 : vector<8x128xf32>
    %60 = arith.addf %57, %59 : vector<8x128xf32>
    %cst_24 = arith.constant dense<0.000000e+00> : vector<8x384xf32>
    %61 = tpu.matmul %39, %7, %cst_24 {dimension_numbers = #tpu.dot_dimension_numbers<[1], [0], [0], [1], [0, 0, 1, 1], [], []>} : vector<8x128xf32>, vector<128x384xf32>, vector<8x384xf32> -> vector<8x384xf32>
    %62 = vector.extract_strided_slice %6 {offsets = [8, 0], sizes = [8, 384], strides = [1, 1]} : vector<64x384xf32> to vector<8x384xf32>
    %63 = vector.extract_strided_slice %62 {offsets = [0, 0], sizes = [8, 256], strides = [1, 1]} : vector<8x384xf32> to vector<8x256xf32>
    %64 = vector.extract_strided_slice %61 {offsets = [0, 0], sizes = [8, 256], strides = [1, 1]} : vector<8x384xf32> to vector<8x256xf32>
    %65 = arith.addf %63, %64 : vector<8x256xf32>
    %cst_25 = arith.constant 5.000000e-01 : f32
    %66 = vector.broadcast %cst_25 : f32 to vector<8x256xf32>
    %67 = arith.mulf %66, %65 : vector<8x256xf32>
    %68 = math.tanh %67 : vector<8x256xf32>
    %cst_26 = arith.constant 5.000000e-01 : f32
    %69 = vector.broadcast %cst_26 : f32 to vector<8x256xf32>
    %70 = arith.mulf %69, %68 : vector<8x256xf32>
    %cst_27 = arith.constant 5.000000e-01 : f32
    %71 = vector.broadcast %cst_27 : f32 to vector<8x256xf32>
    %72 = arith.addf %70, %71 : vector<8x256xf32>
    %73 = vector.extract_strided_slice %72 {offsets = [0, 0], sizes = [8, 128], strides = [1, 1]} : vector<8x256xf32> to vector<8x128xf32>
    %74 = vector.extract_strided_slice %72 {offsets = [0, 128], sizes = [8, 128], strides = [1, 1]} : vector<8x256xf32> to vector<8x128xf32>
    %75 = vector.extract_strided_slice %62 {offsets = [0, 256], sizes = [8, 128], strides = [1, 1]} : vector<8x384xf32> to vector<8x128xf32>
    %76 = vector.extract_strided_slice %61 {offsets = [0, 256], sizes = [8, 128], strides = [1, 1]} : vector<8x384xf32> to vector<8x128xf32>
    %77 = arith.addf %76, %14 : vector<8x128xf32>
    %78 = arith.mulf %73, %77 : vector<8x128xf32>
    %79 = arith.addf %75, %78 : vector<8x128xf32>
    %80 = math.tanh %79 : vector<8x128xf32>
    %81 = arith.subf %39, %80 : vector<8x128xf32>
    %82 = arith.mulf %74, %81 : vector<8x128xf32>
    %83 = arith.addf %80, %82 : vector<8x128xf32>
    %84 = tpu.concatenate %83, %60 in 1 : vector<8x128xf32>, vector<8x128xf32> -> vector<8x256xf32>
    %cst_28 = arith.constant dense<0.000000e+00> : vector<8x512xf32>
    %85 = tpu.matmul %84, %8, %cst_28 {dimension_numbers = #tpu.dot_dimension_numbers<[1], [0], [0], [1], [0, 0, 1, 1], [], []>} : vector<8x256xf32>, vector<256x512xf32>, vector<8x512xf32> -> vector<8x512xf32>
    %86 = arith.addf %85, %11 : vector<8x512xf32>
    %87 = vector.extract_strided_slice %86 {offsets = [0, 0], sizes = [8, 256], strides = [1, 1]} : vector<8x512xf32> to vector<8x256xf32>
    %cst_29 = arith.constant 5.000000e-01 : f32
    %88 = vector.broadcast %cst_29 : f32 to vector<8x256xf32>
    %89 = arith.mulf %88, %87 : vector<8x256xf32>
    %90 = math.tanh %89 : vector<8x256xf32>
    %cst_30 = arith.constant 5.000000e-01 : f32
    %91 = vector.broadcast %cst_30 : f32 to vector<8x256xf32>
    %92 = arith.mulf %91, %90 : vector<8x256xf32>
    %cst_31 = arith.constant 5.000000e-01 : f32
    %93 = vector.broadcast %cst_31 : f32 to vector<8x256xf32>
    %94 = arith.addf %92, %93 : vector<8x256xf32>
    %95 = vector.extract_strided_slice %94 {offsets = [0, 0], sizes = [8, 128], strides = [1, 1]} : vector<8x256xf32> to vector<8x128xf32>
    %96 = vector.extract_strided_slice %94 {offsets = [0, 128], sizes = [8, 128], strides = [1, 1]} : vector<8x256xf32> to vector<8x128xf32>
    %97 = vector.extract_strided_slice %86 {offsets = [0, 256], sizes = [8, 128], strides = [1, 1]} : vector<8x512xf32> to vector<8x128xf32>
    %98 = vector.extract_strided_slice %86 {offsets = [0, 384], sizes = [8, 128], strides = [1, 1]} : vector<8x512xf32> to vector<8x128xf32>
    %99 = arith.mulf %95, %98 : vector<8x128xf32>
    %100 = arith.addf %97, %99 : vector<8x128xf32>
    %101 = math.tanh %100 : vector<8x128xf32>
    %102 = arith.subf %60, %101 : vector<8x128xf32>
    %103 = arith.mulf %96, %102 : vector<8x128xf32>
    %104 = arith.addf %101, %103 : vector<8x128xf32>
    %cst_32 = arith.constant dense<0.000000e+00> : vector<8x384xf32>
    %105 = tpu.matmul %83, %7, %cst_32 {dimension_numbers = #tpu.dot_dimension_numbers<[1], [0], [0], [1], [0, 0, 1, 1], [], []>} : vector<8x128xf32>, vector<128x384xf32>, vector<8x384xf32> -> vector<8x384xf32>
    %106 = vector.extract_strided_slice %6 {offsets = [16, 0], sizes = [8, 384], strides = [1, 1]} : vector<64x384xf32> to vector<8x384xf32>
    %107 = vector.extract_strided_slice %106 {offsets = [0, 0], sizes = [8, 256], strides = [1, 1]} : vector<8x384xf32> to vector<8x256xf32>
    %108 = vector.extract_strided_slice %105 {offsets = [0, 0], sizes = [8, 256], strides = [1, 1]} : vector<8x384xf32> to vector<8x256xf32>
    %109 = arith.addf %107, %108 : vector<8x256xf32>
    %cst_33 = arith.constant 5.000000e-01 : f32
    %110 = vector.broadcast %cst_33 : f32 to vector<8x256xf32>
    %111 = arith.mulf %110, %109 : vector<8x256xf32>
    %112 = math.tanh %111 : vector<8x256xf32>
    %cst_34 = arith.constant 5.000000e-01 : f32
    %113 = vector.broadcast %cst_34 : f32 to vector<8x256xf32>
    %114 = arith.mulf %113, %112 : vector<8x256xf32>
    %cst_35 = arith.constant 5.000000e-01 : f32
    %115 = vector.broadcast %cst_35 : f32 to vector<8x256xf32>
    %116 = arith.addf %114, %115 : vector<8x256xf32>
    %117 = vector.extract_strided_slice %116 {offsets = [0, 0], sizes = [8, 128], strides = [1, 1]} : vector<8x256xf32> to vector<8x128xf32>
    %118 = vector.extract_strided_slice %116 {offsets = [0, 128], sizes = [8, 128], strides = [1, 1]} : vector<8x256xf32> to vector<8x128xf32>
    %119 = vector.extract_strided_slice %106 {offsets = [0, 256], sizes = [8, 128], strides = [1, 1]} : vector<8x384xf32> to vector<8x128xf32>
    %120 = vector.extract_strided_slice %105 {offsets = [0, 256], sizes = [8, 128], strides = [1, 1]} : vector<8x384xf32> to vector<8x128xf32>
    %121 = arith.addf %120, %14 : vector<8x128xf32>
    %122 = arith.mulf %117, %121 : vector<8x128xf32>
    %123 = arith.addf %119, %122 : vector<8x128xf32>
    %124 = math.tanh %123 : vector<8x128xf32>
    %125 = arith.subf %83, %124 : vector<8x128xf32>
    %126 = arith.mulf %118, %125 : vector<8x128xf32>
    %127 = arith.addf %124, %126 : vector<8x128xf32>
    %128 = tpu.concatenate %127, %104 in 1 : vector<8x128xf32>, vector<8x128xf32> -> vector<8x256xf32>
    %cst_36 = arith.constant dense<0.000000e+00> : vector<8x512xf32>
    %129 = tpu.matmul %128, %8, %cst_36 {dimension_numbers = #tpu.dot_dimension_numbers<[1], [0], [0], [1], [0, 0, 1, 1], [], []>} : vector<8x256xf32>, vector<256x512xf32>, vector<8x512xf32> -> vector<8x512xf32>
    %130 = arith.addf %129, %11 : vector<8x512xf32>
    %131 = vector.extract_strided_slice %130 {offsets = [0, 0], sizes = [8, 256], strides = [1, 1]} : vector<8x512xf32> to vector<8x256xf32>
    %cst_37 = arith.constant 5.000000e-01 : f32
    %132 = vector.broadcast %cst_37 : f32 to vector<8x256xf32>
    %133 = arith.mulf %132, %131 : vector<8x256xf32>
    %134 = math.tanh %133 : vector<8x256xf32>
    %cst_38 = arith.constant 5.000000e-01 : f32
    %135 = vector.broadcast %cst_38 : f32 to vector<8x256xf32>
    %136 = arith.mulf %135, %134 : vector<8x256xf32>
    %cst_39 = arith.constant 5.000000e-01 : f32
    %137 = vector.broadcast %cst_39 : f32 to vector<8x256xf32>
    %138 = arith.addf %136, %137 : vector<8x256xf32>
    %139 = vector.extract_strided_slice %138 {offsets = [0, 0], sizes = [8, 128], strides = [1, 1]} : vector<8x256xf32> to vector<8x128xf32>
    %140 = vector.extract_strided_slice %138 {offsets = [0, 128], sizes = [8, 128], strides = [1, 1]} : vector<8x256xf32> to vector<8x128xf32>
    %141 = vector.extract_strided_slice %130 {offsets = [0, 256], sizes = [8, 128], strides = [1, 1]} : vector<8x512xf32> to vector<8x128xf32>
    %142 = vector.extract_strided_slice %130 {offsets = [0, 384], sizes = [8, 128], strides = [1, 1]} : vector<8x512xf32> to vector<8x128xf32>
    %143 = arith.mulf %139, %142 : vector<8x128xf32>
    %144 = arith.addf %141, %143 : vector<8x128xf32>
    %145 = math.tanh %144 : vector<8x128xf32>
    %146 = arith.subf %104, %145 : vector<8x128xf32>
    %147 = arith.mulf %140, %146 : vector<8x128xf32>
    %148 = arith.addf %145, %147 : vector<8x128xf32>
    %cst_40 = arith.constant dense<0.000000e+00> : vector<8x384xf32>
    %149 = tpu.matmul %127, %7, %cst_40 {dimension_numbers = #tpu.dot_dimension_numbers<[1], [0], [0], [1], [0, 0, 1, 1], [], []>} : vector<8x128xf32>, vector<128x384xf32>, vector<8x384xf32> -> vector<8x384xf32>
    %150 = vector.extract_strided_slice %6 {offsets = [24, 0], sizes = [8, 384], strides = [1, 1]} : vector<64x384xf32> to vector<8x384xf32>
    %151 = vector.extract_strided_slice %150 {offsets = [0, 0], sizes = [8, 256], strides = [1, 1]} : vector<8x384xf32> to vector<8x256xf32>
    %152 = vector.extract_strided_slice %149 {offsets = [0, 0], sizes = [8, 256], strides = [1, 1]} : vector<8x384xf32> to vector<8x256xf32>
    %153 = arith.addf %151, %152 : vector<8x256xf32>
    %cst_41 = arith.constant 5.000000e-01 : f32
    %154 = vector.broadcast %cst_41 : f32 to vector<8x256xf32>
    %155 = arith.mulf %154, %153 : vector<8x256xf32>
    %156 = math.tanh %155 : vector<8x256xf32>
    %cst_42 = arith.constant 5.000000e-01 : f32
    %157 = vector.broadcast %cst_42 : f32 to vector<8x256xf32>
    %158 = arith.mulf %157, %156 : vector<8x256xf32>
    %cst_43 = arith.constant 5.000000e-01 : f32
    %159 = vector.broadcast %cst_43 : f32 to vector<8x256xf32>
    %160 = arith.addf %158, %159 : vector<8x256xf32>
    %161 = vector.extract_strided_slice %160 {offsets = [0, 0], sizes = [8, 128], strides = [1, 1]} : vector<8x256xf32> to vector<8x128xf32>
    %162 = vector.extract_strided_slice %160 {offsets = [0, 128], sizes = [8, 128], strides = [1, 1]} : vector<8x256xf32> to vector<8x128xf32>
    %163 = vector.extract_strided_slice %150 {offsets = [0, 256], sizes = [8, 128], strides = [1, 1]} : vector<8x384xf32> to vector<8x128xf32>
    %164 = vector.extract_strided_slice %149 {offsets = [0, 256], sizes = [8, 128], strides = [1, 1]} : vector<8x384xf32> to vector<8x128xf32>
    %165 = arith.addf %164, %14 : vector<8x128xf32>
    %166 = arith.mulf %161, %165 : vector<8x128xf32>
    %167 = arith.addf %163, %166 : vector<8x128xf32>
    %168 = math.tanh %167 : vector<8x128xf32>
    %169 = arith.subf %127, %168 : vector<8x128xf32>
    %170 = arith.mulf %162, %169 : vector<8x128xf32>
    %171 = arith.addf %168, %170 : vector<8x128xf32>
    %172 = tpu.concatenate %171, %148 in 1 : vector<8x128xf32>, vector<8x128xf32> -> vector<8x256xf32>
    %cst_44 = arith.constant dense<0.000000e+00> : vector<8x512xf32>
    %173 = tpu.matmul %172, %8, %cst_44 {dimension_numbers = #tpu.dot_dimension_numbers<[1], [0], [0], [1], [0, 0, 1, 1], [], []>} : vector<8x256xf32>, vector<256x512xf32>, vector<8x512xf32> -> vector<8x512xf32>
    %174 = arith.addf %173, %11 : vector<8x512xf32>
    %175 = vector.extract_strided_slice %174 {offsets = [0, 0], sizes = [8, 256], strides = [1, 1]} : vector<8x512xf32> to vector<8x256xf32>
    %cst_45 = arith.constant 5.000000e-01 : f32
    %176 = vector.broadcast %cst_45 : f32 to vector<8x256xf32>
    %177 = arith.mulf %176, %175 : vector<8x256xf32>
    %178 = math.tanh %177 : vector<8x256xf32>
    %cst_46 = arith.constant 5.000000e-01 : f32
    %179 = vector.broadcast %cst_46 : f32 to vector<8x256xf32>
    %180 = arith.mulf %179, %178 : vector<8x256xf32>
    %cst_47 = arith.constant 5.000000e-01 : f32
    %181 = vector.broadcast %cst_47 : f32 to vector<8x256xf32>
    %182 = arith.addf %180, %181 : vector<8x256xf32>
    %183 = vector.extract_strided_slice %182 {offsets = [0, 0], sizes = [8, 128], strides = [1, 1]} : vector<8x256xf32> to vector<8x128xf32>
    %184 = vector.extract_strided_slice %182 {offsets = [0, 128], sizes = [8, 128], strides = [1, 1]} : vector<8x256xf32> to vector<8x128xf32>
    %185 = vector.extract_strided_slice %174 {offsets = [0, 256], sizes = [8, 128], strides = [1, 1]} : vector<8x512xf32> to vector<8x128xf32>
    %186 = vector.extract_strided_slice %174 {offsets = [0, 384], sizes = [8, 128], strides = [1, 1]} : vector<8x512xf32> to vector<8x128xf32>
    %187 = arith.mulf %183, %186 : vector<8x128xf32>
    %188 = arith.addf %185, %187 : vector<8x128xf32>
    %189 = math.tanh %188 : vector<8x128xf32>
    %190 = arith.subf %148, %189 : vector<8x128xf32>
    %191 = arith.mulf %184, %190 : vector<8x128xf32>
    %192 = arith.addf %189, %191 : vector<8x128xf32>
    %cst_48 = arith.constant dense<0.000000e+00> : vector<8x384xf32>
    %193 = tpu.matmul %171, %7, %cst_48 {dimension_numbers = #tpu.dot_dimension_numbers<[1], [0], [0], [1], [0, 0, 1, 1], [], []>} : vector<8x128xf32>, vector<128x384xf32>, vector<8x384xf32> -> vector<8x384xf32>
    %194 = vector.extract_strided_slice %6 {offsets = [32, 0], sizes = [8, 384], strides = [1, 1]} : vector<64x384xf32> to vector<8x384xf32>
    %195 = vector.extract_strided_slice %194 {offsets = [0, 0], sizes = [8, 256], strides = [1, 1]} : vector<8x384xf32> to vector<8x256xf32>
    %196 = vector.extract_strided_slice %193 {offsets = [0, 0], sizes = [8, 256], strides = [1, 1]} : vector<8x384xf32> to vector<8x256xf32>
    %197 = arith.addf %195, %196 : vector<8x256xf32>
    %cst_49 = arith.constant 5.000000e-01 : f32
    %198 = vector.broadcast %cst_49 : f32 to vector<8x256xf32>
    %199 = arith.mulf %198, %197 : vector<8x256xf32>
    %200 = math.tanh %199 : vector<8x256xf32>
    %cst_50 = arith.constant 5.000000e-01 : f32
    %201 = vector.broadcast %cst_50 : f32 to vector<8x256xf32>
    %202 = arith.mulf %201, %200 : vector<8x256xf32>
    %cst_51 = arith.constant 5.000000e-01 : f32
    %203 = vector.broadcast %cst_51 : f32 to vector<8x256xf32>
    %204 = arith.addf %202, %203 : vector<8x256xf32>
    %205 = vector.extract_strided_slice %204 {offsets = [0, 0], sizes = [8, 128], strides = [1, 1]} : vector<8x256xf32> to vector<8x128xf32>
    %206 = vector.extract_strided_slice %204 {offsets = [0, 128], sizes = [8, 128], strides = [1, 1]} : vector<8x256xf32> to vector<8x128xf32>
    %207 = vector.extract_strided_slice %194 {offsets = [0, 256], sizes = [8, 128], strides = [1, 1]} : vector<8x384xf32> to vector<8x128xf32>
    %208 = vector.extract_strided_slice %193 {offsets = [0, 256], sizes = [8, 128], strides = [1, 1]} : vector<8x384xf32> to vector<8x128xf32>
    %209 = arith.addf %208, %14 : vector<8x128xf32>
    %210 = arith.mulf %205, %209 : vector<8x128xf32>
    %211 = arith.addf %207, %210 : vector<8x128xf32>
    %212 = math.tanh %211 : vector<8x128xf32>
    %213 = arith.subf %171, %212 : vector<8x128xf32>
    %214 = arith.mulf %206, %213 : vector<8x128xf32>
    %215 = arith.addf %212, %214 : vector<8x128xf32>
    %216 = tpu.concatenate %215, %192 in 1 : vector<8x128xf32>, vector<8x128xf32> -> vector<8x256xf32>
    %cst_52 = arith.constant dense<0.000000e+00> : vector<8x512xf32>
    %217 = tpu.matmul %216, %8, %cst_52 {dimension_numbers = #tpu.dot_dimension_numbers<[1], [0], [0], [1], [0, 0, 1, 1], [], []>} : vector<8x256xf32>, vector<256x512xf32>, vector<8x512xf32> -> vector<8x512xf32>
    %218 = arith.addf %217, %11 : vector<8x512xf32>
    %219 = vector.extract_strided_slice %218 {offsets = [0, 0], sizes = [8, 256], strides = [1, 1]} : vector<8x512xf32> to vector<8x256xf32>
    %cst_53 = arith.constant 5.000000e-01 : f32
    %220 = vector.broadcast %cst_53 : f32 to vector<8x256xf32>
    %221 = arith.mulf %220, %219 : vector<8x256xf32>
    %222 = math.tanh %221 : vector<8x256xf32>
    %cst_54 = arith.constant 5.000000e-01 : f32
    %223 = vector.broadcast %cst_54 : f32 to vector<8x256xf32>
    %224 = arith.mulf %223, %222 : vector<8x256xf32>
    %cst_55 = arith.constant 5.000000e-01 : f32
    %225 = vector.broadcast %cst_55 : f32 to vector<8x256xf32>
    %226 = arith.addf %224, %225 : vector<8x256xf32>
    %227 = vector.extract_strided_slice %226 {offsets = [0, 0], sizes = [8, 128], strides = [1, 1]} : vector<8x256xf32> to vector<8x128xf32>
    %228 = vector.extract_strided_slice %226 {offsets = [0, 128], sizes = [8, 128], strides = [1, 1]} : vector<8x256xf32> to vector<8x128xf32>
    %229 = vector.extract_strided_slice %218 {offsets = [0, 256], sizes = [8, 128], strides = [1, 1]} : vector<8x512xf32> to vector<8x128xf32>
    %230 = vector.extract_strided_slice %218 {offsets = [0, 384], sizes = [8, 128], strides = [1, 1]} : vector<8x512xf32> to vector<8x128xf32>
    %231 = arith.mulf %227, %230 : vector<8x128xf32>
    %232 = arith.addf %229, %231 : vector<8x128xf32>
    %233 = math.tanh %232 : vector<8x128xf32>
    %234 = arith.subf %192, %233 : vector<8x128xf32>
    %235 = arith.mulf %228, %234 : vector<8x128xf32>
    %236 = arith.addf %233, %235 : vector<8x128xf32>
    %cst_56 = arith.constant dense<0.000000e+00> : vector<8x384xf32>
    %237 = tpu.matmul %215, %7, %cst_56 {dimension_numbers = #tpu.dot_dimension_numbers<[1], [0], [0], [1], [0, 0, 1, 1], [], []>} : vector<8x128xf32>, vector<128x384xf32>, vector<8x384xf32> -> vector<8x384xf32>
    %238 = vector.extract_strided_slice %6 {offsets = [40, 0], sizes = [8, 384], strides = [1, 1]} : vector<64x384xf32> to vector<8x384xf32>
    %239 = vector.extract_strided_slice %238 {offsets = [0, 0], sizes = [8, 256], strides = [1, 1]} : vector<8x384xf32> to vector<8x256xf32>
    %240 = vector.extract_strided_slice %237 {offsets = [0, 0], sizes = [8, 256], strides = [1, 1]} : vector<8x384xf32> to vector<8x256xf32>
    %241 = arith.addf %239, %240 : vector<8x256xf32>
    %cst_57 = arith.constant 5.000000e-01 : f32
    %242 = vector.broadcast %cst_57 : f32 to vector<8x256xf32>
    %243 = arith.mulf %242, %241 : vector<8x256xf32>
    %244 = math.tanh %243 : vector<8x256xf32>
    %cst_58 = arith.constant 5.000000e-01 : f32
    %245 = vector.broadcast %cst_58 : f32 to vector<8x256xf32>
    %246 = arith.mulf %245, %244 : vector<8x256xf32>
    %cst_59 = arith.constant 5.000000e-01 : f32
    %247 = vector.broadcast %cst_59 : f32 to vector<8x256xf32>
    %248 = arith.addf %246, %247 : vector<8x256xf32>
    %249 = vector.extract_strided_slice %248 {offsets = [0, 0], sizes = [8, 128], strides = [1, 1]} : vector<8x256xf32> to vector<8x128xf32>
    %250 = vector.extract_strided_slice %248 {offsets = [0, 128], sizes = [8, 128], strides = [1, 1]} : vector<8x256xf32> to vector<8x128xf32>
    %251 = vector.extract_strided_slice %238 {offsets = [0, 256], sizes = [8, 128], strides = [1, 1]} : vector<8x384xf32> to vector<8x128xf32>
    %252 = vector.extract_strided_slice %237 {offsets = [0, 256], sizes = [8, 128], strides = [1, 1]} : vector<8x384xf32> to vector<8x128xf32>
    %253 = arith.addf %252, %14 : vector<8x128xf32>
    %254 = arith.mulf %249, %253 : vector<8x128xf32>
    %255 = arith.addf %251, %254 : vector<8x128xf32>
    %256 = math.tanh %255 : vector<8x128xf32>
    %257 = arith.subf %215, %256 : vector<8x128xf32>
    %258 = arith.mulf %250, %257 : vector<8x128xf32>
    %259 = arith.addf %256, %258 : vector<8x128xf32>
    %260 = tpu.concatenate %259, %236 in 1 : vector<8x128xf32>, vector<8x128xf32> -> vector<8x256xf32>
    %cst_60 = arith.constant dense<0.000000e+00> : vector<8x512xf32>
    %261 = tpu.matmul %260, %8, %cst_60 {dimension_numbers = #tpu.dot_dimension_numbers<[1], [0], [0], [1], [0, 0, 1, 1], [], []>} : vector<8x256xf32>, vector<256x512xf32>, vector<8x512xf32> -> vector<8x512xf32>
    %262 = arith.addf %261, %11 : vector<8x512xf32>
    %263 = vector.extract_strided_slice %262 {offsets = [0, 0], sizes = [8, 256], strides = [1, 1]} : vector<8x512xf32> to vector<8x256xf32>
    %cst_61 = arith.constant 5.000000e-01 : f32
    %264 = vector.broadcast %cst_61 : f32 to vector<8x256xf32>
    %265 = arith.mulf %264, %263 : vector<8x256xf32>
    %266 = math.tanh %265 : vector<8x256xf32>
    %cst_62 = arith.constant 5.000000e-01 : f32
    %267 = vector.broadcast %cst_62 : f32 to vector<8x256xf32>
    %268 = arith.mulf %267, %266 : vector<8x256xf32>
    %cst_63 = arith.constant 5.000000e-01 : f32
    %269 = vector.broadcast %cst_63 : f32 to vector<8x256xf32>
    %270 = arith.addf %268, %269 : vector<8x256xf32>
    %271 = vector.extract_strided_slice %270 {offsets = [0, 0], sizes = [8, 128], strides = [1, 1]} : vector<8x256xf32> to vector<8x128xf32>
    %272 = vector.extract_strided_slice %270 {offsets = [0, 128], sizes = [8, 128], strides = [1, 1]} : vector<8x256xf32> to vector<8x128xf32>
    %273 = vector.extract_strided_slice %262 {offsets = [0, 256], sizes = [8, 128], strides = [1, 1]} : vector<8x512xf32> to vector<8x128xf32>
    %274 = vector.extract_strided_slice %262 {offsets = [0, 384], sizes = [8, 128], strides = [1, 1]} : vector<8x512xf32> to vector<8x128xf32>
    %275 = arith.mulf %271, %274 : vector<8x128xf32>
    %276 = arith.addf %273, %275 : vector<8x128xf32>
    %277 = math.tanh %276 : vector<8x128xf32>
    %278 = arith.subf %236, %277 : vector<8x128xf32>
    %279 = arith.mulf %272, %278 : vector<8x128xf32>
    %280 = arith.addf %277, %279 : vector<8x128xf32>
    %cst_64 = arith.constant dense<0.000000e+00> : vector<8x384xf32>
    %281 = tpu.matmul %259, %7, %cst_64 {dimension_numbers = #tpu.dot_dimension_numbers<[1], [0], [0], [1], [0, 0, 1, 1], [], []>} : vector<8x128xf32>, vector<128x384xf32>, vector<8x384xf32> -> vector<8x384xf32>
    %282 = vector.extract_strided_slice %6 {offsets = [48, 0], sizes = [8, 384], strides = [1, 1]} : vector<64x384xf32> to vector<8x384xf32>
    %283 = vector.extract_strided_slice %282 {offsets = [0, 0], sizes = [8, 256], strides = [1, 1]} : vector<8x384xf32> to vector<8x256xf32>
    %284 = vector.extract_strided_slice %281 {offsets = [0, 0], sizes = [8, 256], strides = [1, 1]} : vector<8x384xf32> to vector<8x256xf32>
    %285 = arith.addf %283, %284 : vector<8x256xf32>
    %cst_65 = arith.constant 5.000000e-01 : f32
    %286 = vector.broadcast %cst_65 : f32 to vector<8x256xf32>
    %287 = arith.mulf %286, %285 : vector<8x256xf32>
    %288 = math.tanh %287 : vector<8x256xf32>
    %cst_66 = arith.constant 5.000000e-01 : f32
    %289 = vector.broadcast %cst_66 : f32 to vector<8x256xf32>
    %290 = arith.mulf %289, %288 : vector<8x256xf32>
    %cst_67 = arith.constant 5.000000e-01 : f32
    %291 = vector.broadcast %cst_67 : f32 to vector<8x256xf32>
    %292 = arith.addf %290, %291 : vector<8x256xf32>
    %293 = vector.extract_strided_slice %292 {offsets = [0, 0], sizes = [8, 128], strides = [1, 1]} : vector<8x256xf32> to vector<8x128xf32>
    %294 = vector.extract_strided_slice %292 {offsets = [0, 128], sizes = [8, 128], strides = [1, 1]} : vector<8x256xf32> to vector<8x128xf32>
    %295 = vector.extract_strided_slice %282 {offsets = [0, 256], sizes = [8, 128], strides = [1, 1]} : vector<8x384xf32> to vector<8x128xf32>
    %296 = vector.extract_strided_slice %281 {offsets = [0, 256], sizes = [8, 128], strides = [1, 1]} : vector<8x384xf32> to vector<8x128xf32>
    %297 = arith.addf %296, %14 : vector<8x128xf32>
    %298 = arith.mulf %293, %297 : vector<8x128xf32>
    %299 = arith.addf %295, %298 : vector<8x128xf32>
    %300 = math.tanh %299 : vector<8x128xf32>
    %301 = arith.subf %259, %300 : vector<8x128xf32>
    %302 = arith.mulf %294, %301 : vector<8x128xf32>
    %303 = arith.addf %300, %302 : vector<8x128xf32>
    %304 = tpu.concatenate %303, %280 in 1 : vector<8x128xf32>, vector<8x128xf32> -> vector<8x256xf32>
    %cst_68 = arith.constant dense<0.000000e+00> : vector<8x512xf32>
    %305 = tpu.matmul %304, %8, %cst_68 {dimension_numbers = #tpu.dot_dimension_numbers<[1], [0], [0], [1], [0, 0, 1, 1], [], []>} : vector<8x256xf32>, vector<256x512xf32>, vector<8x512xf32> -> vector<8x512xf32>
    %306 = arith.addf %305, %11 : vector<8x512xf32>
    %307 = vector.extract_strided_slice %306 {offsets = [0, 0], sizes = [8, 256], strides = [1, 1]} : vector<8x512xf32> to vector<8x256xf32>
    %cst_69 = arith.constant 5.000000e-01 : f32
    %308 = vector.broadcast %cst_69 : f32 to vector<8x256xf32>
    %309 = arith.mulf %308, %307 : vector<8x256xf32>
    %310 = math.tanh %309 : vector<8x256xf32>
    %cst_70 = arith.constant 5.000000e-01 : f32
    %311 = vector.broadcast %cst_70 : f32 to vector<8x256xf32>
    %312 = arith.mulf %311, %310 : vector<8x256xf32>
    %cst_71 = arith.constant 5.000000e-01 : f32
    %313 = vector.broadcast %cst_71 : f32 to vector<8x256xf32>
    %314 = arith.addf %312, %313 : vector<8x256xf32>
    %315 = vector.extract_strided_slice %314 {offsets = [0, 0], sizes = [8, 128], strides = [1, 1]} : vector<8x256xf32> to vector<8x128xf32>
    %316 = vector.extract_strided_slice %314 {offsets = [0, 128], sizes = [8, 128], strides = [1, 1]} : vector<8x256xf32> to vector<8x128xf32>
    %317 = vector.extract_strided_slice %306 {offsets = [0, 256], sizes = [8, 128], strides = [1, 1]} : vector<8x512xf32> to vector<8x128xf32>
    %318 = vector.extract_strided_slice %306 {offsets = [0, 384], sizes = [8, 128], strides = [1, 1]} : vector<8x512xf32> to vector<8x128xf32>
    %319 = arith.mulf %315, %318 : vector<8x128xf32>
    %320 = arith.addf %317, %319 : vector<8x128xf32>
    %321 = math.tanh %320 : vector<8x128xf32>
    %322 = arith.subf %280, %321 : vector<8x128xf32>
    %323 = arith.mulf %316, %322 : vector<8x128xf32>
    %324 = arith.addf %321, %323 : vector<8x128xf32>
    %cst_72 = arith.constant dense<0.000000e+00> : vector<8x384xf32>
    %325 = tpu.matmul %303, %7, %cst_72 {dimension_numbers = #tpu.dot_dimension_numbers<[1], [0], [0], [1], [0, 0, 1, 1], [], []>} : vector<8x128xf32>, vector<128x384xf32>, vector<8x384xf32> -> vector<8x384xf32>
    %326 = vector.extract_strided_slice %6 {offsets = [56, 0], sizes = [8, 384], strides = [1, 1]} : vector<64x384xf32> to vector<8x384xf32>
    %327 = vector.extract_strided_slice %326 {offsets = [0, 0], sizes = [8, 256], strides = [1, 1]} : vector<8x384xf32> to vector<8x256xf32>
    %328 = vector.extract_strided_slice %325 {offsets = [0, 0], sizes = [8, 256], strides = [1, 1]} : vector<8x384xf32> to vector<8x256xf32>
    %329 = arith.addf %327, %328 : vector<8x256xf32>
    %cst_73 = arith.constant 5.000000e-01 : f32
    %330 = vector.broadcast %cst_73 : f32 to vector<8x256xf32>
    %331 = arith.mulf %330, %329 : vector<8x256xf32>
    %332 = math.tanh %331 : vector<8x256xf32>
    %cst_74 = arith.constant 5.000000e-01 : f32
    %333 = vector.broadcast %cst_74 : f32 to vector<8x256xf32>
    %334 = arith.mulf %333, %332 : vector<8x256xf32>
    %cst_75 = arith.constant 5.000000e-01 : f32
    %335 = vector.broadcast %cst_75 : f32 to vector<8x256xf32>
    %336 = arith.addf %334, %335 : vector<8x256xf32>
    %337 = vector.extract_strided_slice %336 {offsets = [0, 0], sizes = [8, 128], strides = [1, 1]} : vector<8x256xf32> to vector<8x128xf32>
    %338 = vector.extract_strided_slice %336 {offsets = [0, 128], sizes = [8, 128], strides = [1, 1]} : vector<8x256xf32> to vector<8x128xf32>
    %339 = vector.extract_strided_slice %326 {offsets = [0, 256], sizes = [8, 128], strides = [1, 1]} : vector<8x384xf32> to vector<8x128xf32>
    %340 = vector.extract_strided_slice %325 {offsets = [0, 256], sizes = [8, 128], strides = [1, 1]} : vector<8x384xf32> to vector<8x128xf32>
    %341 = arith.addf %340, %14 : vector<8x128xf32>
    %342 = arith.mulf %337, %341 : vector<8x128xf32>
    %343 = arith.addf %339, %342 : vector<8x128xf32>
    %344 = math.tanh %343 : vector<8x128xf32>
    %345 = arith.subf %303, %344 : vector<8x128xf32>
    %346 = arith.mulf %338, %345 : vector<8x128xf32>
    %347 = arith.addf %344, %346 : vector<8x128xf32>
    %348 = tpu.concatenate %347, %324 in 1 : vector<8x128xf32>, vector<8x128xf32> -> vector<8x256xf32>
    %cst_76 = arith.constant dense<0.000000e+00> : vector<8x512xf32>
    %349 = tpu.matmul %348, %8, %cst_76 {dimension_numbers = #tpu.dot_dimension_numbers<[1], [0], [0], [1], [0, 0, 1, 1], [], []>} : vector<8x256xf32>, vector<256x512xf32>, vector<8x512xf32> -> vector<8x512xf32>
    %350 = arith.addf %349, %11 : vector<8x512xf32>
    %351 = vector.extract_strided_slice %350 {offsets = [0, 0], sizes = [8, 256], strides = [1, 1]} : vector<8x512xf32> to vector<8x256xf32>
    %cst_77 = arith.constant 5.000000e-01 : f32
    %352 = vector.broadcast %cst_77 : f32 to vector<8x256xf32>
    %353 = arith.mulf %352, %351 : vector<8x256xf32>
    %354 = math.tanh %353 : vector<8x256xf32>
    %cst_78 = arith.constant 5.000000e-01 : f32
    %355 = vector.broadcast %cst_78 : f32 to vector<8x256xf32>
    %356 = arith.mulf %355, %354 : vector<8x256xf32>
    %cst_79 = arith.constant 5.000000e-01 : f32
    %357 = vector.broadcast %cst_79 : f32 to vector<8x256xf32>
    %358 = arith.addf %356, %357 : vector<8x256xf32>
    %359 = vector.extract_strided_slice %358 {offsets = [0, 0], sizes = [8, 128], strides = [1, 1]} : vector<8x256xf32> to vector<8x128xf32>
    %360 = vector.extract_strided_slice %358 {offsets = [0, 128], sizes = [8, 128], strides = [1, 1]} : vector<8x256xf32> to vector<8x128xf32>
    %361 = vector.extract_strided_slice %350 {offsets = [0, 256], sizes = [8, 128], strides = [1, 1]} : vector<8x512xf32> to vector<8x128xf32>
    %362 = vector.extract_strided_slice %350 {offsets = [0, 384], sizes = [8, 128], strides = [1, 1]} : vector<8x512xf32> to vector<8x128xf32>
    %363 = arith.mulf %359, %362 : vector<8x128xf32>
    %364 = arith.addf %361, %363 : vector<8x128xf32>
    %365 = math.tanh %364 : vector<8x128xf32>
    %366 = arith.subf %324, %365 : vector<8x128xf32>
    %367 = arith.mulf %360, %366 : vector<8x128xf32>
    %368 = arith.addf %365, %367 : vector<8x128xf32>
    %cst_80 = arith.constant 0.000000e+00 : f32
    %369 = vector.broadcast %cst_80 : f32 to vector<8x128xf32>
    %370 = arith.maximumf %368, %369 : vector<8x128xf32>
    %c0_81 = arith.constant 0 : index
    %c0_82 = arith.constant 0 : index
    %371 = vector.load %arg8[%c0_81, %c0_82] : memref<128x128xf32, #tpu.memory_space<vmem>>, vector<128x128xf32>
    %cst_83 = arith.constant dense<0.000000e+00> : vector<8x128xf32>
    %372 = tpu.matmul %370, %371, %cst_83 {dimension_numbers = #tpu.dot_dimension_numbers<[1], [0], [0], [1], [0, 0, 1, 1], [], []>} : vector<8x128xf32>, vector<128x128xf32>, vector<8x128xf32> -> vector<8x128xf32>
    %c0_84 = arith.constant 0 : index
    %c0_85 = arith.constant 0 : index
    %373 = vector.load %arg9[%c0_84, %c0_85] : memref<1x128xf32, #tpu.memory_space<vmem>>, vector<1x128xf32>
    %374 = vector.broadcast %373 : vector<1x128xf32> to vector<8x128xf32>
    %375 = arith.addf %372, %374 : vector<8x128xf32>
    %c0_86 = arith.constant 0 : index
    %c0_87 = arith.constant 0 : index
    %376 = vector.load %arg10[%c0_86, %c0_87] : memref<8x128xf32, #tpu.memory_space<vmem>>, vector<8x128xf32>
    tpu.vector_store %arg10[%c0_86, %c0_87], %375 {strides = array<i32>} : memref<8x128xf32, #tpu.memory_space<vmem>>, vector<8x128xf32>,
    return
  }
  func.func @transform_0(%arg0: i32) -> (i32, i32, i32) {
    %c0_i32 = arith.constant 0 : i32
    %c0_i32_0 = arith.constant 0 : i32
    %c0_i32_1 = arith.constant 0 : i32
    return %arg0, %c0_i32, %c0_i32_0 : i32, i32, i32
  }
  func.func @transform_1(%arg0: i32) -> (i32, i32) {
    %c0_i32 = arith.constant 0 : i32
    %c0_i32_0 = arith.constant 0 : i32
    %c0_i32_1 = arith.constant 0 : i32
    return %c0_i32, %c0_i32_0 : i32, i32
  }
  func.func @transform_2(%arg0: i32) -> (i32, i32) {
    %c0_i32 = arith.constant 0 : i32
    %c0_i32_0 = arith.constant 0 : i32
    %c0_i32_1 = arith.constant 0 : i32
    return %c0_i32, %c0_i32_0 : i32, i32
  }
  func.func @transform_3(%arg0: i32) -> (i32, i32) {
    %c0_i32 = arith.constant 0 : i32
    %c0_i32_0 = arith.constant 0 : i32
    %c0_i32_1 = arith.constant 0 : i32
    return %c0_i32, %c0_i32_0 : i32, i32
  }
  func.func @transform_4(%arg0: i32) -> (i32, i32) {
    %c0_i32 = arith.constant 0 : i32
    %c0_i32_0 = arith.constant 0 : i32
    %c0_i32_1 = arith.constant 0 : i32
    return %c0_i32, %c0_i32_0 : i32, i32
  }
  func.func @transform_5(%arg0: i32) -> (i32, i32) {
    %c0_i32 = arith.constant 0 : i32
    %c0_i32_0 = arith.constant 0 : i32
    %c0_i32_1 = arith.constant 0 : i32
    return %c0_i32, %c0_i32_0 : i32, i32
  }
  func.func @transform_6(%arg0: i32) -> (i32, i32) {
    %c0_i32 = arith.constant 0 : i32
    %c0_i32_0 = arith.constant 0 : i32
    %c0_i32_1 = arith.constant 0 : i32
    return %c0_i32, %c0_i32_0 : i32, i32
  }
  func.func @transform_7(%arg0: i32) -> (i32, i32) {
    %c0_i32 = arith.constant 0 : i32
    %c0_i32_0 = arith.constant 0 : i32
    %c0_i32_1 = arith.constant 0 : i32
    return %c0_i32, %c0_i32_0 : i32, i32
  }
  func.func @transform_8(%arg0: i32) -> (i32, i32) {
    %c0_i32 = arith.constant 0 : i32
    %c0_i32_0 = arith.constant 0 : i32
    %c0_i32_1 = arith.constant 0 : i32
    return %c0_i32, %c0_i32_0 : i32, i32
  }
  func.func @transform_9(%arg0: i32) -> (i32, i32) {
    %c0_i32 = arith.constant 0 : i32
    %c0_i32_0 = arith.constant 0 : i32
    return %arg0, %c0_i32 : i32, i32
  }
}

</mosaic_0001>

<bundles_post_ra>
// kernel: tpu_custom_call.1
= control target key start
LH: loop header
LB: loop body
LE: loop exit
PB: predicated region body
PF: predicated region fallthrough
CT: control target
= control target key end

     0   :  { %14 = vsyncpa [#allocation3], 0  ;;  %s6797_s0 = inlined_call_operand.vmem [shape: f32[1,64,16], index: 0, kind: input, shape index: {}]   ;;  %s6798_s1 = inlined_call_operand.vmem [shape: f32[16,384], index: 1, kind: input, shape index: {}]   ;;  %s6799_s2 = inlined_call_operand.hbm [shape: f32[128,384], index: 2, kind: input, shape index: {}]   ;;  %s6800_s3 = inlined_call_operand.vmem [shape: f32[1,384], index: 3, kind: input, shape index: {}]   ;;  %s6801_s4 = inlined_call_operand.vmem [shape: f32[1,128], index: 4, kind: input, shape index: {}]   ;;  %s6802_s5 = inlined_call_operand.hbm [shape: f32[256,512], index: 5, kind: input, shape index: {}]   ;;  %s6803_s6 = inlined_call_operand.vmem [shape: f32[1,512], index: 6, kind: input, shape index: {}]   ;;  %s6804_s7 = inlined_call_operand.hbm [shape: f32[128,128], index: 7, kind: input, shape index: {}]   ;;  %s6805_s8 = inlined_call_operand.vmem [shape: f32[1,128], index: 8, kind: input, shape index: {}]   ;;  %s6806_s9 = inlined_call_operand.hbm [shape: f32[8,128], index: 9, kind: output, shape index: {}]  }
   0x1   :  { %15 = vsyncpa [#allocation6], 0 }
   0x2   :  { %16 = vsyncpa [#allocation4], 0  ;;  %s5428_s30 = smov [#allocation5]   ;;  %s5334_s13 = scalar_lea.hbm %s6802_s5, 16384 }
   0x3   :  { %s42_s10 = sshll.u32 %s5428_s30, 4  ;;  %p5335_p0 = scmp.ne.s32.totalorder %s6802_s5, %s5334_s13  ;;  %s43_s10 = int_to_ptr.vmem [resolvable:$true] %s42_s10 }
   0x4   :  { %p5338_p1 = scmp.lt.u32.totalorder %s5334_s13, %s6802_s5 }
   0x6   :  { %p5340_p2 = pnand %p5338_p1, %p5335_p0 }
   0x8   :  { %5343 = shalt.err (!%p5340_p2)
}
   0x9   :  { %s5344_s18 = scalar_lea.vmem %s43_s10, 16384  ;;  %p5349_p4 = scmp.lt.s32.totalorder %s43_s10, %s43_s10 }
   0xa   :  { %p5345_p3 = scmp.ne.s32.totalorder %s43_s10, %s5344_s18  ;;  %p5350_p5 = scmp.lt.s32.totalorder %s5344_s18, %s5344_s18 }
   0xc   :  { %p5351_p6 = por %p5350_p5, %p5349_p4 }
   0xe   :  { %p5352_p7 = pnand %p5351_p6, %p5345_p3 }
  0x10   :  { %5355 = shalt.err (!%p5352_p7)
}
  0x11   :  { %s5429_s19 = smov 512   ;;  %s5430_s20 = smov 32  }
  0x12   :  { %48 = dma.hbm_to_vmem [thread:$0]  %s6802_s5, 16384, %s43_s10, [#allocation6], %s5429_s19, %s5429_s19, %s5430_s20  }
  0x13   :  { %s5431_s23 = smov [#allocation2]   ;;  %s5356_s27 = scalar_lea.hbm %s6799_s2, 6144 }
  0x14   :  { %s26_s24 = sshll.u32 %s5431_s23, 4  ;;  %p5357_p8 = scmp.ne.s32.totalorder %s6799_s2, %s5356_s27  ;;  %s27_s24 = int_to_ptr.vmem [resolvable:$true] %s26_s24 }
  0x15   :  { %p5360_p9 = scmp.lt.u32.totalorder %s5356_s27, %s6799_s2 }
  0x17   :  { %p5362_p10 = pnand %p5360_p9, %p5357_p8 }
  0x19   :  { %5365 = shalt.err (!%p5362_p10)
}
  0x1a   :  { %s5366_s12 = scalar_lea.vmem %s27_s24, 6144  ;;  %p5371_p12 = scmp.lt.s32.totalorder %s27_s24, %s27_s24 }
  0x1b   :  { %p5367_p11 = scmp.ne.s32.totalorder %s27_s24, %s5366_s12  ;;  %p5372_p13 = scmp.lt.s32.totalorder %s5366_s12, %s5366_s12 }
  0x1d   :  { %p5373_p0 = por %p5372_p13, %p5371_p12 }
  0x1f   :  { %p5374_p1 = pnand %p5373_p0, %p5367_p11 }
  0x21   :  { %5377 = shalt.err (!%p5374_p1)
}
  0x22   :  { %s5432_s5 = smov 384   ;;  %s5433_s10 = smov 24  }
  0x23   :  { %32 = dma.hbm_to_vmem [thread:$0]  %s6799_s2, 6144, %s27_s24, [#allocation3], %s5432_s5, %s5432_s5, %s5433_s10  }
  0x24   :  { %s5434_s15 = smov [#allocation7]   ;;  %s5378_s19 = scalar_lea.hbm %s6804_s7, 2048 }
  0x25   :  { %s56_s16 = sshll.u32 %s5434_s15, 4  ;;  %p5379_p2 = scmp.ne.s32.totalorder %s6804_s7, %s5378_s19  ;;  %s57_s16 = int_to_ptr.vmem [resolvable:$true] %s56_s16 }
  0x26   :  { %p5382_p3 = scmp.lt.u32.totalorder %s5378_s19, %s6804_s7 }
  0x28   :  { %p5384_p4 = pnand %p5382_p3, %p5379_p2 }
  0x2a   :  { %5387 = shalt.err (!%p5384_p4)
}
  0x2b   :  { %s5388_s25 = scalar_lea.vmem %s57_s16, 2048  ;;  %p5393_p6 = scmp.lt.s32.totalorder %s57_s16, %s57_s16 }
  0x2c   :  { %p5389_p5 = scmp.ne.s32.totalorder %s57_s16, %s5388_s25  ;;  %p5394_p7 = scmp.lt.s32.totalorder %s5388_s25, %s5388_s25 }
  0x2e   :  { %p5395_p8 = por %p5394_p7, %p5393_p6 }
  0x30   :  { %p5396_p9 = pnand %p5395_p8, %p5389_p5 }
  0x32   :  { %5399 = shalt.err (!%p5396_p9)
}
  0x33   :  { %s5435_s2 = smov 128   ;;  %s5436_s24 = smov 8  }
  0x34   :  { %62 = dma.hbm_to_vmem [thread:$0]  %s6804_s7, 2048, %s57_s16, [#allocation6], %s5435_s2, %s5435_s2, %s5436_s24  }
  0x35   :  { %5422 = dma.done.wait [#allocation3], 6144  }
  0x36   :  { %5423 = vsyncadd [#allocation3], 4294961152 }
  0x37   :  { %5424 = dma.done.wait [#allocation6], 18432  }
  0x38   :  { %5425 = vsyncadd [#allocation6], 4294948864  ;;  %v6807_v0 = vmov 0.0   ;;  %v83_v1 = vld [vmem:[%s6798_s1 + $0x8] sm:$0xff]  ;;  %v86_v2 = vld [vmem:[%s6798_s1 + $0x20] sm:$0xff]  ;;  %vm105_vm0 = vcmask 130048  }
  0x39   :  { %194 = vmatprep.mubr.f32.mxu0 %v6807_v0  ;;  %v82_v3 = vld [vmem:[%s6798_s1] sm:$0xff]  ;;  %v3688_v4 = vpack.c.bf16 %v86_v2, %v83_v1  ;;  %v85_v5 = vld [vmem:[%s6798_s1 + $0x18] sm:$0xff]  ;;  %v352_v9 = vld [vmem:[#allocation2 + $0x20] sm:$0xff]  ;;  %v6809_v40 = vmov 0.0|0.0   ;;  %vm5439_vm1 = vmmov 0   ;;  %s5440_s14 = smov [#allocation8]  }
  0x3a   :  { %v74_v6 = vld [vmem:[%s6797_s0] sm:$0xff]  ;;  %v349_v7 = vld [vmem:[#allocation2 + $0x8] sm:$0xff]  ;;  %v3690_v8 = vpack.c.bf16 %v85_v5, %v82_v3  ;;  %v348_v10 = vld [vmem:[#allocation2] sm:$0xff]  ;;  %s3166_s15 = sshll.u32 %s5440_s14, 4  ;;  %s3167_s15 = int_to_ptr.vmem [resolvable:$true] %s3166_s15 }
  0x3b   :  { %v351_v11 = vld [vmem:[#allocation2 + $0x18] sm:$0xff]  ;;  %3361 = vmatprep.mubr.msk.f32.mxu1 %vm105_vm0, %v74_v6  ;;  %3689 = vmatprep.subr.bf16.mxu0 %v3688_v4  ;;  %v5544_v12 = vpack.c.bf16 %v352_v9, %v349_v7  ;;  %v358_v14 = vld [vmem:[#allocation2 + $0x50] sm:$0xff]  ;;  %v357_v18 = vld [vmem:[#allocation2 + $0x48] sm:$0xff]  ;;  %s5400_s16 = scalar_lea.vmem %s3167_s15, 128  ;;  %p5405_p11 = scmp.lt.s32.totalorder %s3167_s15, %s3167_s15 }
  0x3c   :  { %v355_v13 = vld [vmem:[#allocation2 + $0x38] sm:$0xff]  ;;  %3691 = vmatpush1.bf16.msra.mxu0 %v3690_v8  ;;  %v5546_v15 = vpack.c.bf16 %v351_v11, %v348_v10  ;;  %v354_v17 = vld [vmem:[#allocation2 + $0x30] sm:$0xff]  ;;  %v361_v19 = vld [vmem:[#allocation2 + $0x68] sm:$0xff]  ;;  %p5401_p10 = scmp.ne.s32.totalorder %s3167_s15, %s5400_s16  ;;  %p5406_p12 = scmp.lt.s32.totalorder %s5400_s16, %s5400_s16 }
  0x3d   :  { %6930 = vst [vmem:[#allocation12_spill] sm:$0xff] %v5544_v12  ;;  %3697 = vmatprep.subr.bf16.mxu0 %v5544_v12  ;;  %v5549_v16 = vpack.c.bf16 %v358_v14, %v355_v13  ;;  %v364_v20 = vld [vmem:[#allocation2 + $0x80] sm:$0xff]  ;;  %v87_v22 = vld [vmem:[%s6798_s1 + $0x28] sm:$0xff]  ;;  %v5563_v24 = vpack.c.bf16 %v357_v18, %v354_v17  ;;  %v370_v30 = vld [vmem:[#allocation2 + $0xb0] sm:$0xff] }
  0x3e   :  { %v84_v21 = vld [vmem:[%s6798_s1 + $0x10] sm:$0xff]  ;;  %v75_v23 = vld [vmem:[%s6797_s0 + $0x8] sm:$0xff]  ;;  %v5566_v26 = vpack.c.bf16 %v364_v20, %v361_v19  ;;  %v350_v31 = vld [vmem:[#allocation2 + $0x10] sm:$0xff]  ;;  %p5407_p13 = por %p5406_p12, %p5405_p11 }
  0x3f   :  { %3176 = vmatmul.mubr.msk.f32.vlgmr.msra.gmra.mrb[0].mxu0 %vm105_vm0, %v74_v6  ;;  %v3692_v25 = vpack.c.bf16 %v87_v22, %v84_v21  ;;  %v360_v27 = vld [vmem:[#allocation2 + $0x60] sm:$0xff]  ;;  %v363_v28 = vld [vmem:[#allocation2 + $0x78] sm:$0xff]  ;;  %v353_v32 = vld [vmem:[#allocation2 + $0x28] sm:$0xff] }
  0x40   :  { %3699 = vmatpush1.bf16.msra.mxu0 %v5546_v15  ;;  %200 = vmatprep.mubr.f32.mxu0 %v6807_v0  ;;  %v367_v29 = vld [vmem:[#allocation2 + $0x98] sm:$0xff]  ;;  %v5569_v33 = vpack.c.bf16 %v353_v32, %v350_v31  ;;  %v76_v34 = vld [vmem:[%s6797_s0 + $0x10] sm:$0xff]  ;;  %v5576_v35 = vpack.c.bf16 %v363_v28, %v360_v27  ;;  %v366_v38 = vld [vmem:[#allocation2 + $0x90] sm:$0xff]  ;;  %p5408_p0 = pnand %p5407_p13, %p5401_p10 }
  0x41   :  { %3701 = vmatprep.subr.bf16.mxu0 %v5549_v16  ;;  %3693 = vmatprep.subr.bf16.mxu1 %v3692_v25  ;;  %v356_v36 = vld [vmem:[#allocation2 + $0x40] sm:$0xff]  ;;  %v5579_v37 = vpack.c.bf16 %v370_v30, %v367_v29  ;;  %v369_v39 = vld [vmem:[#allocation2 + $0xa8] sm:$0xff]  ;;  %v359_v41 = vld [vmem:[#allocation2 + $0x58] sm:$0xff] }
  0x42   :  { %3695 = vmatpush3.bf16.msra.mxu1 %v3692_v25  ;;  %v373_v42 = vld [vmem:[#allocation2 + $0xc8] sm:$0xff]  ;;  %v376_v43 = vld [vmem:[#allocation2 + $0xe0] sm:$0xff]  ;;  %v5585_v44 = vpack.c.bf16 %v359_v41, %v356_v36  ;;  %v5592_v46 = vpack.c.bf16 %v369_v39, %v366_v38  ;;  %v362_v47 = vld [vmem:[#allocation2 + $0x70] sm:$0xff] }
  0x43   :  { %3177 = vmatmul.mubr.msk.f32.gmra.mrb[2].mxu0 %vm105_vm0, %v75_v23  ;;  %3728 = vmatprep.subr.bf16.mxu1 %v6809_v40  ;;  %v77_v45 = vld [vmem:[%s6797_s0 + $0x18] sm:$0xff]  ;;  %v5595_v49 = vpack.c.bf16 %v376_v43, %v373_v42  ;;  %v372_v50 = vld [vmem:[#allocation2 + $0xc0] sm:$0xff]  ;;  %v375_v51 = vld [vmem:[#allocation2 + $0xd8] sm:$0xff] }
  0x44   :  { %3703 = vmatpush1.bf16.msra.mxu0 %v5563_v24  ;;  %206 = vmatprep.mubr.f32.mxu0 %v6807_v0  ;;  %v365_v48 = vld [vmem:[#allocation2 + $0x88] sm:$0xff]  ;;  %v379_v52 = vld [vmem:[#allocation2 + $0xf8] sm:$0xff]  ;;  %v382_v53 = vld [vmem:[#allocation2 + $0x110] sm:$0xff]  ;;  %v5608_v56 = vpack.c.bf16 %v375_v51, %v372_v50 }
  0x45   :  { %3705 = vmatprep.subr.bf16.mxu0 %v5566_v26  ;;  %3362 = vmatmul.mubr.msk.f32.vlgmr.msra.gmra.mrb[0].mxu1 %vm105_vm0, %v75_v23  ;;  %v5601_v54 = vpack.c.bf16 %v365_v48, %v362_v47  ;;  %v78_v55 = vld [vmem:[%s6797_s0 + $0x20] sm:$0xff]  ;;  %v368_v57 = vld [vmem:[#allocation2 + $0xa0] sm:$0xff]  ;;  %v371_v58 = vld [vmem:[#allocation2 + $0xb8] sm:$0xff]  ;;  %v5611_v59 = vpack.c.bf16 %v382_v53, %v379_v52 }
  0x46   :  { %3730 = vmatpush3.bf16.msra.mxu1 %v5569_v33  ;;  %3364 = vmatprep.mubr.msk.f32.mxu1 %vm105_vm0, %v76_v34  ;;  %v378_v60 = vld [vmem:[#allocation2 + $0xf0] sm:$0xff]  ;;  %v381_v61 = vld [vmem:[#allocation2 + $0x108] sm:$0xff]  ;;  %v388_v63 = vld [vmem:[#allocation2 + $0x140] sm:$0xff]  ;;  %v5617_v1 = vpack.c.bf16 %v371_v58, %v368_v57 }
  0x47   :  { %3178 = vmatmul.mubr.msk.f32.gmra.mrb[4].mxu0 %vm105_vm0, %v76_v34  ;;  %3731 = vmatprep.subr.bf16.mxu1 %v6809_v40  ;;  %v385_v62 = vld [vmem:[#allocation2 + $0x128] sm:$0xff]  ;;  %v79_v2 = vld [vmem:[%s6797_s0 + $0x28] sm:$0xff]  ;;  %v5624_v3 = vpack.c.bf16 %v381_v61, %v378_v60  ;;  %v374_v4 = vld [vmem:[#allocation2 + $0xd0] sm:$0xff] }
  0x48   :  { %3707 = vmatpush1.bf16.msra.mxu0 %v5576_v35  ;;  %212 = vmatprep.mubr.f32.mxu0 %v6807_v0  ;;  %v377_v5 = vld [vmem:[#allocation2 + $0xe8] sm:$0xff]  ;;  %v5627_v6 = vpack.c.bf16 %v388_v63, %v385_v62  ;;  %v384_v7 = vld [vmem:[#allocation2 + $0x120] sm:$0xff]  ;;  %v387_v8 = vld [vmem:[#allocation2 + $0x138] sm:$0xff] }
  0x49   :  { %3709 = vmatprep.subr.bf16.mxu0 %v5579_v37  ;;  %3365 = vmatmul.mubr.msk.f32.gmra.mrb[2].mxu1 %vm105_vm0, %v77_v45  ;;  %v391_v9 = vld [vmem:[#allocation2 + $0x158] sm:$0xff]  ;;  %v394_v10 = vld [vmem:[#allocation2 + $0x170] sm:$0xff]  ;;  %v5633_v11 = vpack.c.bf16 %v377_v5, %v374_v4  ;;  %v80_v13 = vld [vmem:[%s6797_s0 + $0x30] sm:$0xff]  ;;  %v5640_v14 = vpack.c.bf16 %v387_v8, %v384_v7 }
  0x4a   :  { %3733 = vmatpush3.bf16.msra.mxu1 %v5585_v44  ;;  %3367 = vmatprep.mubr.msk.f32.mxu1 %vm105_vm0, %v78_v55  ;;  %v380_v17 = vld [vmem:[#allocation2 + $0x100] sm:$0xff]  ;;  %v383_v18 = vld [vmem:[#allocation2 + $0x118] sm:$0xff]  ;;  %v5643_v19 = vpack.c.bf16 %v394_v10, %v391_v9  ;;  %v390_v20 = vld [vmem:[#allocation2 + $0x150] sm:$0xff] }
  0x4b   :  { %3179 = vmatmul.mubr.msk.f32.gmra.mrb[6].mxu0 %vm105_vm0, %v77_v45  ;;  %3734 = vmatprep.subr.bf16.mxu1 %v6809_v40  ;;  %v393_v21 = vld [vmem:[#allocation2 + $0x168] sm:$0xff]  ;;  %v5649_v22 = vpack.c.bf16 %v383_v18, %v380_v17  ;;  %v386_v29 = vld [vmem:[#allocation2 + $0x130] sm:$0xff]  ;;  %v396_v31 = vld [vmem:[#allocation5] sm:$0xff] }
  0x4c   :  { %3711 = vmatpush1.bf16.msra.mxu0 %v5592_v46  ;;  %218 = vmatprep.mubr.f32.mxu0 %v6807_v0  ;;  %v397_v23 = vld [vmem:[#allocation5 + $0x8] sm:$0xff]  ;;  %v5656_v28 = vpack.c.bf16 %v393_v21, %v390_v20  ;;  %v400_v32 = vld [vmem:[#allocation5 + $0x20] sm:$0xff]  ;;  %v395_v42 = vld [vmem:[#allocation2 + $0x178] sm:$0xff] }
  0x4d   :  { %3713 = vmatprep.subr.bf16.mxu0 %v5595_v49  ;;  %3368 = vmatmul.mubr.msk.f32.gmra.mrb[4].mxu1 %vm105_vm0, %v79_v2  ;;  %v401_v25 = vld [vmem:[#allocation5 + $0x28] sm:$0xff]  ;;  %v392_v41 = vld [vmem:[#allocation2 + $0x160] sm:$0xff]  ;;  %v399_v43 = vld [vmem:[#allocation5 + $0x18] sm:$0xff]  ;;  %v5669_v45 = vpack.c.bf16 %v400_v32, %v396_v31 }
  0x4e   :  { %3736 = vmatpush3.bf16.msra.mxu1 %v5601_v54  ;;  %v81_v27 = vld [vmem:[%s6797_s0 + $0x38] sm:$0xff]  ;;  %3370 = vmatprep.mubr.msk.f32.mxu1 %vm105_vm0, %v80_v13  ;;  %v5661_v34 = vpack.c.bf16 %v401_v25, %v397_v23  ;;  %v403_v47 = vld [vmem:[#allocation5 + $0x38] sm:$0xff]  ;;  %v404_v50 = vld [vmem:[#allocation5 + $0x40] sm:$0xff] }
  0x4f   :  { %3180 = vmatmul.mubr.msk.f32.gmra.mrb[8].mxu0 %vm105_vm0, %v78_v55  ;;  %3737 = vmatprep.subr.bf16.mxu1 %v6809_v40  ;;  %v389_v30 = vld [vmem:[#allocation2 + $0x148] sm:$0xff]  ;;  %v408_v51 = vld [vmem:[#allocation5 + $0x60] sm:$0xff]  ;;  %v5680_v55 = vpack.c.bf16 %v395_v42, %v392_v41  ;;  %v5683_v57 = vpack.c.bf16 %v403_v47, %v399_v43  ;;  %v398_v58 = vld [vmem:[#allocation5 + $0x10] sm:$0xff] }
  0x50   :  { %3715 = vmatpush1.bf16.msra.mxu0 %v5608_v56  ;;  %224 = vmatprep.mubr.f32.mxu0 %v6807_v0  ;;  %v405_v36 = vld [vmem:[#allocation5 + $0x48] sm:$0xff]  ;;  %v5665_v39 = vpack.c.bf16 %v389_v30, %v386_v29  ;;  %v402_v60 = vld [vmem:[#allocation5 + $0x30] sm:$0xff]  ;;  %v407_v61 = vld [vmem:[#allocation5 + $0x58] sm:$0xff]  ;;  %v5686_v62 = vpack.c.bf16 %v408_v51, %v404_v50 }
  0x51   :  { %3717 = vmatprep.subr.bf16.mxu0 %v5611_v59  ;;  %v409_v38 = vld [vmem:[#allocation5 + $0x68] sm:$0xff]  ;;  %3371 = vmatmul.mubr.msk.f32.gmra.mrb[6].mxu1 %vm105_vm0, %v81_v27  ;;  %v411_v63 = vld [vmem:[#allocation5 + $0x78] sm:$0xff]  ;;  %v412_v4 = vld [vmem:[#allocation5 + $0x80] sm:$0xff]  ;;  %v5693_v7 = vpack.c.bf16 %v402_v60, %v398_v58 }
  0x52   :  { %3739 = vmatpush3.bf16.msra.mxu1 %v5617_v1  ;;  %v5673_v48 = vpack.c.bf16 %v409_v38, %v405_v36  ;;  %3405 = vmatprep.mubr.msk.f32.mxu1 %vm5439_vm1, %v6807_v0  ;;  %v413_v52 = vld [vmem:[#allocation5 + $0x88] sm:$0xff]  ;;  %v416_v5 = vld [vmem:[#allocation5 + $0xa0] sm:$0xff]  ;;  %v5696_v8 = vpack.c.bf16 %v411_v63, %v407_v61  ;;  %v406_v9 = vld [vmem:[#allocation5 + $0x50] sm:$0xff] }
  0x53   :  { %3181 = vmatmul.mubr.msk.f32.gmra.mrb[10].mxu0 %vm105_vm0, %v79_v2  ;;  %3740 = vmatprep.subr.bf16.mxu1 %v6809_v40  ;;  %v417_v53 = vld [vmem:[#allocation5 + $0xa8] sm:$0xff]  ;;  %v410_v10 = vld [vmem:[#allocation5 + $0x70] sm:$0xff]  ;;  %v415_v17 = vld [vmem:[#allocation5 + $0x98] sm:$0xff] }
  0x54   :  { %3719 = vmatpush1.bf16.msra.mxu0 %v5624_v3  ;;  %230 = vmatprep.mubr.f32.mxu0 %v6807_v0  ;;  %v5689_v2 = vpack.c.bf16 %v417_v53, %v413_v52  ;;  %v419_v18 = vld [vmem:[#allocation5 + $0xb8] sm:$0xff]  ;;  %v5704_v20 = vpack.c.bf16 %v410_v10, %v406_v9  ;;  %v414_v23 = vld [vmem:[#allocation5 + $0x90] sm:$0xff]  ;;  %v421_v29 = vld [vmem:[#allocation5 + $0xc8] sm:$0xff] }
  0x55   :  { %3721 = vmatprep.subr.bf16.mxu0 %v5627_v6  ;;  %v5708_v21 = vpack.c.bf16 %v419_v18, %v415_v17  ;;  %v418_v25 = vld [vmem:[#allocation5 + $0xb0] sm:$0xff]  ;;  %v425_v30 = vld [vmem:[#allocation5 + $0xe8] sm:$0xff]  ;;  %v423_v31 = vld [vmem:[#allocation5 + $0xd8] sm:$0xff] }
  0x56   :  { %3742 = vmatpush3.bf16.msra.mxu1 %v5633_v11  ;;  %v5716_v32 = vpack.c.bf16 %v425_v30, %v421_v29  ;;  %v427_v36 = vld [vmem:[#allocation5 + $0xf8] sm:$0xff]  ;;  %v420_v38 = vld [vmem:[#allocation5 + $0xc0] sm:$0xff]  ;;  %v422_v47 = vld [vmem:[#allocation5 + $0xd0] sm:$0xff] }
  0x57   :  { %3182 = vmatmul.mubr.msk.f32.gmra.mrb[12].mxu0 %vm105_vm0, %v80_v13  ;;  %3743 = vmatprep.subr.bf16.mxu1 %v6809_v40  ;;  %v5699_v13 = vpack.c.bf16 %v416_v5, %v412_v4  ;;  %v424_v41 = vld [vmem:[#allocation5 + $0xe0] sm:$0xff]  ;;  %v5718_v42 = vpack.c.bf16 %v427_v36, %v423_v31  ;;  %v426_v50 = vld [vmem:[#allocation5 + $0xf0] sm:$0xff]  ;;  %v429_v51 = vld [vmem:[#allocation5 + $0x108] sm:$0xff] }
  0x58   :  { %3723 = vmatpush1.bf16.msra.mxu0 %v5640_v14  ;;  %236 = vmatprep.mubr.f32.mxu0 %v6807_v0  ;;  %v5720_v43 = vpack.c.bf16 %v424_v41, %v420_v38  ;;  %v5723_v52 = vpack.c.bf16 %v426_v50, %v422_v47  ;;  %v433_v53 = vld [vmem:[#allocation5 + $0x128] sm:$0xff]  ;;  %v431_v58 = vld [vmem:[#allocation5 + $0x118] sm:$0xff]  ;;  %v428_v4 = vld [vmem:[#allocation5 + $0x100] sm:$0xff] }
  0x59   :  { %3725 = vmatprep.subr.bf16.mxu0 %v5643_v19  ;;  %6931 = vst [vmem:[#allocation13_spill] sm:$0xff] %v5718_v42  ;;  %v435_v60 = vld [vmem:[#allocation5 + $0x138] sm:$0xff]  ;;  %v5727_v61 = vpack.c.bf16 %v433_v53, %v429_v51  ;;  %v432_v5 = vld [vmem:[#allocation5 + $0x120] sm:$0xff]  ;;  %v430_v9 = vld [vmem:[#allocation5 + $0x110] sm:$0xff] }
  0x5a   :  { %3745 = vmatpush3.bf16.msra.mxu1 %v5649_v22  ;;  %6932 = vst [vmem:[#allocation14_spill] sm:$0xff] %v5720_v43  ;;  %6933 = vst [vmem:[#allocation15_spill] sm:$0xff] %v5723_v52  ;;  %v5729_v63 = vpack.c.bf16 %v435_v60, %v431_v58  ;;  %v5732_v10 = vpack.c.bf16 %v432_v5, %v428_v4  ;;  %v434_v17 = vld [vmem:[#allocation5 + $0x130] sm:$0xff]  ;;  %v437_v18 = vld [vmem:[#allocation5 + $0x148] sm:$0xff] }
  0x5b   :  { %3183 = vmatmul.mubr.msk.f32.gmra.mrb[14].mxu0 %vm105_vm0, %v81_v27  ;;  %3746 = vmatprep.subr.bf16.mxu1 %v6809_v40  ;;  %v5712_v27 = vpack.c.bf16 %v418_v25, %v414_v23  ;;  %6934 = vst [vmem:[#allocation16_spill] sm:$0xff] %v5727_v61  ;;  %v441_v23 = vld [vmem:[#allocation5 + $0x168] sm:$0xff]  ;;  %v5736_v25 = vpack.c.bf16 %v434_v17, %v430_v9  ;;  %v439_v30 = vld [vmem:[#allocation5 + $0x158] sm:$0xff]  ;;  %v436_v36 = vld [vmem:[#allocation5 + $0x140] sm:$0xff] }
  0x5c   :  { %3727 = vmatpush1.bf16.msra.mxu0 %v5656_v28  ;;  %617 = vmatprep.mubr.f32.mxu0 %v6807_v0  ;;  %6935 = vst [vmem:[#allocation17_spill] sm:$0xff] %v5729_v63  ;;  %6936 = vst [vmem:[#allocation18_spill] sm:$0xff] %v5732_v10  ;;  %v5738_v29 = vpack.c.bf16 %v441_v23, %v437_v18  ;;  %v443_v31 = vld [vmem:[#allocation5 + $0x178] sm:$0xff]  ;;  %v440_v41 = vld [vmem:[#allocation5 + $0x160] sm:$0xff] }
  0x5d   :  { %3753 = vmatprep.subr.bf16.mxu0 %v5661_v34  ;;  %6937 = vst [vmem:[#allocation19_spill] sm:$0xff] %v5736_v25  ;;  %v5740_v38 = vpack.c.bf16 %v443_v31, %v439_v30  ;;  %v438_v47 = vld [vmem:[#allocation5 + $0x150] sm:$0xff]  ;;  %v5743_v51 = vpack.c.bf16 %v440_v41, %v436_v36  ;;  %v445_v58 = vld [vmem:[#allocation5 + $0x188] sm:$0xff]  ;;  %v447_v4 = vld [vmem:[#allocation5 + $0x198] sm:$0xff] }
  0x5e   :  { %3748 = vmatpush3.bf16.msra.mxu1 %v5665_v39  ;;  %6938 = vst [vmem:[#allocation20_spill] sm:$0xff] %v5738_v29  ;;  %v442_v50 = vld [vmem:[#allocation5 + $0x170] sm:$0xff]  ;;  %v449_v60 = vld [vmem:[#allocation5 + $0x1a8] sm:$0xff]  ;;  %v451_v9 = vld [vmem:[#allocation5 + $0x1b8] sm:$0xff] }
  0x5f   :  { %618 = vmatmul.mubr.f32.vlgmr.msra.gmra.mrb[0].mxu0 %v6807_v0  ;;  %3749 = vmatprep.subr.bf16.mxu1 %v6809_v40  ;;  %6939 = vst [vmem:[#allocation21_spill] sm:$0xff] %v5740_v38  ;;  %6940 = vst [vmem:[#allocation22_spill] sm:$0xff] %v5743_v51  ;;  %v5747_v53 = vpack.c.bf16 %v442_v50, %v438_v47  ;;  %v5752_v5 = vpack.c.bf16 %v449_v60, %v445_v58  ;;  %v444_v17 = vld [vmem:[#allocation5 + $0x180] sm:$0xff]  ;;  %v446_v31 = vld [vmem:[#allocation5 + $0x190] sm:$0xff] }
  0x60   :  { %3755 = vmatpush1.bf16.msra.mxu0 %v5669_v45  ;;  %775 = vmatprep.mubr.f32.mxu0 %v6807_v0  ;;  %v448_v18 = vld [vmem:[#allocation5 + $0x1a0] sm:$0xff]  ;;  %v5754_v23 = vpack.c.bf16 %v451_v9, %v447_v4  ;;  %v450_v36 = vld [vmem:[#allocation5 + $0x1b0] sm:$0xff]  ;;  %v453_v47 = vld [vmem:[#allocation5 + $0x1c8] sm:$0xff] }
  0x61   :  { %3757 = vmatprep.subr.bf16.mxu0 %v5673_v48  ;;  %6941 = vst [vmem:[#allocation23_spill] sm:$0xff] %v5747_v53  ;;  %6942 = vst [vmem:[#allocation24_spill] sm:$0xff] %v5752_v5  ;;  %v5756_v30 = vpack.c.bf16 %v448_v18, %v444_v17  ;;  %v5759_v41 = vpack.c.bf16 %v450_v36, %v446_v31  ;;  %v457_v50 = vld [vmem:[#allocation5 + $0x1e8] sm:$0xff]  ;;  %v455_v58 = vld [vmem:[#allocation5 + $0x1d8] sm:$0xff] }
  0x62   :  { %3751 = vmatpush3.bf16.msra.mxu1 %v5680_v55  ;;  %6943 = vst [vmem:[#allocation25_spill] sm:$0xff] %v5754_v23  ;;  %v5764_v60 = vpack.c.bf16 %v457_v50, %v453_v47  ;;  %v459_v4 = vld [vmem:[#allocation5 + $0x1f8] sm:$0xff]  ;;  %v452_v9 = vld [vmem:[#allocation5 + $0x1c0] sm:$0xff]  ;;  %v454_v31 = vld [vmem:[#allocation5 + $0x1d0] sm:$0xff] }
  0x63   :  { %3817 = vmatprep.subr.bf16.mxu1 %v5683_v57  ;;  %6944 = vst [vmem:[#allocation26_spill] sm:$0xff] %v5756_v30  ;;  %6945 = vst [vmem:[#allocation27_spill] sm:$0xff] %v5759_v41  ;;  %v456_v17 = vld [vmem:[#allocation5 + $0x1e0] sm:$0xff]  ;;  %v5766_v18 = vpack.c.bf16 %v459_v4, %v455_v58  ;;  %v458_v36 = vld [vmem:[#allocation5 + $0x1f0] sm:$0xff] }
  0x64   :  { %3759 = vmatpush1.bf16.msra.mxu0 %v5686_v62  ;;  %6946 = vst [vmem:[#allocation28_spill] sm:$0xff] %v5764_v60  ;;  %v5771_v40 = vpack.c.bf16 %v458_v36, %v454_v31  ;;  %v465_v47 = vld [vmem:[#allocation5 + $0x228] sm:$0xff]  ;;  %v463_v50 = vld [vmem:[#allocation5 + $0x218] sm:$0xff]  ;;  %v460_v4 = vld [vmem:[#allocation5 + $0x200] sm:$0xff] }
  0x65   :  { %3761 = vmatprep.subr.bf16.mxu0 %v5689_v2  ;;  %3406 = vmatmul.mubr.f32.vlgmr.msra.gmra.mrb[8].mxu1 %v6807_v0  ;;  %6947 = vst [vmem:[#allocation29_spill] sm:$0xff] %v5766_v18  ;;  %v467_v58 = vld [vmem:[#allocation5 + $0x238] sm:$0xff]  ;;  %v462_v31 = vld [vmem:[#allocation5 + $0x210] sm:$0xff] }
  0x66   :  { %3819 = vmatpush1.bf16.msra.mxu1 %v5693_v7  ;;  %846 = vmatprep.mubr.f32.mxu1 %v6807_v0  ;;  %v5768_v0 = vpack.c.bf16 %v456_v17, %v452_v9  ;;  %6949 = vst [vmem:[#allocation31_spill] sm:$0xff] %v5771_v40  ;;  %v464_v9 = vld [vmem:[#allocation5 + $0x220] sm:$0xff]  ;;  %v5778_v17 = vpack.c.bf16 %v467_v58, %v463_v50  ;;  %v466_v36 = vld [vmem:[#allocation5 + $0x230] sm:$0xff]  ;;  %v475_v50 = vld [vmem:[#allocation5 + $0x278] sm:$0xff] }
  0x67   :  { %3821 = vmatprep.subr.bf16.mxu1 %v5696_v8  ;;  %v468_v58 = vld [vmem:[#allocation5 + $0x240] sm:$0xff] }
  0x68   :  { %3763 = vmatpush1.bf16.msra.mxu0 %v5699_v13  ;;  %6948 = vst [vmem:[#allocation30_spill] sm:$0xff] %v5768_v0  ;;  %6951 = vst [vmem:[#allocation33_spill] sm:$0xff] %v5778_v17 }
  0x69   :  { %3765 = vmatprep.subr.bf16.mxu0 %v5716_v32 }
  0x6a   :  { %3823 = vmatpush1.bf16.msra.mxu1 %v5704_v20 }
  0x6b   :  { %3825 = vmatprep.subr.bf16.mxu1 %v5708_v21 }
  0x6c   :  { %3767 = vmatpush1.bf16.msra.mxu0 %v5720_v43 }
  0x6d   :  { %3769 = vmatprep.subr.bf16.mxu0 %v5727_v61 }
  0x6e   :  { %3827 = vmatpush1.bf16.msra.mxu1 %v5712_v27 }
  0x6f   :  { %3829 = vmatprep.subr.bf16.mxu1 %v5718_v42 }
  0x70   :  { %3771 = vmatpush1.bf16.msra.mxu0 %v5732_v10 }
  0x71   :  { %3773 = vmatprep.subr.bf16.mxu0 %v5738_v29 }
  0x72   :  { %3831 = vmatpush1.bf16.msra.mxu1 %v5723_v52 }
  0x73   :  { %3833 = vmatprep.subr.bf16.mxu1 %v5729_v63 }
  0x74   :  { %3775 = vmatpush1.bf16.msra.mxu0 %v5743_v51  ;;  %v521_v51 = vld [vmem:[#allocation5 + $0x3e8] sm:$0xff] }
  0x75   :  { %3777 = vmatprep.subr.bf16.mxu0 %v5752_v5 }
  0x76   :  { %3835 = vmatpush1.bf16.msra.mxu1 %v5736_v25 }
  0x77   :  { %3837 = vmatprep.subr.bf16.mxu1 %v5740_v38  ;;  %v518_v38 = vld [vmem:[#allocation5 + $0x3d0] sm:$0xff] }
  0x78   :  { %3779 = vmatpush1.bf16.msra.mxu0 %v5756_v30 }
  0x79   :  { %3781 = vmatprep.subr.bf16.mxu0 %v5764_v60 }
  0x7a   :  { %3839 = vmatpush1.bf16.msra.mxu1 %v5747_v53  ;;  %v504_v53 = vld [vmem:[#allocation5 + $0x360] sm:$0xff] }
  0x7b   :  { %3841 = vmatprep.subr.bf16.mxu1 %v5754_v23  ;;  %v5780_v23 = vpack.c.bf16 %v464_v9, %v460_v4  ;;  %v472_v4 = vld [vmem:[#allocation5 + $0x260] sm:$0xff] }
  0x7c   :  { %3783 = vmatpush1.bf16.msra.mxu0 %v5768_v0  ;;  %v5792_v60 = vpack.c.bf16 %v472_v4, %v468_v58  ;;  %v480_v58 = vld [vmem:[#allocation5 + $0x2a0] sm:$0xff] }
  0x7d   :  { %6952 = vst [vmem:[#allocation34_spill] sm:$0xff] %v5780_v23 }
  0x7e   :  { %3843 = vmatpush1.bf16.msra.mxu1 %v5759_v41  ;;  %v461_v41 = vld [vmem:[#allocation5 + $0x208] sm:$0xff]  ;;  %6956 = vst [vmem:[#allocation38_spill] sm:$0xff] %v5792_v60 }
  0x7f   :  { %3845 = vmatprep.subr.bf16.mxu1 %v5766_v18  ;;  %v5776_v30 = vpack.c.bf16 %v465_v47, %v461_v41  ;;  %v5783_v18 = vpack.c.bf16 %v466_v36, %v462_v31  ;;  %v473_v41 = vld [vmem:[#allocation5 + $0x268] sm:$0xff]  ;;  %v471_v47 = vld [vmem:[#allocation5 + $0x258] sm:$0xff]  ;;  %v470_v31 = vld [vmem:[#allocation5 + $0x250] sm:$0xff] }
  0x80   :  { %v5790_v9 = vpack.c.bf16 %v475_v50, %v471_v47  ;;  %v474_v36 = vld [vmem:[#allocation5 + $0x270] sm:$0xff]  ;;  %v483_v47 = vld [vmem:[#allocation5 + $0x2b8] sm:$0xff]  ;;  %v476_v50 = vld [vmem:[#allocation5 + $0x280] sm:$0xff] }
  0x81   :  { %6950 = vst [vmem:[#allocation32_spill] sm:$0xff] %v5776_v30  ;;  %3785 = vmatprep.subr.bf16.mxu0 %v5776_v30  ;;  %6953 = vst [vmem:[#allocation35_spill] sm:$0xff] %v5783_v18  ;;  %v5804_v30 = vpack.c.bf16 %v480_v58, %v476_v50  ;;  %v484_v50 = vld [vmem:[#allocation5 + $0x2c0] sm:$0xff] }
  0x82   :  { %3847 = vmatpush1.bf16.msra.mxu1 %v5771_v40  ;;  %3787 = vmatpush1.bf16.msra.mxu0 %v5780_v23  ;;  %v469_v40 = vld [vmem:[#allocation5 + $0x248] sm:$0xff]  ;;  %6955 = vst [vmem:[#allocation37_spill] sm:$0xff] %v5790_v9 }
  0x83   :  { %3849 = vmatprep.subr.bf16.mxu1 %v5778_v17  ;;  %v5788_v0 = vpack.c.bf16 %v473_v41, %v469_v40  ;;  %v5795_v17 = vpack.c.bf16 %v474_v36, %v470_v31  ;;  %v481_v40 = vld [vmem:[#allocation5 + $0x2a8] sm:$0xff]  ;;  %v479_v41 = vld [vmem:[#allocation5 + $0x298] sm:$0xff]  ;;  %6960 = vst [vmem:[#allocation42_spill] sm:$0xff] %v5804_v30  ;;  %v478_v31 = vld [vmem:[#allocation5 + $0x290] sm:$0xff] }
  0x84   :  { %v5802_v4 = vpack.c.bf16 %v483_v47, %v479_v41  ;;  %v482_v36 = vld [vmem:[#allocation5 + $0x2b0] sm:$0xff]  ;;  %v487_v41 = vld [vmem:[#allocation5 + $0x2d8] sm:$0xff] }
  0x85   :  { %6954 = vst [vmem:[#allocation36_spill] sm:$0xff] %v5788_v0  ;;  %3789 = vmatprep.subr.bf16.mxu0 %v5788_v0  ;;  %6957 = vst [vmem:[#allocation39_spill] sm:$0xff] %v5795_v17  ;;  %v491_v47 = vld [vmem:[#allocation5 + $0x2f8] sm:$0xff]  ;;  %v486_v0 = vld [vmem:[#allocation5 + $0x2d0] sm:$0xff] }
  0x86   :  { %3851 = vmatpush1.bf16.msra.mxu1 %v5783_v18  ;;  %3791 = vmatpush1.bf16.msra.mxu0 %v5792_v60  ;;  %v477_v18 = vld [vmem:[#allocation5 + $0x288] sm:$0xff]  ;;  %6959 = vst [vmem:[#allocation41_spill] sm:$0xff] %v5802_v4  ;;  %v5814_v58 = vpack.c.bf16 %v491_v47, %v487_v41  ;;  %v488_v60 = vld [vmem:[#allocation5 + $0x2e0] sm:$0xff]  ;;  %v499_v41 = vld [vmem:[#allocation5 + $0x338] sm:$0xff] }
  0x87   :  { %3853 = vmatprep.subr.bf16.mxu1 %v5790_v9  ;;  %v5800_v23 = vpack.c.bf16 %v481_v40, %v477_v18  ;;  %v5807_v9 = vpack.c.bf16 %v482_v36, %v478_v31  ;;  %v489_v18 = vld [vmem:[#allocation5 + $0x2e8] sm:$0xff]  ;;  %v5817_v31 = vpack.c.bf16 %v488_v60, %v484_v50  ;;  %v492_v47 = vld [vmem:[#allocation5 + $0x300] sm:$0xff] }
  0x88   :  { %6963 = vst [vmem:[#allocation45_spill] sm:$0xff] %v5814_v58 }
  0x89   :  { %6958 = vst [vmem:[#allocation40_spill] sm:$0xff] %v5800_v23  ;;  %3793 = vmatprep.subr.bf16.mxu0 %v5800_v23  ;;  %6961 = vst [vmem:[#allocation43_spill] sm:$0xff] %v5807_v9  ;;  %v490_v23 = vld [vmem:[#allocation5 + $0x2f0] sm:$0xff] }
  0x8a   :  { %3855 = vmatpush1.bf16.msra.mxu1 %v5795_v17  ;;  %3795 = vmatpush1.bf16.msra.mxu0 %v5804_v30  ;;  %v485_v17 = vld [vmem:[#allocation5 + $0x2c8] sm:$0xff]  ;;  %6964 = vst [vmem:[#allocation46_spill] sm:$0xff] %v5817_v31  ;;  %v5819_v36 = vpack.c.bf16 %v490_v23, %v486_v0  ;;  %v494_v0 = vld [vmem:[#allocation5 + $0x310] sm:$0xff] }
  0x8b   :  { %3857 = vmatprep.subr.bf16.mxu1 %v5802_v4  ;;  %v5812_v40 = vpack.c.bf16 %v489_v18, %v485_v17  ;;  %v493_v30 = vld [vmem:[#allocation5 + $0x308] sm:$0xff]  ;;  %v495_v17 = vld [vmem:[#allocation5 + $0x318] sm:$0xff]  ;;  %v496_v4 = vld [vmem:[#allocation5 + $0x320] sm:$0xff] }
  0x8c   :  { %6965 = vst [vmem:[#allocation47_spill] sm:$0xff] %v5819_v36  ;;  %v5826_v5 = vpack.c.bf16 %v499_v41, %v495_v17  ;;  %v5828_v60 = vpack.c.bf16 %v496_v4, %v492_v47  ;;  %v498_v23 = vld [vmem:[#allocation5 + $0x330] sm:$0xff] }
  0x8d   :  { %6962 = vst [vmem:[#allocation44_spill] sm:$0xff] %v5812_v40  ;;  %3797 = vmatprep.subr.bf16.mxu0 %v5812_v40  ;;  %v5831_v50 = vpack.c.bf16 %v498_v23, %v494_v0  ;;  %v505_v40 = vld [vmem:[#allocation5 + $0x368] sm:$0xff]  ;;  %v502_v41 = vld [vmem:[#allocation5 + $0x350] sm:$0xff] }
  0x8e   :  { %3859 = vmatpush1.bf16.msra.mxu1 %v5807_v9  ;;  %v497_v9 = vld [vmem:[#allocation5 + $0x328] sm:$0xff]  ;;  %3799 = vmatpush1.bf16.msra.mxu0 %v5817_v31  ;;  %6967 = vst [vmem:[#allocation49_spill] sm:$0xff] %v5826_v5  ;;  %6968 = vst [vmem:[#allocation50_spill] sm:$0xff] %v5828_v60  ;;  %v503_v31 = vld [vmem:[#allocation5 + $0x358] sm:$0xff] }
  0x8f   :  { %3861 = vmatprep.subr.bf16.mxu1 %v5814_v58  ;;  %v5824_v18 = vpack.c.bf16 %v497_v9, %v493_v30  ;;  %6969 = vst [vmem:[#allocation51_spill] sm:$0xff] %v5831_v50  ;;  %v501_v58 = vld [vmem:[#allocation5 + $0x348] sm:$0xff]  ;;  %v507_v9 = vld [vmem:[#allocation5 + $0x378] sm:$0xff]  ;;  %v506_v47 = vld [vmem:[#allocation5 + $0x370] sm:$0xff] }
  0x90   :  { %v5834_v30 = vpack.c.bf16 %v505_v40, %v501_v58  ;;  %v5838_v4 = vpack.c.bf16 %v507_v9, %v503_v31  ;;  %v509_v0 = vld [vmem:[#allocation5 + $0x388] sm:$0xff]  ;;  %v5843_v23 = vpack.c.bf16 %v506_v47, %v502_v41  ;;  %v511_v58 = vld [vmem:[#allocation5 + $0x398] sm:$0xff]  ;;  %v508_v31 = vld [vmem:[#allocation5 + $0x380] sm:$0xff] }
  0x91   :  { %6966 = vst [vmem:[#allocation48_spill] sm:$0xff] %v5824_v18  ;;  %3801 = vmatprep.subr.bf16.mxu0 %v5824_v18  ;;  %v513_v40 = vld [vmem:[#allocation5 + $0x3a8] sm:$0xff]  ;;  %v512_v9 = vld [vmem:[#allocation5 + $0x3a0] sm:$0xff] }
  0x92   :  { %3863 = vmatpush1.bf16.msra.mxu1 %v5819_v36  ;;  %6970 = vst [vmem:[#allocation52_spill] sm:$0xff] %v5834_v30  ;;  %v500_v36 = vld [vmem:[#allocation5 + $0x340] sm:$0xff]  ;;  %3803 = vmatpush1.bf16.msra.mxu0 %v5828_v60  ;;  %6971 = vst [vmem:[#allocation53_spill] sm:$0xff] %v5838_v4  ;;  %v5846_v18 = vpack.c.bf16 %v513_v40, %v509_v0  ;;  %v5852_v41 = vpack.c.bf16 %v512_v9, %v508_v31 }
  0x93   :  { %3865 = vmatprep.subr.bf16.mxu1 %v5826_v5  ;;  %v5840_v17 = vpack.c.bf16 %v504_v53, %v500_v36  ;;  %3805 = vmatprep.subr.bf16.mxu0 %v5834_v30  ;;  %6973 = vst [vmem:[#allocation55_spill] sm:$0xff] %v5843_v23  ;;  %v515_v5 = vld [vmem:[#allocation5 + $0x3b8] sm:$0xff]  ;;  %v510_v53 = vld [vmem:[#allocation5 + $0x390] sm:$0xff]  ;;  %v516_v0 = vld [vmem:[#allocation5 + $0x3c0] sm:$0xff] }
  0x94   :  { %6974 = vst [vmem:[#allocation56_spill] sm:$0xff] %v5846_v18  ;;  %v5848_v60 = vpack.c.bf16 %v515_v5, %v511_v58  ;;  %v514_v36 = vld [vmem:[#allocation5 + $0x3b0] sm:$0xff]  ;;  %6976 = vst [vmem:[#allocation58_spill] sm:$0xff] %v5852_v41  ;;  %v519_v30 = vld [vmem:[#allocation5 + $0x3d8] sm:$0xff] }
  0x95   :  { %6972 = vst [vmem:[#allocation54_spill] sm:$0xff] %v5840_v17  ;;  %v5854_v47 = vpack.c.bf16 %v514_v36, %v510_v53  ;;  %v520_v58 = vld [vmem:[#allocation5 + $0x3e0] sm:$0xff] }
  0x96   :  { %3867 = vmatpush1.bf16.msra.mxu1 %v5831_v50  ;;  %6975 = vst [vmem:[#allocation57_spill] sm:$0xff] %v5848_v60  ;;  %v517_v50 = vld [vmem:[#allocation5 + $0x3c8] sm:$0xff]  ;;  %3807 = vmatpush1.bf16.msra.mxu0 %v5840_v17  ;;  %v522_v17 = vld [vmem:[#allocation5 + $0x3f0] sm:$0xff]  ;;  %v5864_v31 = vpack.c.bf16 %v520_v58, %v516_v0 }
  0x97   :  { %3869 = vmatprep.subr.bf16.mxu1 %v5838_v4  ;;  %6977 = vst [vmem:[#allocation59_spill] sm:$0xff] %v5854_v47  ;;  %v523_v4 = vld [vmem:[#allocation5 + $0x3f8] sm:$0xff]  ;;  %3809 = vmatprep.subr.bf16.mxu0 %v5846_v18  ;;  %v5858_v5 = vpack.c.bf16 %v521_v51, %v517_v50  ;;  %v5866_v9 = vpack.c.bf16 %v522_v17, %v518_v38  ;;  %v6982_v51 = vmov 0.0|0.0   ;;  %v90_v50 = vlaneseq  ;;  %v88_v38 = vld [vmem:[%s6800_s3] sm:$0x7] }
  0x98   :  { %v5860_v40 = vpack.c.bf16 %v523_v4, %v519_v30  ;;  %6980 = vst [vmem:[#allocation62_spill] sm:$0xff] %v5864_v31 }
  0x99   :  { %6978 = vst [vmem:[#allocation60_spill] sm:$0xff] %v5858_v5  ;;  %6981 = vst [vmem:[#allocation63_spill] sm:$0xff] %v5866_v9  ;;  %v5874_v30 = vshrl.u32 %v90_v50, 7 }
  0x9a   :  { %3871 = vmatpush1.bf16.msra.mxu1 %v5843_v23  ;;  %6979 = vst [vmem:[#allocation61_spill] sm:$0xff] %v5860_v40  ;;  %3811 = vmatpush1.bf16.msra.mxu0 %v5852_v41 }
  0x9b   :  { %3873 = vmatprep.subr.bf16.mxu1 %v5848_v60  ;;  %3813 = vmatprep.subr.bf16.mxu0 %v5858_v5  ;;  %6983 = vst [vmem:[#allocation64_spill] sm:$0xff] %v5874_v30  ;;  %v6893_v4 = vsub.s32 2, %v5874_v30 }
  0x9d   :  { %v101_v17 = vrot.slane %v88_v38, %v6893_v4 }
  0x9e   :  { %3875 = vmatpush1.bf16.msra.mxu1 %v5854_v47  ;;  %3815 = vmatpush1.bf16.msra.mxu0 %v5864_v31  ;;  %v6896_v47 = vsub.s32 0, %v5874_v30 }
  0x9f   :  { %3877 = vmatprep.subr.bf16.mxu1 %v5860_v40  ;;  %3881 = vmatprep.subr.bf16.mxu0 %v5544_v12 }
  0xa0   :  { %v5895_v4 = vrot.slane %v88_v38, %v6896_v47 }
  0xa2   :  { %3879 = vmatpush1.bf16.msra.mxu1 %v5866_v9  ;;  %6989 = vst [vmem:[#allocation70_spill] sm:$0xff] %v5895_v4 }
  0xa3   :  { %3912 = vmatprep.subr.bf16.mxu1 %v6982_v51 }
 0x118   :  { %v3363_v53 = vpop.f32.mrb[0].mxu1 }
 0x119   :  { %v5882_v36 = vadd.f32 %v3363_v53, %v101_v17  ;;  %v309_v0 = vpop.f32.mrb[1].mxu1 }
 0x11b   :  { %6984 = vst [vmem:[#allocation65_spill] sm:$0xff] %v5882_v36 }
 0x11c   :  { %v3366_v58 = vpop.f32.mrb[2].mxu1 }
 0x11d   :  { %v5884_v12 = vadd.f32 %v3366_v58, %v101_v17  ;;  %v319_v9 = vpop.f32.mrb[3].mxu1 }
 0x11e   :  { %v5886_v31 = vadd.f32 %v319_v9, %v101_v17 }
 0x11f   :  { %6985 = vst [vmem:[#allocation66_spill] sm:$0xff] %v5884_v12 }
 0x120   :  { %6986 = vst [vmem:[#allocation67_spill] sm:$0xff] %v5886_v31  ;;  %v3369_v50 = vpop.f32.mrb[4].mxu1 }
 0x121   :  { %v5888_v40 = vadd.f32 %v3369_v50, %v101_v17  ;;  %v329_v5 = vpop.f32.mrb[5].mxu1 }
 0x122   :  { %v5891_v41 = vadd.f32 %v329_v5, %v101_v17 }
 0x123   :  { %6987 = vst [vmem:[#allocation68_spill] sm:$0xff] %v5888_v40  ;;  %v6901_v40 = vsub.s32 1, %v5874_v30 }
 0x124   :  { %6988 = vst [vmem:[#allocation69_spill] sm:$0xff] %v5891_v41  ;;  %v3372_v53 = vpop.f32.mrb[6].mxu1 }
 0x125   :  { %v5897_v36 = vadd.f32 %v3372_v53, %v101_v17  ;;  %v339_v58 = vpop.f32.mrb[7].mxu1  ;;  %v5905_v5 = vrot.slane %v88_v38, %v6901_v40 }
 0x126   :  { %v5899_v60 = vadd.f32 %v339_v58, %v101_v17  ;;  %v5911_v58 = vld [vmem:[%s6801_s4] ss:$0 sm:$0xff] }
 0x127   :  { %6990 = vst [vmem:[#allocation71_spill] sm:$0xff] %v5897_v36  ;;  %6992 = vst [vmem:[#allocation73_spill] sm:$0xff] %v5905_v5 }
 0x128   :  { %6991 = vst [vmem:[#allocation72_spill] sm:$0xff] %v5899_v60 }
 0x132   :  { %v619_v12 = vpop.f32.mrb[0].mxu0 }
 0x133   :  { %v5192_v9 = vadd.f32 %v619_v12, %v5895_v4  ;;  %v621_v50 = vpop.f32.mrb[1].mxu0 }
 0x134   :  { %v5193_v53 = vadd.f32 %v621_v50, %v5905_v5 }
 0x135   :  { %v696_v31 = vmul.f32 0.5, %v5192_v9  ;;  %v310_v9 = vadd.f32 %v309_v0, %v101_v17  ;;  %v7000_v17 = vld [vmem:[#allocation26_spill] sm:$0xff]  ;;  %v7002_v0 = vld [vmem:[#allocation28_spill] sm:$0xff] }
 0x136   :  { %v697_v36 = vmul.f32 0.5, %v5193_v53  ;;  %v7004_v53 = vld [vmem:[#allocation30_spill] sm:$0xff] }
 0x137   :  { %5237 = vtanh.f32 %v696_v31 }
 0x138   :  { %v690_v47 = vpop.f32.mrb[8].mxu1  ;;  %5239 = vtanh.f32 %v697_v36  ;;  %v7001_v36 = vld [vmem:[#allocation27_spill] sm:$0xff] }
 0x139   :  { %v3407_v41 = vpop.f32.mrb[9].mxu1  ;;  %v704_v4 = vadd.f32 %v5911_v58, %v690_v47  ;;  %v6996_v47 = vld [vmem:[#allocation22_spill] sm:$0xff] }
 0x141   :  { %v5238_v12 = vpop.eup %5237 }
 0x142   :  { %v700_v60 = vmul.f32 0.5, %v5238_v12  ;;  %v5240_v40 = vpop.eup %5239  ;;  %v7005_v12 = vld [vmem:[#allocation31_spill] sm:$0xff] }
 0x143   :  { %v701_v41 = vmul.f32 0.5, %v5240_v40  ;;  %v6997_v40 = vld [vmem:[#allocation23_spill] sm:$0xff] }
 0x144   :  { %v702_v31 = vadd.f32 0.5, %v700_v60  ;;  %v6993_v60 = vmov 0.0  }
 0x145   :  { %v703_v50 = vadd.f32 0.5, %v701_v41  ;;  %v7009_v41 = vld [vmem:[#allocation35_spill] sm:$0xff] }
 0x146   :  { %v705_v30 = vmul.f32 %v704_v4, %v702_v31  ;;  %v6999_v4 = vld [vmem:[#allocation25_spill] sm:$0xff]  ;;  %v7006_v31 = vld [vmem:[#allocation32_spill] sm:$0xff] }
 0x148   :  { %v706_v38 = vadd.f32 %v705_v30, %v310_v9  ;;  %v6998_v30 = vld [vmem:[#allocation24_spill] sm:$0xff]  ;;  %v7007_v9 = vld [vmem:[#allocation33_spill] sm:$0xff] }
 0x14a   :  { %5241 = vtanh.f32 %v706_v38  ;;  %v7008_v38 = vld [vmem:[#allocation34_spill] sm:$0xff] }
 0x154   :  { %v5242_v18 = vpop.eup %5241 }
 0x155   :  { %v708_v5 = vsub.f32 0.0, %v5242_v18 }
 0x157   :  { %v709_v23 = vmul.f32 %v708_v5, %v703_v50  ;;  %v7003_v5 = vld [vmem:[#allocation29_spill] sm:$0xff]  ;;  %v7010_v50 = vld [vmem:[#allocation36_spill] sm:$0xff] }
 0x159   :  { %v5914_v29 = vadd.f32 %v5242_v18, %v709_v23  ;;  %v6994_v18 = vld [vmem:[#allocation20_spill] sm:$0xff]  ;;  %v6995_v23 = vld [vmem:[#allocation21_spill] sm:$0xff] }
 0x15b   :  { %776 = vmatmul.mubr.f32.vlgmr.msra.gmra.mrb[16].mxu0 %v5914_v29  ;;  %847 = vmatmul.mubr.f32.vlgmr.msra.gmra.mrb[10].mxu1 %v5914_v29 }
 0x15c   :  { %3883 = vmatpush1.bf16.msra.mxu0 %v5546_v15  ;;  %3914 = vmatpush3.bf16.msra.mxu1 %v5569_v33 }
 0x15d   :  { %3885 = vmatprep.subr.bf16.mxu0 %v5549_v16  ;;  %3915 = vmatprep.subr.bf16.mxu1 %v6982_v51 }
 0x15e   :  { %931 = vmatprep.mubr.f32.mxu0 %v6993_v60  ;;  %3440 = vmatprep.mubr.msk.f32.mxu1 %vm5439_vm1, %v6993_v60 }
 0x160   :  { %3887 = vmatpush1.bf16.msra.mxu0 %v5563_v24  ;;  %3917 = vmatpush3.bf16.msra.mxu1 %v5585_v44 }
 0x161   :  { %3889 = vmatprep.subr.bf16.mxu0 %v5566_v26  ;;  %3918 = vmatprep.subr.bf16.mxu1 %v6982_v51 }
 0x164   :  { %3891 = vmatpush1.bf16.msra.mxu0 %v5576_v35  ;;  %3920 = vmatpush3.bf16.msra.mxu1 %v5601_v54 }
 0x165   :  { %3893 = vmatprep.subr.bf16.mxu0 %v5579_v37  ;;  %3921 = vmatprep.subr.bf16.mxu1 %v6982_v51 }
 0x168   :  { %3895 = vmatpush1.bf16.msra.mxu0 %v5592_v46  ;;  %3923 = vmatpush3.bf16.msra.mxu1 %v5617_v1 }
 0x169   :  { %3897 = vmatprep.subr.bf16.mxu0 %v5595_v49  ;;  %3924 = vmatprep.subr.bf16.mxu1 %v6982_v51 }
 0x16c   :  { %3899 = vmatpush1.bf16.msra.mxu0 %v5608_v56  ;;  %3926 = vmatpush3.bf16.msra.mxu1 %v5633_v11 }
 0x16d   :  { %3901 = vmatprep.subr.bf16.mxu0 %v5611_v59  ;;  %3927 = vmatprep.subr.bf16.mxu1 %v6982_v51 }
 0x170   :  { %3903 = vmatpush1.bf16.msra.mxu0 %v5624_v3  ;;  %3929 = vmatpush3.bf16.msra.mxu1 %v5649_v22 }
 0x171   :  { %3905 = vmatprep.subr.bf16.mxu0 %v5627_v6  ;;  %3930 = vmatprep.subr.bf16.mxu1 %v6982_v51 }
 0x174   :  { %3907 = vmatpush1.bf16.msra.mxu0 %v5640_v14  ;;  %3932 = vmatpush3.bf16.msra.mxu1 %v5665_v39 }
 0x175   :  { %3909 = vmatprep.subr.bf16.mxu0 %v5643_v19  ;;  %3933 = vmatprep.subr.bf16.mxu1 %v6982_v51 }
 0x178   :  { %3911 = vmatpush1.bf16.msra.mxu0 %v5656_v28  ;;  %3935 = vmatpush3.bf16.msra.mxu1 %v5680_v55 }
 0x179   :  { %3937 = vmatprep.subr.bf16.mxu0 %v5661_v34  ;;  %4001 = vmatprep.subr.bf16.mxu1 %v5683_v57 }
 0x17b   :  { %932 = vmatmul.mubr.f32.vlgmr.msra.gmra.mrb[2].mxu0 %v5914_v29  ;;  %3441 = vmatmul.mubr.f32.vlgmr.msra.gmra.mrb[12].mxu1 %v5914_v29 }
 0x17c   :  { %3939 = vmatpush1.bf16.msra.mxu0 %v5669_v45  ;;  %4003 = vmatpush1.bf16.msra.mxu1 %v5693_v7 }
 0x17d   :  { %3941 = vmatprep.subr.bf16.mxu0 %v5673_v48  ;;  %4005 = vmatprep.subr.bf16.mxu1 %v5696_v8 }
 0x180   :  { %3943 = vmatpush1.bf16.msra.mxu0 %v5686_v62  ;;  %4007 = vmatpush1.bf16.msra.mxu1 %v5704_v20 }
 0x181   :  { %3945 = vmatprep.subr.bf16.mxu0 %v5689_v2  ;;  %4009 = vmatprep.subr.bf16.mxu1 %v5708_v21 }
 0x184   :  { %3947 = vmatpush1.bf16.msra.mxu0 %v5699_v13  ;;  %4011 = vmatpush1.bf16.msra.mxu1 %v5712_v27 }
 0x185   :  { %3949 = vmatprep.subr.bf16.mxu0 %v5716_v32  ;;  %4013 = vmatprep.subr.bf16.mxu1 %v5718_v42 }
 0x188   :  { %3951 = vmatpush1.bf16.msra.mxu0 %v5720_v43  ;;  %4015 = vmatpush1.bf16.msra.mxu1 %v5723_v52 }
 0x189   :  { %3953 = vmatprep.subr.bf16.mxu0 %v5727_v61  ;;  %4017 = vmatprep.subr.bf16.mxu1 %v5729_v63  ;;  %v7045_v63 = vld [vmem:[#allocation70_spill] sm:$0xff] }
 0x18c   :  { %3955 = vmatpush1.bf16.msra.mxu0 %v5732_v10  ;;  %4019 = vmatpush1.bf16.msra.mxu1 %v5736_v25 }
 0x18d   :  { %3957 = vmatprep.subr.bf16.mxu0 %v6994_v18  ;;  %4021 = vmatprep.subr.bf16.mxu1 %v6995_v23 }
 0x190   :  { %3959 = vmatpush1.bf16.msra.mxu0 %v6996_v47  ;;  %4023 = vmatpush1.bf16.msra.mxu1 %v6997_v40 }
 0x191   :  { %3961 = vmatprep.subr.bf16.mxu0 %v6998_v30  ;;  %4025 = vmatprep.subr.bf16.mxu1 %v6999_v4 }
 0x194   :  { %3963 = vmatpush1.bf16.msra.mxu0 %v7000_v17  ;;  %4027 = vmatpush1.bf16.msra.mxu1 %v7001_v36  ;;  %v7011_v17 = vld [vmem:[#allocation37_spill] sm:$0xff]  ;;  %v7012_v36 = vld [vmem:[#allocation38_spill] sm:$0xff] }
 0x195   :  { %3965 = vmatprep.subr.bf16.mxu0 %v7002_v0  ;;  %4029 = vmatprep.subr.bf16.mxu1 %v7003_v5  ;;  %v7013_v0 = vld [vmem:[#allocation39_spill] sm:$0xff]  ;;  %v7014_v5 = vld [vmem:[#allocation40_spill] sm:$0xff] }
 0x198   :  { %3967 = vmatpush1.bf16.msra.mxu0 %v7004_v53  ;;  %4031 = vmatpush1.bf16.msra.mxu1 %v7005_v12  ;;  %v7015_v53 = vld [vmem:[#allocation41_spill] sm:$0xff]  ;;  %v7016_v12 = vld [vmem:[#allocation42_spill] sm:$0xff] }
 0x199   :  { %3969 = vmatprep.subr.bf16.mxu0 %v7006_v31  ;;  %4033 = vmatprep.subr.bf16.mxu1 %v7007_v9  ;;  %v7017_v31 = vld [vmem:[#allocation43_spill] sm:$0xff]  ;;  %v7018_v9 = vld [vmem:[#allocation44_spill] sm:$0xff] }
 0x19c   :  { %3971 = vmatpush1.bf16.msra.mxu0 %v7008_v38  ;;  %4035 = vmatpush1.bf16.msra.mxu1 %v7009_v41  ;;  %v7019_v38 = vld [vmem:[#allocation45_spill] sm:$0xff]  ;;  %v7020_v41 = vld [vmem:[#allocation46_spill] sm:$0xff] }
 0x19d   :  { %3973 = vmatprep.subr.bf16.mxu0 %v7010_v50  ;;  %4037 = vmatprep.subr.bf16.mxu1 %v7011_v17  ;;  %v7021_v50 = vld [vmem:[#allocation47_spill] sm:$0xff]  ;;  %v7022_v17 = vld [vmem:[#allocation48_spill] sm:$0xff] }
 0x1a0   :  { %3975 = vmatpush1.bf16.msra.mxu0 %v7012_v36  ;;  %4039 = vmatpush1.bf16.msra.mxu1 %v7013_v0  ;;  %v7023_v36 = vld [vmem:[#allocation49_spill] sm:$0xff]  ;;  %v7024_v0 = vld [vmem:[#allocation50_spill] sm:$0xff] }
 0x1a1   :  { %3977 = vmatprep.subr.bf16.mxu0 %v7014_v5  ;;  %4041 = vmatprep.subr.bf16.mxu1 %v7015_v53  ;;  %v7025_v5 = vld [vmem:[#allocation51_spill] sm:$0xff]  ;;  %v7026_v53 = vld [vmem:[#allocation52_spill] sm:$0xff] }
 0x1a4   :  { %3979 = vmatpush1.bf16.msra.mxu0 %v7016_v12  ;;  %4043 = vmatpush1.bf16.msra.mxu1 %v7017_v31  ;;  %v7027_v12 = vld [vmem:[#allocation53_spill] sm:$0xff]  ;;  %v7028_v31 = vld [vmem:[#allocation54_spill] sm:$0xff] }
 0x1a5   :  { %3981 = vmatprep.subr.bf16.mxu0 %v7018_v9  ;;  %4045 = vmatprep.subr.bf16.mxu1 %v7019_v38  ;;  %v7029_v9 = vld [vmem:[#allocation55_spill] sm:$0xff]  ;;  %v7030_v38 = vld [vmem:[#allocation56_spill] sm:$0xff] }
 0x1a8   :  { %3983 = vmatpush1.bf16.msra.mxu0 %v7020_v41  ;;  %4047 = vmatpush1.bf16.msra.mxu1 %v7021_v50  ;;  %v7031_v41 = vld [vmem:[#allocation57_spill] sm:$0xff]  ;;  %v7032_v50 = vld [vmem:[#allocation58_spill] sm:$0xff] }
 0x1a9   :  { %3985 = vmatprep.subr.bf16.mxu0 %v7022_v17  ;;  %4049 = vmatprep.subr.bf16.mxu1 %v7023_v36  ;;  %v7033_v17 = vld [vmem:[#allocation59_spill] sm:$0xff]  ;;  %v7034_v36 = vld [vmem:[#allocation60_spill] sm:$0xff] }
 0x1ac   :  { %3987 = vmatpush1.bf16.msra.mxu0 %v7024_v0  ;;  %4051 = vmatpush1.bf16.msra.mxu1 %v7025_v5  ;;  %v7035_v0 = vld [vmem:[#allocation61_spill] sm:$0xff]  ;;  %v7036_v5 = vld [vmem:[#allocation62_spill] sm:$0xff] }
 0x1ad   :  { %3989 = vmatprep.subr.bf16.mxu0 %v7026_v53  ;;  %4053 = vmatprep.subr.bf16.mxu1 %v7027_v12  ;;  %v7037_v53 = vld [vmem:[#allocation63_spill] sm:$0xff]  ;;  %v7038_v12 = vld [vmem:[#allocation12_spill] sm:$0xff] }
 0x1b0   :  { %3991 = vmatpush1.bf16.msra.mxu0 %v7028_v31  ;;  %4055 = vmatpush1.bf16.msra.mxu1 %v7029_v9 }
 0x1b1   :  { %3993 = vmatprep.subr.bf16.mxu0 %v7030_v38  ;;  %4057 = vmatprep.subr.bf16.mxu1 %v7031_v41  ;;  %v524_v41 = vld [vmem:[%s6803_s6] sm:$0xf]  ;;  %v7039_v38 = vld [vmem:[#allocation64_spill] sm:$0xff] }
 0x1b2   :  { %v540_v40 = vsub.s32 3, %v7039_v38  ;;  %v7044_v25 = vsub.s32 2, %v7039_v38 }
 0x1b4   :  { %3995 = vmatpush1.bf16.msra.mxu0 %v7032_v50  ;;  %4059 = vmatpush1.bf16.msra.mxu1 %v7033_v17  ;;  %v7040_v50 = vsub.s32 0, %v7039_v38  ;;  %v6033_v23 = vrot.slane %v524_v41, %v540_v40 }
 0x1b5   :  { %3997 = vmatprep.subr.bf16.mxu0 %v7034_v36  ;;  %4061 = vmatprep.subr.bf16.mxu1 %v7035_v0 }
 0x1b6   :  { %v6024_v9 = vrot.slane %v524_v41, %v7040_v50 }
 0x1b8   :  { %3999 = vmatpush1.bf16.msra.mxu0 %v7036_v5  ;;  %4063 = vmatpush1.bf16.msra.mxu1 %v7037_v53  ;;  %7041 = vst [vmem:[#allocation64_spill] sm:$0xff] %v6024_v9 }
 0x1b9   :  { %4065 = vmatprep.subr.bf16.mxu0 %v7038_v12  ;;  %4096 = vmatprep.subr.bf16.mxu1 %v6982_v51  ;;  %v7042_v12 = vsub.s32 1, %v7039_v38 }
 0x1bb   :  { %v6029_v53 = vrot.slane %v524_v41, %v7042_v12 }
 0x1bd   :  { %7043 = vst [vmem:[#allocation74_spill] sm:$0xff] %v6029_v53 }
 0x22e   :  { %v777_v17 = vpop.f32.mrb[16].mxu0  ;;  %v848_v36 = vpop.f32.mrb[10].mxu1 }
 0x22f   :  { %v778_v0 = vadd.f32 %v777_v17, %v6024_v9  ;;  %v779_v31 = vpop.f32.mrb[17].mxu0  ;;  %v850_v5 = vpop.f32.mrb[11].mxu1  ;;  %v6037_v17 = vrot.slane %v524_v41, %v7044_v25 }
 0x230   :  { %v780_v30 = vadd.f32 %v779_v31, %v6029_v53 }
 0x231   :  { %v853_v4 = vmul.f32 0.5, %v778_v0  ;;  %v849_v12 = vadd.f32 %v848_v36, %v6037_v17 }
 0x232   :  { %v854_v47 = vmul.f32 0.5, %v780_v30 }
 0x233   :  { %5243 = vtanh.f32 %v853_v4  ;;  %v851_v4 = vadd.f32 %v850_v5, %v6033_v23 }
 0x234   :  { %5245 = vtanh.f32 %v854_v47 }
 0x23d   :  { %v5244_v50 = vpop.eup %5243 }
 0x23e   :  { %v857_v18 = vmul.f32 0.5, %v5244_v50  ;;  %v5246_v31 = vpop.eup %5245 }
 0x23f   :  { %v858_v53 = vmul.f32 0.5, %v5246_v31 }
 0x240   :  { %v859_v0 = vadd.f32 0.5, %v857_v18 }
 0x241   :  { %v860_v25 = vadd.f32 0.5, %v858_v53 }
 0x242   :  { %v861_v9 = vmul.f32 %v859_v0, %v851_v4 }
 0x244   :  { %v862_v10 = vadd.f32 %v861_v9, %v849_v12 }
 0x246   :  { %5247 = vtanh.f32 %v862_v10  ;;  %v7047_v10 = vld [vmem:[#allocation73_spill] sm:$0xff] }
 0x24e   :  { %v933_v30 = vpop.f32.mrb[2].mxu0  ;;  %v1004_v40 = vpop.f32.mrb[12].mxu1 }
 0x24f   :  { %v5194_v61 = vadd.f32 %v933_v30, %v7045_v63  ;;  %v935_v50 = vpop.f32.mrb[3].mxu0  ;;  %v3442_v52 = vpop.f32.mrb[13].mxu1 }
 0x250   :  { %v5248_v38 = vpop.eup %5247  ;;  %v5195_v36 = vadd.f32 %v935_v50, %v7047_v10  ;;  %v1018_v52 = vadd.f32 %v5911_v58, %v1004_v40  ;;  %v7050_v40 = vld [vmem:[#allocation16_spill] sm:$0xff]  ;;  %v7051_v50 = vld [vmem:[#allocation17_spill] sm:$0xff] }
 0x251   :  { %v1010_v41 = vmul.f32 0.5, %v5194_v61  ;;  %v864_v47 = vsub.f32 0.0, %v5248_v38  ;;  %v7048_v61 = vld [vmem:[#allocation65_spill] sm:$0xff] }
 0x252   :  { %v1011_v9 = vmul.f32 0.5, %v5195_v36  ;;  %v7052_v36 = vld [vmem:[#allocation18_spill] sm:$0xff] }
 0x253   :  { %5249 = vtanh.f32 %v1010_v41  ;;  %v865_v5 = vmul.f32 %v864_v47, %v860_v25 }
 0x254   :  { %5251 = vtanh.f32 %v1011_v9  ;;  %v7053_v9 = vld [vmem:[#allocation19_spill] sm:$0xff] }
 0x255   :  { %v6042_v18 = vadd.f32 %v5248_v38, %v865_v5 }
 0x257   :  { %7046 = vst [vmem:[#allocation70_spill] sm:$0xff] %v6042_v18  ;;  %1089 = vmatprep.mubr.f32.mxu0 %v6042_v18  ;;  %1160 = vmatprep.mubr.f32.mxu1 %v6042_v18 }
 0x25d   :  { %v5250_v4 = vpop.eup %5249 }
 0x25e   :  { %v1014_v0 = vmul.f32 0.5, %v5250_v4  ;;  %v5252_v30 = vpop.eup %5251  ;;  %v7054_v4 = vld [vmem:[#allocation20_spill] sm:$0xff] }
 0x25f   :  { %v1015_v38 = vmul.f32 0.5, %v5252_v30  ;;  %v7061_v30 = vld [vmem:[#allocation27_spill] sm:$0xff] }
 0x260   :  { %v1016_v12 = vadd.f32 0.5, %v1014_v0  ;;  %v7055_v0 = vld [vmem:[#allocation21_spill] sm:$0xff] }
 0x261   :  { %v1017_v41 = vadd.f32 0.5, %v1015_v38  ;;  %v7062_v38 = vld [vmem:[#allocation28_spill] sm:$0xff] }
 0x262   :  { %v1019_v53 = vmul.f32 %v1018_v52, %v1016_v12  ;;  %v7056_v12 = vld [vmem:[#allocation22_spill] sm:$0xff]  ;;  %v7057_v52 = vld [vmem:[#allocation23_spill] sm:$0xff] }
 0x264   :  { %v1020_v31 = vadd.f32 %v1019_v53, %v7048_v61  ;;  %v7058_v53 = vld [vmem:[#allocation24_spill] sm:$0xff]  ;;  %v7059_v61 = vld [vmem:[#allocation25_spill] sm:$0xff] }
 0x266   :  { %5253 = vtanh.f32 %v1020_v31  ;;  %v7060_v31 = vld [vmem:[#allocation26_spill] sm:$0xff] }
 0x270   :  { %v5254_v25 = vpop.eup %5253 }
 0x271   :  { %v1022_v47 = vsub.f32 %v5914_v29, %v5254_v25  ;;  %v7049_v29 = vld [vmem:[#allocation15_spill] sm:$0xff] }
 0x273   :  { %v1023_v5 = vmul.f32 %v1022_v47, %v1017_v41  ;;  %v7064_v41 = vld [vmem:[#allocation30_spill] sm:$0xff]  ;;  %v7065_v47 = vld [vmem:[#allocation31_spill] sm:$0xff] }
 0x275   :  { %v6050_v18 = vadd.f32 %v5254_v25, %v1023_v5  ;;  %v7063_v25 = vld [vmem:[#allocation29_spill] sm:$0xff]  ;;  %v7066_v5 = vld [vmem:[#allocation32_spill] sm:$0xff] }
 0x277   :  { %1090 = vmatmul.mubr.f32.vlgmr.msra.gmra.mrb[18].mxu0 %v6050_v18  ;;  %1161 = vmatmul.mubr.f32.vlgmr.msra.gmra.mrb[14].mxu1 %v6050_v18 }
 0x278   :  { %4067 = vmatpush1.bf16.msra.mxu0 %v5546_v15  ;;  %4098 = vmatpush3.bf16.msra.mxu1 %v5569_v33 }
 0x279   :  { %4069 = vmatprep.subr.bf16.mxu0 %v5549_v16  ;;  %4099 = vmatprep.subr.bf16.mxu1 %v6982_v51 }
 0x27a   :  { %1245 = vmatprep.mubr.f32.mxu0 %v6993_v60  ;;  %3475 = vmatprep.mubr.msk.f32.mxu1 %vm5439_vm1, %v6993_v60 }
 0x27c   :  { %4071 = vmatpush1.bf16.msra.mxu0 %v5563_v24  ;;  %4101 = vmatpush3.bf16.msra.mxu1 %v5585_v44 }
 0x27d   :  { %4073 = vmatprep.subr.bf16.mxu0 %v5566_v26  ;;  %4102 = vmatprep.subr.bf16.mxu1 %v6982_v51 }
 0x280   :  { %4075 = vmatpush1.bf16.msra.mxu0 %v5576_v35  ;;  %4104 = vmatpush3.bf16.msra.mxu1 %v5601_v54 }
 0x281   :  { %4077 = vmatprep.subr.bf16.mxu0 %v5579_v37  ;;  %4105 = vmatprep.subr.bf16.mxu1 %v6982_v51 }
 0x284   :  { %4079 = vmatpush1.bf16.msra.mxu0 %v5592_v46  ;;  %4107 = vmatpush3.bf16.msra.mxu1 %v5617_v1 }
 0x285   :  { %4081 = vmatprep.subr.bf16.mxu0 %v5595_v49  ;;  %4108 = vmatprep.subr.bf16.mxu1 %v6982_v51 }
 0x288   :  { %4083 = vmatpush1.bf16.msra.mxu0 %v5608_v56  ;;  %4110 = vmatpush3.bf16.msra.mxu1 %v5633_v11 }
 0x289   :  { %4085 = vmatprep.subr.bf16.mxu0 %v5611_v59  ;;  %4111 = vmatprep.subr.bf16.mxu1 %v6982_v51 }
 0x28c   :  { %4087 = vmatpush1.bf16.msra.mxu0 %v5624_v3  ;;  %4113 = vmatpush3.bf16.msra.mxu1 %v5649_v22 }
 0x28d   :  { %4089 = vmatprep.subr.bf16.mxu0 %v5627_v6  ;;  %4114 = vmatprep.subr.bf16.mxu1 %v6982_v51 }
 0x290   :  { %4091 = vmatpush1.bf16.msra.mxu0 %v5640_v14  ;;  %4116 = vmatpush3.bf16.msra.mxu1 %v5665_v39 }
 0x291   :  { %4093 = vmatprep.subr.bf16.mxu0 %v5643_v19  ;;  %4117 = vmatprep.subr.bf16.mxu1 %v6982_v51 }
 0x294   :  { %4095 = vmatpush1.bf16.msra.mxu0 %v5656_v28  ;;  %4119 = vmatpush3.bf16.msra.mxu1 %v5680_v55 }
 0x295   :  { %4121 = vmatprep.subr.bf16.mxu0 %v5661_v34  ;;  %4185 = vmatprep.subr.bf16.mxu1 %v5683_v57 }
 0x297   :  { %1246 = vmatmul.mubr.f32.vlgmr.msra.gmra.mrb[4].mxu0 %v6050_v18  ;;  %3476 = vmatmul.mubr.f32.vlgmr.msra.gmra.mrb[16].mxu1 %v6050_v18 }
 0x298   :  { %4123 = vmatpush1.bf16.msra.mxu0 %v5669_v45  ;;  %4187 = vmatpush1.bf16.msra.mxu1 %v5693_v7 }
 0x299   :  { %4125 = vmatprep.subr.bf16.mxu0 %v5673_v48  ;;  %4189 = vmatprep.subr.bf16.mxu1 %v5696_v8 }
 0x29c   :  { %4127 = vmatpush1.bf16.msra.mxu0 %v5686_v62  ;;  %4191 = vmatpush1.bf16.msra.mxu1 %v5704_v20 }
 0x29d   :  { %4129 = vmatprep.subr.bf16.mxu0 %v5689_v2  ;;  %4193 = vmatprep.subr.bf16.mxu1 %v5708_v21 }
 0x2a0   :  { %4131 = vmatpush1.bf16.msra.mxu0 %v5699_v13  ;;  %4195 = vmatpush1.bf16.msra.mxu1 %v5712_v27 }
 0x2a1   :  { %4133 = vmatprep.subr.bf16.mxu0 %v5716_v32  ;;  %4197 = vmatprep.subr.bf16.mxu1 %v5718_v42 }
 0x2a4   :  { %4135 = vmatpush1.bf16.msra.mxu0 %v5720_v43  ;;  %4199 = vmatpush1.bf16.msra.mxu1 %v7049_v29 }
 0x2a5   :  { %4137 = vmatprep.subr.bf16.mxu0 %v7050_v40  ;;  %4201 = vmatprep.subr.bf16.mxu1 %v7051_v50 }
 0x2a8   :  { %4139 = vmatpush1.bf16.msra.mxu0 %v7052_v36  ;;  %4203 = vmatpush1.bf16.msra.mxu1 %v7053_v9 }
 0x2a9   :  { %4141 = vmatprep.subr.bf16.mxu0 %v7054_v4  ;;  %4205 = vmatprep.subr.bf16.mxu1 %v7055_v0 }
 0x2ac   :  { %4143 = vmatpush1.bf16.msra.mxu0 %v7056_v12  ;;  %4207 = vmatpush1.bf16.msra.mxu1 %v7057_v52  ;;  %v7067_v12 = vld [vmem:[#allocation33_spill] sm:$0xff]  ;;  %v7068_v52 = vld [vmem:[#allocation34_spill] sm:$0xff] }
 0x2ad   :  { %4145 = vmatprep.subr.bf16.mxu0 %v7058_v53  ;;  %4209 = vmatprep.subr.bf16.mxu1 %v7059_v61  ;;  %v7069_v53 = vld [vmem:[#allocation35_spill] sm:$0xff]  ;;  %v7070_v61 = vld [vmem:[#allocation36_spill] sm:$0xff] }
 0x2b0   :  { %4147 = vmatpush1.bf16.msra.mxu0 %v7060_v31  ;;  %4211 = vmatpush1.bf16.msra.mxu1 %v7061_v30  ;;  %v7071_v31 = vld [vmem:[#allocation37_spill] sm:$0xff]  ;;  %v7072_v30 = vld [vmem:[#allocation38_spill] sm:$0xff] }
 0x2b1   :  { %4149 = vmatprep.subr.bf16.mxu0 %v7062_v38  ;;  %4213 = vmatprep.subr.bf16.mxu1 %v7063_v25  ;;  %v7073_v38 = vld [vmem:[#allocation39_spill] sm:$0xff]  ;;  %v7074_v25 = vld [vmem:[#allocation40_spill] sm:$0xff] }
 0x2b4   :  { %4151 = vmatpush1.bf16.msra.mxu0 %v7064_v41  ;;  %4215 = vmatpush1.bf16.msra.mxu1 %v7065_v47  ;;  %v7075_v41 = vld [vmem:[#allocation41_spill] sm:$0xff]  ;;  %v7076_v47 = vld [vmem:[#allocation42_spill] sm:$0xff] }
 0x2b5   :  { %4153 = vmatprep.subr.bf16.mxu0 %v7066_v5  ;;  %4217 = vmatprep.subr.bf16.mxu1 %v7067_v12  ;;  %v7077_v5 = vld [vmem:[#allocation43_spill] sm:$0xff]  ;;  %v7078_v12 = vld [vmem:[#allocation44_spill] sm:$0xff] }
 0x2b8   :  { %4155 = vmatpush1.bf16.msra.mxu0 %v7068_v52  ;;  %4219 = vmatpush1.bf16.msra.mxu1 %v7069_v53  ;;  %v7079_v52 = vld [vmem:[#allocation45_spill] sm:$0xff]  ;;  %v7080_v53 = vld [vmem:[#allocation46_spill] sm:$0xff] }
 0x2b9   :  { %4157 = vmatprep.subr.bf16.mxu0 %v7070_v61  ;;  %4221 = vmatprep.subr.bf16.mxu1 %v7071_v31  ;;  %v7081_v61 = vld [vmem:[#allocation47_spill] sm:$0xff]  ;;  %v7082_v31 = vld [vmem:[#allocation48_spill] sm:$0xff] }
 0x2bc   :  { %4159 = vmatpush1.bf16.msra.mxu0 %v7072_v30  ;;  %4223 = vmatpush1.bf16.msra.mxu1 %v7073_v38  ;;  %v7083_v30 = vld [vmem:[#allocation49_spill] sm:$0xff]  ;;  %v7084_v38 = vld [vmem:[#allocation50_spill] sm:$0xff] }
 0x2bd   :  { %4161 = vmatprep.subr.bf16.mxu0 %v7074_v25  ;;  %4225 = vmatprep.subr.bf16.mxu1 %v7075_v41  ;;  %v7085_v25 = vld [vmem:[#allocation51_spill] sm:$0xff]  ;;  %v7086_v41 = vld [vmem:[#allocation52_spill] sm:$0xff] }
 0x2c0   :  { %4163 = vmatpush1.bf16.msra.mxu0 %v7076_v47  ;;  %4227 = vmatpush1.bf16.msra.mxu1 %v7077_v5  ;;  %v7087_v47 = vld [vmem:[#allocation53_spill] sm:$0xff]  ;;  %v7088_v5 = vld [vmem:[#allocation54_spill] sm:$0xff] }
 0x2c1   :  { %4165 = vmatprep.subr.bf16.mxu0 %v7078_v12  ;;  %4229 = vmatprep.subr.bf16.mxu1 %v7079_v52  ;;  %v7089_v12 = vld [vmem:[#allocation55_spill] sm:$0xff]  ;;  %v7090_v52 = vld [vmem:[#allocation56_spill] sm:$0xff] }
 0x2c4   :  { %4167 = vmatpush1.bf16.msra.mxu0 %v7080_v53  ;;  %4231 = vmatpush1.bf16.msra.mxu1 %v7081_v61  ;;  %v7091_v53 = vld [vmem:[#allocation57_spill] sm:$0xff]  ;;  %v7092_v61 = vld [vmem:[#allocation58_spill] sm:$0xff] }
 0x2c5   :  { %4169 = vmatprep.subr.bf16.mxu0 %v7082_v31  ;;  %4233 = vmatprep.subr.bf16.mxu1 %v7083_v30  ;;  %v7093_v31 = vld [vmem:[#allocation59_spill] sm:$0xff]  ;;  %v7094_v30 = vld [vmem:[#allocation60_spill] sm:$0xff] }
 0x2c8   :  { %4171 = vmatpush1.bf16.msra.mxu0 %v7084_v38  ;;  %4235 = vmatpush1.bf16.msra.mxu1 %v7085_v25  ;;  %v7095_v38 = vld [vmem:[#allocation61_spill] sm:$0xff]  ;;  %v7096_v25 = vld [vmem:[#allocation62_spill] sm:$0xff] }
 0x2c9   :  { %4173 = vmatprep.subr.bf16.mxu0 %v7086_v41  ;;  %4237 = vmatprep.subr.bf16.mxu1 %v7087_v47  ;;  %v7097_v41 = vld [vmem:[#allocation63_spill] sm:$0xff]  ;;  %v7098_v47 = vld [vmem:[#allocation12_spill] sm:$0xff] }
 0x2cc   :  { %4175 = vmatpush1.bf16.msra.mxu0 %v7088_v5  ;;  %4239 = vmatpush1.bf16.msra.mxu1 %v7089_v12  ;;  %v7099_v5 = vld [vmem:[#allocation64_spill] sm:$0xff] }
 0x2cd   :  { %4177 = vmatprep.subr.bf16.mxu0 %v7090_v52  ;;  %4241 = vmatprep.subr.bf16.mxu1 %v7091_v53 }
 0x2d0   :  { %4179 = vmatpush1.bf16.msra.mxu0 %v7092_v61  ;;  %4243 = vmatpush1.bf16.msra.mxu1 %v7093_v31  ;;  %v7100_v31 = vld [vmem:[#allocation74_spill] sm:$0xff] }
 0x2d1   :  { %4181 = vmatprep.subr.bf16.mxu0 %v7094_v30  ;;  %4245 = vmatprep.subr.bf16.mxu1 %v7095_v38 }
 0x2d4   :  { %4183 = vmatpush1.bf16.msra.mxu0 %v7096_v25  ;;  %4247 = vmatpush1.bf16.msra.mxu1 %v7097_v41 }
 0x2d5   :  { %4249 = vmatprep.subr.bf16.mxu0 %v7098_v47  ;;  %4280 = vmatprep.subr.bf16.mxu1 %v6982_v51 }
 0x34a   :  { %v1091_v12 = vpop.f32.mrb[18].mxu0  ;;  %v1162_v52 = vpop.f32.mrb[14].mxu1 }
 0x34b   :  { %v1092_v53 = vadd.f32 %v1091_v12, %v7099_v5  ;;  %v1093_v0 = vpop.f32.mrb[19].mxu0  ;;  %v1164_v61 = vpop.f32.mrb[15].mxu1  ;;  %v1163_v47 = vadd.f32 %v1162_v52, %v6037_v17 }
 0x34c   :  { %v1094_v30 = vadd.f32 %v1093_v0, %v7100_v31  ;;  %v1165_v41 = vadd.f32 %v1164_v61, %v6033_v23 }
 0x34d   :  { %v1167_v4 = vmul.f32 0.5, %v1092_v53 }
 0x34e   :  { %v1168_v9 = vmul.f32 0.5, %v1094_v30 }
 0x34f   :  { %5255 = vtanh.f32 %v1167_v4 }
 0x350   :  { %5257 = vtanh.f32 %v1168_v9  ;;  %v7101_v9 = vld [vmem:[#allocation70_spill] sm:$0xff] }
 0x359   :  { %v5256_v38 = vpop.eup %5255 }
 0x35a   :  { %v1171_v36 = vmul.f32 0.5, %v5256_v38  ;;  %v5258_v29 = vpop.eup %5257 }
 0x35b   :  { %v1172_v12 = vmul.f32 0.5, %v5258_v29 }
 0x35c   :  { %v1173_v25 = vadd.f32 0.5, %v1171_v36 }
 0x35d   :  { %v1174_v31 = vadd.f32 0.5, %v1172_v12 }
 0x35e   :  { %v1175_v50 = vmul.f32 %v1173_v25, %v1165_v41 }
 0x360   :  { %v1176_v40 = vadd.f32 %v1175_v50, %v1163_v47 }
 0x362   :  { %5259 = vtanh.f32 %v1176_v40 }
 0x36a   :  { %v1247_v5 = vpop.f32.mrb[4].mxu0  ;;  %v1318_v43 = vpop.f32.mrb[16].mxu1 }
 0x36b   :  { %v5196_v4 = vadd.f32 %v1247_v5, %v7045_v63  ;;  %v1249_v53 = vpop.f32.mrb[5].mxu0  ;;  %v3477_v0 = vpop.f32.mrb[17].mxu1  ;;  %v1332_v41 = vadd.f32 %v5911_v58, %v1318_v43  ;;  %v7102_v5 = vld [vmem:[#allocation67_spill] sm:$0xff]  ;;  %v7103_v43 = vld [vmem:[#allocation13_spill] sm:$0xff] }
 0x36c   :  { %v5260_v30 = vpop.eup %5259  ;;  %v5197_v29 = vadd.f32 %v1249_v53, %v7047_v10  ;;  %v7105_v53 = vld [vmem:[#allocation15_spill] sm:$0xff] }
 0x36d   :  { %v1324_v38 = vmul.f32 0.5, %v5196_v4  ;;  %v1178_v42 = vsub.f32 %v7101_v9, %v5260_v30 }
 0x36e   :  { %v1325_v40 = vmul.f32 0.5, %v5197_v29  ;;  %v7107_v29 = vld [vmem:[#allocation17_spill] sm:$0xff] }
 0x36f   :  { %5261 = vtanh.f32 %v1324_v38  ;;  %v1179_v36 = vmul.f32 %v1178_v42, %v1174_v31 }
 0x370   :  { %5263 = vtanh.f32 %v1325_v40  ;;  %v7108_v40 = vld [vmem:[#allocation18_spill] sm:$0xff] }
 0x371   :  { %v6161_v61 = vadd.f32 %v5260_v30, %v1179_v36  ;;  %v7106_v36 = vld [vmem:[#allocation16_spill] sm:$0xff] }
 0x373   :  { %1403 = vmatprep.mubr.f32.mxu0 %v6161_v61  ;;  %1474 = vmatprep.mubr.f32.mxu1 %v6161_v61 }
 0x379   :  { %v5262_v50 = vpop.eup %5261 }
 0x37a   :  { %v1328_v52 = vmul.f32 0.5, %v5262_v50  ;;  %v5264_v42 = vpop.eup %5263  ;;  %v7109_v50 = vld [vmem:[#allocation19_spill] sm:$0xff] }
 0x37b   :  { %v1329_v31 = vmul.f32 0.5, %v5264_v42  ;;  %v7116_v42 = vld [vmem:[#allocation26_spill] sm:$0xff] }
 0x37c   :  { %v1330_v25 = vadd.f32 0.5, %v1328_v52  ;;  %v7110_v52 = vld [vmem:[#allocation20_spill] sm:$0xff] }
 0x37d   :  { %v1331_v0 = vadd.f32 0.5, %v1329_v31  ;;  %v7117_v31 = vld [vmem:[#allocation27_spill] sm:$0xff] }
 0x37e   :  { %v1333_v47 = vmul.f32 %v1332_v41, %v1330_v25  ;;  %v7111_v25 = vld [vmem:[#allocation21_spill] sm:$0xff]  ;;  %v7112_v41 = vld [vmem:[#allocation22_spill] sm:$0xff] }
 0x380   :  { %v1334_v12 = vadd.f32 %v1333_v47, %v7102_v5  ;;  %v7113_v47 = vld [vmem:[#allocation23_spill] sm:$0xff]  ;;  %v7114_v5 = vld [vmem:[#allocation24_spill] sm:$0xff] }
 0x382   :  { %5265 = vtanh.f32 %v1334_v12  ;;  %v7115_v12 = vld [vmem:[#allocation25_spill] sm:$0xff] }
 0x38c   :  { %v5266_v4 = vpop.eup %5265 }
 0x38d   :  { %v1336_v30 = vsub.f32 %v6050_v18, %v5266_v4  ;;  %v7104_v18 = vld [vmem:[#allocation14_spill] sm:$0xff] }
 0x38f   :  { %v1337_v38 = vmul.f32 %v1336_v30, %v1331_v0  ;;  %v7119_v0 = vld [vmem:[#allocation29_spill] sm:$0xff]  ;;  %v7120_v30 = vld [vmem:[#allocation30_spill] sm:$0xff] }
 0x391   :  { %v6169_v9 = vadd.f32 %v5266_v4, %v1337_v38  ;;  %v7118_v4 = vld [vmem:[#allocation28_spill] sm:$0xff]  ;;  %v7121_v38 = vld [vmem:[#allocation31_spill] sm:$0xff] }
 0x393   :  { %1404 = vmatmul.mubr.f32.vlgmr.msra.gmra.mrb[20].mxu0 %v6169_v9  ;;  %1475 = vmatmul.mubr.f32.vlgmr.msra.gmra.mrb[18].mxu1 %v6169_v9 }
 0x394   :  { %4251 = vmatpush1.bf16.msra.mxu0 %v5546_v15  ;;  %4282 = vmatpush3.bf16.msra.mxu1 %v5569_v33 }
 0x395   :  { %4253 = vmatprep.subr.bf16.mxu0 %v5549_v16  ;;  %4283 = vmatprep.subr.bf16.mxu1 %v6982_v51 }
 0x396   :  { %1559 = vmatprep.mubr.f32.mxu0 %v6993_v60  ;;  %3510 = vmatprep.mubr.msk.f32.mxu1 %vm5439_vm1, %v6993_v60 }
 0x398   :  { %4255 = vmatpush1.bf16.msra.mxu0 %v5563_v24  ;;  %4285 = vmatpush3.bf16.msra.mxu1 %v5585_v44 }
 0x399   :  { %4257 = vmatprep.subr.bf16.mxu0 %v5566_v26  ;;  %4286 = vmatprep.subr.bf16.mxu1 %v6982_v51 }
 0x39c   :  { %4259 = vmatpush1.bf16.msra.mxu0 %v5576_v35  ;;  %4288 = vmatpush3.bf16.msra.mxu1 %v5601_v54 }
 0x39d   :  { %4261 = vmatprep.subr.bf16.mxu0 %v5579_v37  ;;  %4289 = vmatprep.subr.bf16.mxu1 %v6982_v51 }
 0x3a0   :  { %4263 = vmatpush1.bf16.msra.mxu0 %v5592_v46  ;;  %4291 = vmatpush3.bf16.msra.mxu1 %v5617_v1 }
 0x3a1   :  { %4265 = vmatprep.subr.bf16.mxu0 %v5595_v49  ;;  %4292 = vmatprep.subr.bf16.mxu1 %v6982_v51 }
 0x3a4   :  { %4267 = vmatpush1.bf16.msra.mxu0 %v5608_v56  ;;  %4294 = vmatpush3.bf16.msra.mxu1 %v5633_v11 }
 0x3a5   :  { %4269 = vmatprep.subr.bf16.mxu0 %v5611_v59  ;;  %4295 = vmatprep.subr.bf16.mxu1 %v6982_v51 }
 0x3a8   :  { %4271 = vmatpush1.bf16.msra.mxu0 %v5624_v3  ;;  %4297 = vmatpush3.bf16.msra.mxu1 %v5649_v22 }
 0x3a9   :  { %4273 = vmatprep.subr.bf16.mxu0 %v5627_v6  ;;  %4298 = vmatprep.subr.bf16.mxu1 %v6982_v51 }
 0x3ac   :  { %4275 = vmatpush1.bf16.msra.mxu0 %v5640_v14  ;;  %4300 = vmatpush3.bf16.msra.mxu1 %v5665_v39 }
 0x3ad   :  { %4277 = vmatprep.subr.bf16.mxu0 %v5643_v19  ;;  %4301 = vmatprep.subr.bf16.mxu1 %v6982_v51 }
 0x3b0   :  { %4279 = vmatpush1.bf16.msra.mxu0 %v5656_v28  ;;  %4303 = vmatpush3.bf16.msra.mxu1 %v5680_v55 }
 0x3b1   :  { %4305 = vmatprep.subr.bf16.mxu0 %v5661_v34  ;;  %4369 = vmatprep.subr.bf16.mxu1 %v5683_v57 }
 0x3b3   :  { %1560 = vmatmul.mubr.f32.vlgmr.msra.gmra.mrb[6].mxu0 %v6169_v9  ;;  %3511 = vmatmul.mubr.f32.vlgmr.msra.gmra.mrb[20].mxu1 %v6169_v9 }
 0x3b4   :  { %4307 = vmatpush1.bf16.msra.mxu0 %v5669_v45  ;;  %4371 = vmatpush1.bf16.msra.mxu1 %v5693_v7 }
 0x3b5   :  { %4309 = vmatprep.subr.bf16.mxu0 %v5673_v48  ;;  %4373 = vmatprep.subr.bf16.mxu1 %v5696_v8 }
 0x3b8   :  { %4311 = vmatpush1.bf16.msra.mxu0 %v5686_v62  ;;  %4375 = vmatpush1.bf16.msra.mxu1 %v5704_v20 }
 0x3b9   :  { %4313 = vmatprep.subr.bf16.mxu0 %v5689_v2  ;;  %4377 = vmatprep.subr.bf16.mxu1 %v5708_v21 }
 0x3bc   :  { %4315 = vmatpush1.bf16.msra.mxu0 %v5699_v13  ;;  %4379 = vmatpush1.bf16.msra.mxu1 %v5712_v27 }
 0x3bd   :  { %4317 = vmatprep.subr.bf16.mxu0 %v5716_v32  ;;  %4381 = vmatprep.subr.bf16.mxu1 %v7103_v43 }
 0x3c0   :  { %4319 = vmatpush1.bf16.msra.mxu0 %v7104_v18  ;;  %4383 = vmatpush1.bf16.msra.mxu1 %v7105_v53 }
 0x3c1   :  { %4321 = vmatprep.subr.bf16.mxu0 %v7106_v36  ;;  %4385 = vmatprep.subr.bf16.mxu1 %v7107_v29 }
 0x3c4   :  { %4323 = vmatpush1.bf16.msra.mxu0 %v7108_v40  ;;  %4387 = vmatpush1.bf16.msra.mxu1 %v7109_v50 }
 0x3c5   :  { %4325 = vmatprep.subr.bf16.mxu0 %v7110_v52  ;;  %4389 = vmatprep.subr.bf16.mxu1 %v7111_v25  ;;  %v7122_v25 = vld [vmem:[#allocation32_spill] sm:$0xff] }
 0x3c8   :  { %4327 = vmatpush1.bf16.msra.mxu0 %v7112_v41  ;;  %4391 = vmatpush1.bf16.msra.mxu1 %v7113_v47  ;;  %v7123_v41 = vld [vmem:[#allocation33_spill] sm:$0xff]  ;;  %v7124_v47 = vld [vmem:[#allocation34_spill] sm:$0xff] }
 0x3c9   :  { %4329 = vmatprep.subr.bf16.mxu0 %v7114_v5  ;;  %4393 = vmatprep.subr.bf16.mxu1 %v7115_v12  ;;  %v7125_v5 = vld [vmem:[#allocation35_spill] sm:$0xff]  ;;  %v7126_v12 = vld [vmem:[#allocation36_spill] sm:$0xff] }
 0x3cc   :  { %4331 = vmatpush1.bf16.msra.mxu0 %v7116_v42  ;;  %4395 = vmatpush1.bf16.msra.mxu1 %v7117_v31  ;;  %v7127_v42 = vld [vmem:[#allocation37_spill] sm:$0xff]  ;;  %v7128_v31 = vld [vmem:[#allocation38_spill] sm:$0xff] }
 0x3cd   :  { %4333 = vmatprep.subr.bf16.mxu0 %v7118_v4  ;;  %4397 = vmatprep.subr.bf16.mxu1 %v7119_v0  ;;  %v7129_v4 = vld [vmem:[#allocation39_spill] sm:$0xff]  ;;  %v7130_v0 = vld [vmem:[#allocation40_spill] sm:$0xff] }
 0x3d0   :  { %4335 = vmatpush1.bf16.msra.mxu0 %v7120_v30  ;;  %4399 = vmatpush1.bf16.msra.mxu1 %v7121_v38  ;;  %v7131_v30 = vld [vmem:[#allocation41_spill] sm:$0xff]  ;;  %v7132_v38 = vld [vmem:[#allocation42_spill] sm:$0xff] }
 0x3d1   :  { %4337 = vmatprep.subr.bf16.mxu0 %v7122_v25  ;;  %4401 = vmatprep.subr.bf16.mxu1 %v7123_v41  ;;  %v7133_v25 = vld [vmem:[#allocation43_spill] sm:$0xff]  ;;  %v7134_v41 = vld [vmem:[#allocation44_spill] sm:$0xff] }
 0x3d4   :  { %4339 = vmatpush1.bf16.msra.mxu0 %v7124_v47  ;;  %4403 = vmatpush1.bf16.msra.mxu1 %v7125_v5  ;;  %v7135_v47 = vld [vmem:[#allocation45_spill] sm:$0xff]  ;;  %v7136_v5 = vld [vmem:[#allocation46_spill] sm:$0xff] }
 0x3d5   :  { %4341 = vmatprep.subr.bf16.mxu0 %v7126_v12  ;;  %4405 = vmatprep.subr.bf16.mxu1 %v7127_v42  ;;  %v7137_v12 = vld [vmem:[#allocation47_spill] sm:$0xff]  ;;  %v7138_v42 = vld [vmem:[#allocation48_spill] sm:$0xff] }
 0x3d8   :  { %4343 = vmatpush1.bf16.msra.mxu0 %v7128_v31  ;;  %4407 = vmatpush1.bf16.msra.mxu1 %v7129_v4  ;;  %v7139_v31 = vld [vmem:[#allocation49_spill] sm:$0xff]  ;;  %v7140_v4 = vld [vmem:[#allocation50_spill] sm:$0xff] }
 0x3d9   :  { %4345 = vmatprep.subr.bf16.mxu0 %v7130_v0  ;;  %4409 = vmatprep.subr.bf16.mxu1 %v7131_v30  ;;  %v7141_v0 = vld [vmem:[#allocation51_spill] sm:$0xff]  ;;  %v7142_v30 = vld [vmem:[#allocation52_spill] sm:$0xff] }
 0x3dc   :  { %4347 = vmatpush1.bf16.msra.mxu0 %v7132_v38  ;;  %4411 = vmatpush1.bf16.msra.mxu1 %v7133_v25  ;;  %v7143_v38 = vld [vmem:[#allocation53_spill] sm:$0xff]  ;;  %v7144_v25 = vld [vmem:[#allocation54_spill] sm:$0xff] }
 0x3dd   :  { %4349 = vmatprep.subr.bf16.mxu0 %v7134_v41  ;;  %4413 = vmatprep.subr.bf16.mxu1 %v7135_v47  ;;  %v7145_v41 = vld [vmem:[#allocation55_spill] sm:$0xff]  ;;  %v7146_v47 = vld [vmem:[#allocation56_spill] sm:$0xff] }
 0x3e0   :  { %4351 = vmatpush1.bf16.msra.mxu0 %v7136_v5  ;;  %4415 = vmatpush1.bf16.msra.mxu1 %v7137_v12  ;;  %v7147_v5 = vld [vmem:[#allocation57_spill] sm:$0xff]  ;;  %v7148_v12 = vld [vmem:[#allocation58_spill] sm:$0xff] }
 0x3e1   :  { %4353 = vmatprep.subr.bf16.mxu0 %v7138_v42  ;;  %4417 = vmatprep.subr.bf16.mxu1 %v7139_v31  ;;  %v7149_v42 = vld [vmem:[#allocation59_spill] sm:$0xff]  ;;  %v7150_v31 = vld [vmem:[#allocation60_spill] sm:$0xff] }
 0x3e4   :  { %4355 = vmatpush1.bf16.msra.mxu0 %v7140_v4  ;;  %4419 = vmatpush1.bf16.msra.mxu1 %v7141_v0  ;;  %v7151_v4 = vld [vmem:[#allocation61_spill] sm:$0xff]  ;;  %v7152_v0 = vld [vmem:[#allocation62_spill] sm:$0xff] }
 0x3e5   :  { %4357 = vmatprep.subr.bf16.mxu0 %v7142_v30  ;;  %4421 = vmatprep.subr.bf16.mxu1 %v7143_v38  ;;  %v7153_v30 = vld [vmem:[#allocation63_spill] sm:$0xff]  ;;  %v7154_v38 = vld [vmem:[#allocation12_spill] sm:$0xff] }
 0x3e8   :  { %4359 = vmatpush1.bf16.msra.mxu0 %v7144_v25  ;;  %4423 = vmatpush1.bf16.msra.mxu1 %v7145_v41  ;;  %v7155_v25 = vld [vmem:[#allocation64_spill] sm:$0xff] }
 0x3e9   :  { %4361 = vmatprep.subr.bf16.mxu0 %v7146_v47  ;;  %4425 = vmatprep.subr.bf16.mxu1 %v7147_v5 }
 0x3ec   :  { %4363 = vmatpush1.bf16.msra.mxu0 %v7148_v12  ;;  %4427 = vmatpush1.bf16.msra.mxu1 %v7149_v42  ;;  %v7156_v42 = vld [vmem:[#allocation74_spill] sm:$0xff] }
 0x3ed   :  { %4365 = vmatprep.subr.bf16.mxu0 %v7150_v31  ;;  %4429 = vmatprep.subr.bf16.mxu1 %v7151_v4 }
 0x3f0   :  { %4367 = vmatpush1.bf16.msra.mxu0 %v7152_v0  ;;  %4431 = vmatpush1.bf16.msra.mxu1 %v7153_v30 }
 0x3f1   :  { %4433 = vmatprep.subr.bf16.mxu0 %v7154_v38  ;;  %4464 = vmatprep.subr.bf16.mxu1 %v6982_v51 }
 0x466   :  { %v1405_v41 = vpop.f32.mrb[20].mxu0  ;;  %v1476_v47 = vpop.f32.mrb[18].mxu1 }
 0x467   :  { %v1406_v5 = vadd.f32 %v1405_v41, %v7155_v25  ;;  %v1407_v52 = vpop.f32.mrb[21].mxu0  ;;  %v1478_v12 = vpop.f32.mrb[19].mxu1  ;;  %v1477_v38 = vadd.f32 %v1476_v47, %v6037_v17 }
 0x468   :  { %v1408_v31 = vadd.f32 %v1407_v52, %v7156_v42  ;;  %v1479_v30 = vadd.f32 %v1478_v12, %v6033_v23 }
 0x469   :  { %v1481_v50 = vmul.f32 0.5, %v1406_v5 }
 0x46a   :  { %v1482_v40 = vmul.f32 0.5, %v1408_v31 }
 0x46b   :  { %5267 = vtanh.f32 %v1481_v50 }
 0x46c   :  { %5269 = vtanh.f32 %v1482_v40 }
 0x475   :  { %v5268_v4 = vpop.eup %5267 }
 0x476   :  { %v1485_v29 = vmul.f32 0.5, %v5268_v4  ;;  %v5270_v18 = vpop.eup %5269 }
 0x477   :  { %v1486_v41 = vmul.f32 0.5, %v5270_v18 }
 0x478   :  { %v1487_v0 = vadd.f32 0.5, %v1485_v29 }
 0x479   :  { %v1488_v42 = vadd.f32 0.5, %v1486_v41 }
 0x47a   :  { %v1489_v36 = vmul.f32 %v1487_v0, %v1479_v30 }
 0x47c   :  { %v1490_v53 = vadd.f32 %v1489_v36, %v1477_v38  ;;  %v7157_v38 = vld [vmem:[#allocation66_spill] sm:$0xff] }
 0x47e   :  { %5271 = vtanh.f32 %v1490_v53 }
 0x486   :  { %v1561_v25 = vpop.f32.mrb[6].mxu0  ;;  %v1632_v43 = vpop.f32.mrb[20].mxu1 }
 0x487   :  { %v5198_v50 = vadd.f32 %v1561_v25, %v7045_v63  ;;  %v1563_v5 = vpop.f32.mrb[7].mxu0  ;;  %v3512_v52 = vpop.f32.mrb[21].mxu1  ;;  %v1646_v0 = vadd.f32 %v5911_v58, %v1632_v43  ;;  %v7158_v58 = vld [vmem:[#allocation13_spill] sm:$0xff]  ;;  %v7160_v43 = vld [vmem:[#allocation15_spill] sm:$0xff] }
 0x488   :  { %v5272_v31 = vpop.eup %5271  ;;  %v5199_v18 = vadd.f32 %v1563_v5, %v7047_v10  ;;  %v7161_v5 = vld [vmem:[#allocation16_spill] sm:$0xff] }
 0x489   :  { %v1638_v4 = vmul.f32 0.5, %v5198_v50  ;;  %v1492_v40 = vsub.f32 %v6161_v61, %v5272_v31 }
 0x48a   :  { %v1639_v53 = vmul.f32 0.5, %v5199_v18  ;;  %v7163_v18 = vld [vmem:[#allocation18_spill] sm:$0xff] }
 0x48b   :  { %5273 = vtanh.f32 %v1638_v4  ;;  %v1493_v29 = vmul.f32 %v1492_v40, %v1488_v42 }
 0x48c   :  { %5275 = vtanh.f32 %v1639_v53  ;;  %v7164_v53 = vld [vmem:[#allocation19_spill] sm:$0xff] }
 0x48d   :  { %v6280_v12 = vadd.f32 %v5272_v31, %v1493_v29  ;;  %v7162_v29 = vld [vmem:[#allocation17_spill] sm:$0xff] }
 0x48f   :  { %1717 = vmatprep.mubr.f32.mxu0 %v6280_v12  ;;  %1788 = vmatprep.mubr.f32.mxu1 %v6280_v12 }
 0x495   :  { %v5274_v36 = vpop.eup %5273 }
 0x496   :  { %v1642_v25 = vmul.f32 0.5, %v5274_v36  ;;  %v5276_v42 = vpop.eup %5275  ;;  %v7165_v36 = vld [vmem:[#allocation20_spill] sm:$0xff] }
 0x497   :  { %v1643_v41 = vmul.f32 0.5, %v5276_v42  ;;  %v7172_v42 = vld [vmem:[#allocation27_spill] sm:$0xff] }
 0x498   :  { %v1644_v47 = vadd.f32 0.5, %v1642_v25  ;;  %v7166_v25 = vld [vmem:[#allocation21_spill] sm:$0xff] }
 0x499   :  { %v1645_v52 = vadd.f32 0.5, %v1643_v41  ;;  %v7173_v41 = vld [vmem:[#allocation28_spill] sm:$0xff] }
 0x49a   :  { %v1647_v30 = vmul.f32 %v1646_v0, %v1644_v47  ;;  %v7167_v47 = vld [vmem:[#allocation22_spill] sm:$0xff]  ;;  %v7168_v0 = vld [vmem:[#allocation23_spill] sm:$0xff] }
 0x49c   :  { %v1648_v61 = vadd.f32 %v1647_v30, %v7157_v38  ;;  %v7169_v30 = vld [vmem:[#allocation24_spill] sm:$0xff]  ;;  %v7170_v38 = vld [vmem:[#allocation25_spill] sm:$0xff] }
 0x49e   :  { %5277 = vtanh.f32 %v1648_v61  ;;  %v7171_v61 = vld [vmem:[#allocation26_spill] sm:$0xff] }
 0x4a8   :  { %v5278_v50 = vpop.eup %5277 }
 0x4a9   :  { %v1650_v31 = vsub.f32 %v6169_v9, %v5278_v50  ;;  %v7159_v9 = vld [vmem:[#allocation14_spill] sm:$0xff] }
 0x4ab   :  { %v1651_v4 = vmul.f32 %v1650_v31, %v1645_v52  ;;  %v7175_v52 = vld [vmem:[#allocation30_spill] sm:$0xff]  ;;  %v7176_v31 = vld [vmem:[#allocation31_spill] sm:$0xff] }
 0x4ad   :  { %v6288_v40 = vadd.f32 %v5278_v50, %v1651_v4  ;;  %v7174_v50 = vld [vmem:[#allocation29_spill] sm:$0xff]  ;;  %v7177_v4 = vld [vmem:[#allocation32_spill] sm:$0xff] }
 0x4af   :  { %1718 = vmatmul.mubr.f32.vlgmr.msra.gmra.mrb[22].mxu0 %v6288_v40  ;;  %1789 = vmatmul.mubr.f32.vlgmr.msra.gmra.mrb[22].mxu1 %v6288_v40 }
 0x4b0   :  { %4435 = vmatpush1.bf16.msra.mxu0 %v5546_v15  ;;  %4466 = vmatpush3.bf16.msra.mxu1 %v5569_v33 }
 0x4b1   :  { %4437 = vmatprep.subr.bf16.mxu0 %v5549_v16  ;;  %4467 = vmatprep.subr.bf16.mxu1 %v6982_v51 }
 0x4b2   :  { %1873 = vmatprep.mubr.f32.mxu0 %v6993_v60  ;;  %3545 = vmatprep.mubr.msk.f32.mxu1 %vm5439_vm1, %v6993_v60 }
 0x4b4   :  { %4439 = vmatpush1.bf16.msra.mxu0 %v5563_v24  ;;  %4469 = vmatpush3.bf16.msra.mxu1 %v5585_v44 }
 0x4b5   :  { %4441 = vmatprep.subr.bf16.mxu0 %v5566_v26  ;;  %4470 = vmatprep.subr.bf16.mxu1 %v6982_v51 }
 0x4b8   :  { %4443 = vmatpush1.bf16.msra.mxu0 %v5576_v35  ;;  %4472 = vmatpush3.bf16.msra.mxu1 %v5601_v54 }
 0x4b9   :  { %4445 = vmatprep.subr.bf16.mxu0 %v5579_v37  ;;  %4473 = vmatprep.subr.bf16.mxu1 %v6982_v51 }
 0x4bc   :  { %4447 = vmatpush1.bf16.msra.mxu0 %v5592_v46  ;;  %4475 = vmatpush3.bf16.msra.mxu1 %v5617_v1 }
 0x4bd   :  { %4449 = vmatprep.subr.bf16.mxu0 %v5595_v49  ;;  %4476 = vmatprep.subr.bf16.mxu1 %v6982_v51 }
 0x4c0   :  { %4451 = vmatpush1.bf16.msra.mxu0 %v5608_v56  ;;  %4478 = vmatpush3.bf16.msra.mxu1 %v5633_v11 }
 0x4c1   :  { %4453 = vmatprep.subr.bf16.mxu0 %v5611_v59  ;;  %4479 = vmatprep.subr.bf16.mxu1 %v6982_v51 }
 0x4c4   :  { %4455 = vmatpush1.bf16.msra.mxu0 %v5624_v3  ;;  %4481 = vmatpush3.bf16.msra.mxu1 %v5649_v22 }
 0x4c5   :  { %4457 = vmatprep.subr.bf16.mxu0 %v5627_v6  ;;  %4482 = vmatprep.subr.bf16.mxu1 %v6982_v51 }
 0x4c8   :  { %4459 = vmatpush1.bf16.msra.mxu0 %v5640_v14  ;;  %4484 = vmatpush3.bf16.msra.mxu1 %v5665_v39 }
 0x4c9   :  { %4461 = vmatprep.subr.bf16.mxu0 %v5643_v19  ;;  %4485 = vmatprep.subr.bf16.mxu1 %v6982_v51 }
 0x4cc   :  { %4463 = vmatpush1.bf16.msra.mxu0 %v5656_v28  ;;  %4487 = vmatpush3.bf16.msra.mxu1 %v5680_v55 }
 0x4cd   :  { %4489 = vmatprep.subr.bf16.mxu0 %v5661_v34  ;;  %4553 = vmatprep.subr.bf16.mxu1 %v5683_v57 }
 0x4cf   :  { %1874 = vmatmul.mubr.f32.vlgmr.msra.gmra.mrb[8].mxu0 %v6288_v40  ;;  %3546 = vmatmul.mubr.f32.vlgmr.msra.gmra.mrb[24].mxu1 %v6288_v40 }
 0x4d0   :  { %4491 = vmatpush1.bf16.msra.mxu0 %v5669_v45  ;;  %4555 = vmatpush1.bf16.msra.mxu1 %v5693_v7 }
 0x4d1   :  { %4493 = vmatprep.subr.bf16.mxu0 %v5673_v48  ;;  %4557 = vmatprep.subr.bf16.mxu1 %v5696_v8 }
 0x4d4   :  { %4495 = vmatpush1.bf16.msra.mxu0 %v5686_v62  ;;  %4559 = vmatpush1.bf16.msra.mxu1 %v5704_v20 }
 0x4d5   :  { %4497 = vmatprep.subr.bf16.mxu0 %v5689_v2  ;;  %4561 = vmatprep.subr.bf16.mxu1 %v5708_v21 }
 0x4d8   :  { %4499 = vmatpush1.bf16.msra.mxu0 %v5699_v13  ;;  %4563 = vmatpush1.bf16.msra.mxu1 %v5712_v27 }
 0x4d9   :  { %4501 = vmatprep.subr.bf16.mxu0 %v5716_v32  ;;  %4565 = vmatprep.subr.bf16.mxu1 %v7158_v58 }
 0x4dc   :  { %4503 = vmatpush1.bf16.msra.mxu0 %v7159_v9  ;;  %4567 = vmatpush1.bf16.msra.mxu1 %v7160_v43 }
 0x4dd   :  { %4505 = vmatprep.subr.bf16.mxu0 %v7161_v5  ;;  %4569 = vmatprep.subr.bf16.mxu1 %v7162_v29 }
 0x4e0   :  { %4507 = vmatpush1.bf16.msra.mxu0 %v7163_v18  ;;  %4571 = vmatpush1.bf16.msra.mxu1 %v7164_v53 }
 0x4e1   :  { %4509 = vmatprep.subr.bf16.mxu0 %v7165_v36  ;;  %4573 = vmatprep.subr.bf16.mxu1 %v7166_v25 }
 0x4e4   :  { %4511 = vmatpush1.bf16.msra.mxu0 %v7167_v47  ;;  %4575 = vmatpush1.bf16.msra.mxu1 %v7168_v0  ;;  %v7178_v47 = vld [vmem:[#allocation33_spill] sm:$0xff]  ;;  %v7179_v0 = vld [vmem:[#allocation34_spill] sm:$0xff] }
 0x4e5   :  { %4513 = vmatprep.subr.bf16.mxu0 %v7169_v30  ;;  %4577 = vmatprep.subr.bf16.mxu1 %v7170_v38  ;;  %v7180_v30 = vld [vmem:[#allocation35_spill] sm:$0xff]  ;;  %v7181_v38 = vld [vmem:[#allocation36_spill] sm:$0xff] }
 0x4e8   :  { %4515 = vmatpush1.bf16.msra.mxu0 %v7171_v61  ;;  %4579 = vmatpush1.bf16.msra.mxu1 %v7172_v42  ;;  %v7182_v61 = vld [vmem:[#allocation37_spill] sm:$0xff]  ;;  %v7183_v42 = vld [vmem:[#allocation38_spill] sm:$0xff] }
 0x4e9   :  { %4517 = vmatprep.subr.bf16.mxu0 %v7173_v41  ;;  %4581 = vmatprep.subr.bf16.mxu1 %v7174_v50  ;;  %v7184_v41 = vld [vmem:[#allocation39_spill] sm:$0xff]  ;;  %v7185_v50 = vld [vmem:[#allocation40_spill] sm:$0xff] }
 0x4ec   :  { %4519 = vmatpush1.bf16.msra.mxu0 %v7175_v52  ;;  %4583 = vmatpush1.bf16.msra.mxu1 %v7176_v31  ;;  %v7186_v52 = vld [vmem:[#allocation41_spill] sm:$0xff]  ;;  %v7187_v31 = vld [vmem:[#allocation42_spill] sm:$0xff] }
 0x4ed   :  { %4521 = vmatprep.subr.bf16.mxu0 %v7177_v4  ;;  %4585 = vmatprep.subr.bf16.mxu1 %v7178_v47  ;;  %v7188_v4 = vld [vmem:[#allocation43_spill] sm:$0xff]  ;;  %v7189_v47 = vld [vmem:[#allocation44_spill] sm:$0xff] }
 0x4f0   :  { %4523 = vmatpush1.bf16.msra.mxu0 %v7179_v0  ;;  %4587 = vmatpush1.bf16.msra.mxu1 %v7180_v30  ;;  %v7190_v0 = vld [vmem:[#allocation45_spill] sm:$0xff]  ;;  %v7191_v30 = vld [vmem:[#allocation46_spill] sm:$0xff] }
 0x4f1   :  { %4525 = vmatprep.subr.bf16.mxu0 %v7181_v38  ;;  %4589 = vmatprep.subr.bf16.mxu1 %v7182_v61  ;;  %v7192_v38 = vld [vmem:[#allocation47_spill] sm:$0xff]  ;;  %v7193_v61 = vld [vmem:[#allocation48_spill] sm:$0xff] }
 0x4f4   :  { %4527 = vmatpush1.bf16.msra.mxu0 %v7183_v42  ;;  %4591 = vmatpush1.bf16.msra.mxu1 %v7184_v41  ;;  %v7194_v42 = vld [vmem:[#allocation49_spill] sm:$0xff]  ;;  %v7195_v41 = vld [vmem:[#allocation50_spill] sm:$0xff] }
 0x4f5   :  { %4529 = vmatprep.subr.bf16.mxu0 %v7185_v50  ;;  %4593 = vmatprep.subr.bf16.mxu1 %v7186_v52  ;;  %v7196_v50 = vld [vmem:[#allocation51_spill] sm:$0xff]  ;;  %v7197_v52 = vld [vmem:[#allocation52_spill] sm:$0xff] }
 0x4f8   :  { %4531 = vmatpush1.bf16.msra.mxu0 %v7187_v31  ;;  %4595 = vmatpush1.bf16.msra.mxu1 %v7188_v4  ;;  %v7198_v31 = vld [vmem:[#allocation53_spill] sm:$0xff]  ;;  %v7199_v4 = vld [vmem:[#allocation54_spill] sm:$0xff] }
 0x4f9   :  { %4533 = vmatprep.subr.bf16.mxu0 %v7189_v47  ;;  %4597 = vmatprep.subr.bf16.mxu1 %v7190_v0  ;;  %v7200_v47 = vld [vmem:[#allocation55_spill] sm:$0xff]  ;;  %v7201_v0 = vld [vmem:[#allocation56_spill] sm:$0xff] }
 0x4fc   :  { %4535 = vmatpush1.bf16.msra.mxu0 %v7191_v30  ;;  %4599 = vmatpush1.bf16.msra.mxu1 %v7192_v38  ;;  %v7202_v30 = vld [vmem:[#allocation57_spill] sm:$0xff]  ;;  %v7203_v38 = vld [vmem:[#allocation58_spill] sm:$0xff] }
 0x4fd   :  { %4537 = vmatprep.subr.bf16.mxu0 %v7193_v61  ;;  %4601 = vmatprep.subr.bf16.mxu1 %v7194_v42  ;;  %v7204_v61 = vld [vmem:[#allocation59_spill] sm:$0xff]  ;;  %v7205_v42 = vld [vmem:[#allocation60_spill] sm:$0xff] }
 0x500   :  { %4539 = vmatpush1.bf16.msra.mxu0 %v7195_v41  ;;  %4603 = vmatpush1.bf16.msra.mxu1 %v7196_v50  ;;  %v7206_v41 = vld [vmem:[#allocation61_spill] sm:$0xff]  ;;  %v7207_v50 = vld [vmem:[#allocation62_spill] sm:$0xff] }
 0x501   :  { %4541 = vmatprep.subr.bf16.mxu0 %v7197_v52  ;;  %4605 = vmatprep.subr.bf16.mxu1 %v7198_v31  ;;  %v7208_v52 = vld [vmem:[#allocation63_spill] sm:$0xff]  ;;  %v7209_v31 = vld [vmem:[#allocation12_spill] sm:$0xff] }
 0x504   :  { %4543 = vmatpush1.bf16.msra.mxu0 %v7199_v4  ;;  %4607 = vmatpush1.bf16.msra.mxu1 %v7200_v47  ;;  %v7210_v4 = vld [vmem:[#allocation64_spill] sm:$0xff] }
 0x505   :  { %4545 = vmatprep.subr.bf16.mxu0 %v7201_v0  ;;  %4609 = vmatprep.subr.bf16.mxu1 %v7202_v30 }
 0x508   :  { %4547 = vmatpush1.bf16.msra.mxu0 %v7203_v38  ;;  %4611 = vmatpush1.bf16.msra.mxu1 %v7204_v61  ;;  %v7211_v61 = vld [vmem:[#allocation74_spill] sm:$0xff] }
 0x509   :  { %4549 = vmatprep.subr.bf16.mxu0 %v7205_v42  ;;  %4613 = vmatprep.subr.bf16.mxu1 %v7206_v41 }
 0x50c   :  { %4551 = vmatpush1.bf16.msra.mxu0 %v7207_v50  ;;  %4615 = vmatpush1.bf16.msra.mxu1 %v7208_v52 }
 0x50d   :  { %4617 = vmatprep.subr.bf16.mxu0 %v7209_v31  ;;  %4648 = vmatprep.subr.bf16.mxu1 %v6982_v51 }
 0x582   :  { %v1719_v47 = vpop.f32.mrb[22].mxu0  ;;  %v1790_v0 = vpop.f32.mrb[22].mxu1 }
 0x583   :  { %v1720_v30 = vadd.f32 %v1719_v47, %v7210_v4  ;;  %v1721_v25 = vpop.f32.mrb[23].mxu0  ;;  %v1792_v38 = vpop.f32.mrb[23].mxu1  ;;  %v1791_v31 = vadd.f32 %v1790_v0, %v6037_v17 }
 0x584   :  { %v1722_v42 = vadd.f32 %v1721_v25, %v7211_v61  ;;  %v1793_v52 = vadd.f32 %v1792_v38, %v6033_v23 }
 0x585   :  { %v1795_v36 = vmul.f32 0.5, %v1720_v30 }
 0x586   :  { %v1796_v53 = vmul.f32 0.5, %v1722_v42 }
 0x587   :  { %5279 = vtanh.f32 %v1795_v36 }
 0x588   :  { %5281 = vtanh.f32 %v1796_v53 }
 0x591   :  { %v5280_v41 = vpop.eup %5279 }
 0x592   :  { %v1799_v18 = vmul.f32 0.5, %v5280_v41  ;;  %v5282_v43 = vpop.eup %5281 }
 0x593   :  { %v1800_v47 = vmul.f32 0.5, %v5282_v43 }
 0x594   :  { %v1801_v50 = vadd.f32 0.5, %v1799_v18 }
 0x595   :  { %v1802_v61 = vadd.f32 0.5, %v1800_v47 }
 0x596   :  { %v1803_v29 = vmul.f32 %v1801_v50, %v1793_v52  ;;  %v6407_v52 = vld [vmem:[%s6801_s4] ss:$0 sm:$0xff] }
 0x598   :  { %v1804_v5 = vadd.f32 %v1803_v29, %v1791_v31  ;;  %v7212_v31 = vld [vmem:[#allocation69_spill] sm:$0xff] }
 0x59a   :  { %5283 = vtanh.f32 %v1804_v5 }
 0x5a2   :  { %v1875_v4 = vpop.f32.mrb[8].mxu0  ;;  %v1946_v9 = vpop.f32.mrb[24].mxu1 }
 0x5a3   :  { %v5200_v36 = vadd.f32 %v1875_v4, %v7045_v63  ;;  %v1877_v30 = vpop.f32.mrb[9].mxu0  ;;  %v3547_v25 = vpop.f32.mrb[25].mxu1 }
 0x5a4   :  { %v5284_v42 = vpop.eup %5283  ;;  %v5201_v43 = vadd.f32 %v1877_v30, %v7047_v10 }
 0x5a5   :  { %v1952_v41 = vmul.f32 0.5, %v5200_v36  ;;  %v1806_v53 = vsub.f32 %v6280_v12, %v5284_v42  ;;  %v1960_v12 = vadd.f32 %v6407_v52, %v1946_v9  ;;  %v7214_v9 = vld [vmem:[#allocation15_spill] sm:$0xff] }
 0x5a6   :  { %v1953_v5 = vmul.f32 0.5, %v5201_v43  ;;  %v7216_v43 = vld [vmem:[#allocation17_spill] sm:$0xff] }
 0x5a7   :  { %5285 = vtanh.f32 %v1952_v41  ;;  %v1807_v18 = vmul.f32 %v1806_v53, %v1802_v61 }
 0x5a8   :  { %5287 = vtanh.f32 %v1953_v5  ;;  %v7217_v5 = vld [vmem:[#allocation18_spill] sm:$0xff] }
 0x5a9   :  { %v6399_v38 = vadd.f32 %v5284_v42, %v1807_v18  ;;  %v7215_v18 = vld [vmem:[#allocation16_spill] sm:$0xff] }
 0x5ab   :  { %2031 = vmatprep.mubr.f32.mxu0 %v6399_v38  ;;  %2102 = vmatprep.mubr.f32.mxu1 %v6399_v38 }
 0x5b1   :  { %v5286_v29 = vpop.eup %5285 }
 0x5b2   :  { %v1956_v0 = vmul.f32 0.5, %v5286_v29  ;;  %v5288_v47 = vpop.eup %5287  ;;  %v7218_v29 = vld [vmem:[#allocation19_spill] sm:$0xff] }
 0x5b3   :  { %v1957_v36 = vmul.f32 0.5, %v5288_v47  ;;  %v7225_v47 = vld [vmem:[#allocation26_spill] sm:$0xff] }
 0x5b4   :  { %v1958_v50 = vadd.f32 0.5, %v1956_v0  ;;  %v7219_v0 = vld [vmem:[#allocation20_spill] sm:$0xff] }
 0x5b5   :  { %v1959_v30 = vadd.f32 0.5, %v1957_v36  ;;  %v7226_v36 = vld [vmem:[#allocation27_spill] sm:$0xff] }
 0x5b6   :  { %v1961_v61 = vmul.f32 %v1960_v12, %v1958_v50  ;;  %v7220_v50 = vld [vmem:[#allocation21_spill] sm:$0xff]  ;;  %v7221_v12 = vld [vmem:[#allocation22_spill] sm:$0xff] }
 0x5b8   :  { %v1962_v4 = vadd.f32 %v1961_v61, %v7212_v31  ;;  %v7222_v61 = vld [vmem:[#allocation23_spill] sm:$0xff]  ;;  %v7223_v31 = vld [vmem:[#allocation24_spill] sm:$0xff] }
 0x5ba   :  { %5289 = vtanh.f32 %v1962_v4  ;;  %v7224_v4 = vld [vmem:[#allocation25_spill] sm:$0xff] }
 0x5c4   :  { %v5290_v25 = vpop.eup %5289 }
 0x5c5   :  { %v1964_v42 = vsub.f32 %v6288_v40, %v5290_v25  ;;  %v7213_v40 = vld [vmem:[#allocation14_spill] sm:$0xff] }
 0x5c7   :  { %v1965_v41 = vmul.f32 %v1964_v42, %v1959_v30  ;;  %v7228_v30 = vld [vmem:[#allocation29_spill] sm:$0xff]  ;;  %v7229_v42 = vld [vmem:[#allocation30_spill] sm:$0xff] }
 0x5c9   :  { %v6412_v53 = vadd.f32 %v5290_v25, %v1965_v41  ;;  %v7227_v25 = vld [vmem:[#allocation28_spill] sm:$0xff]  ;;  %v7230_v41 = vld [vmem:[#allocation31_spill] sm:$0xff] }
 0x5cb   :  { %2032 = vmatmul.mubr.f32.vlgmr.msra.gmra.mrb[24].mxu0 %v6412_v53  ;;  %2103 = vmatmul.mubr.f32.vlgmr.msra.gmra.mrb[26].mxu1 %v6412_v53 }
 0x5cc   :  { %4619 = vmatpush1.bf16.msra.mxu0 %v5546_v15  ;;  %4650 = vmatpush3.bf16.msra.mxu1 %v5569_v33 }
 0x5cd   :  { %4621 = vmatprep.subr.bf16.mxu0 %v5549_v16  ;;  %4651 = vmatprep.subr.bf16.mxu1 %v6982_v51 }
 0x5ce   :  { %2187 = vmatprep.mubr.f32.mxu0 %v6993_v60  ;;  %3580 = vmatprep.mubr.msk.f32.mxu1 %vm5439_vm1, %v6993_v60 }
 0x5d0   :  { %4623 = vmatpush1.bf16.msra.mxu0 %v5563_v24  ;;  %4653 = vmatpush3.bf16.msra.mxu1 %v5585_v44 }
 0x5d1   :  { %4625 = vmatprep.subr.bf16.mxu0 %v5566_v26  ;;  %4654 = vmatprep.subr.bf16.mxu1 %v6982_v51 }
 0x5d4   :  { %4627 = vmatpush1.bf16.msra.mxu0 %v5576_v35  ;;  %4656 = vmatpush3.bf16.msra.mxu1 %v5601_v54 }
 0x5d5   :  { %4629 = vmatprep.subr.bf16.mxu0 %v5579_v37  ;;  %4657 = vmatprep.subr.bf16.mxu1 %v6982_v51 }
 0x5d8   :  { %4631 = vmatpush1.bf16.msra.mxu0 %v5592_v46  ;;  %4659 = vmatpush3.bf16.msra.mxu1 %v5617_v1 }
 0x5d9   :  { %4633 = vmatprep.subr.bf16.mxu0 %v5595_v49  ;;  %4660 = vmatprep.subr.bf16.mxu1 %v6982_v51 }
 0x5dc   :  { %4635 = vmatpush1.bf16.msra.mxu0 %v5608_v56  ;;  %4662 = vmatpush3.bf16.msra.mxu1 %v5633_v11 }
 0x5dd   :  { %4637 = vmatprep.subr.bf16.mxu0 %v5611_v59  ;;  %4663 = vmatprep.subr.bf16.mxu1 %v6982_v51 }
 0x5e0   :  { %4639 = vmatpush1.bf16.msra.mxu0 %v5624_v3  ;;  %4665 = vmatpush3.bf16.msra.mxu1 %v5649_v22 }
 0x5e1   :  { %4641 = vmatprep.subr.bf16.mxu0 %v5627_v6  ;;  %4666 = vmatprep.subr.bf16.mxu1 %v6982_v51 }
 0x5e4   :  { %4643 = vmatpush1.bf16.msra.mxu0 %v5640_v14  ;;  %4668 = vmatpush3.bf16.msra.mxu1 %v5665_v39 }
 0x5e5   :  { %4645 = vmatprep.subr.bf16.mxu0 %v5643_v19  ;;  %4669 = vmatprep.subr.bf16.mxu1 %v6982_v51 }
 0x5e8   :  { %4647 = vmatpush1.bf16.msra.mxu0 %v5656_v28  ;;  %4671 = vmatpush3.bf16.msra.mxu1 %v5680_v55 }
 0x5e9   :  { %4673 = vmatprep.subr.bf16.mxu0 %v5661_v34  ;;  %4737 = vmatprep.subr.bf16.mxu1 %v5683_v57 }
 0x5eb   :  { %2188 = vmatmul.mubr.f32.vlgmr.msra.gmra.mrb[10].mxu0 %v6412_v53  ;;  %3581 = vmatmul.mubr.f32.vlgmr.msra.gmra.mrb[28].mxu1 %v6412_v53 }
 0x5ec   :  { %4675 = vmatpush1.bf16.msra.mxu0 %v5669_v45  ;;  %4739 = vmatpush1.bf16.msra.mxu1 %v5693_v7 }
 0x5ed   :  { %4677 = vmatprep.subr.bf16.mxu0 %v5673_v48  ;;  %4741 = vmatprep.subr.bf16.mxu1 %v5696_v8 }
 0x5f0   :  { %4679 = vmatpush1.bf16.msra.mxu0 %v5686_v62  ;;  %4743 = vmatpush1.bf16.msra.mxu1 %v5704_v20 }
 0x5f1   :  { %4681 = vmatprep.subr.bf16.mxu0 %v5689_v2  ;;  %4745 = vmatprep.subr.bf16.mxu1 %v5708_v21 }
 0x5f4   :  { %4683 = vmatpush1.bf16.msra.mxu0 %v5699_v13  ;;  %4747 = vmatpush1.bf16.msra.mxu1 %v5712_v27 }
 0x5f5   :  { %4685 = vmatprep.subr.bf16.mxu0 %v5716_v32  ;;  %4749 = vmatprep.subr.bf16.mxu1 %v7158_v58 }
 0x5f8   :  { %4687 = vmatpush1.bf16.msra.mxu0 %v7213_v40  ;;  %4751 = vmatpush1.bf16.msra.mxu1 %v7214_v9 }
 0x5f9   :  { %4689 = vmatprep.subr.bf16.mxu0 %v7215_v18  ;;  %4753 = vmatprep.subr.bf16.mxu1 %v7216_v43 }
 0x5fc   :  { %4691 = vmatpush1.bf16.msra.mxu0 %v7217_v5  ;;  %4755 = vmatpush1.bf16.msra.mxu1 %v7218_v29 }
 0x5fd   :  { %4693 = vmatprep.subr.bf16.mxu0 %v7219_v0  ;;  %4757 = vmatprep.subr.bf16.mxu1 %v7220_v50  ;;  %v7231_v50 = vld [vmem:[#allocation32_spill] sm:$0xff] }
 0x600   :  { %4695 = vmatpush1.bf16.msra.mxu0 %v7221_v12  ;;  %4759 = vmatpush1.bf16.msra.mxu1 %v7222_v61  ;;  %v7232_v12 = vld [vmem:[#allocation33_spill] sm:$0xff]  ;;  %v7233_v61 = vld [vmem:[#allocation34_spill] sm:$0xff] }
 0x601   :  { %4697 = vmatprep.subr.bf16.mxu0 %v7223_v31  ;;  %4761 = vmatprep.subr.bf16.mxu1 %v7224_v4  ;;  %v7234_v31 = vld [vmem:[#allocation35_spill] sm:$0xff]  ;;  %v7235_v4 = vld [vmem:[#allocation36_spill] sm:$0xff] }
 0x604   :  { %4699 = vmatpush1.bf16.msra.mxu0 %v7225_v47  ;;  %4763 = vmatpush1.bf16.msra.mxu1 %v7226_v36  ;;  %v7236_v47 = vld [vmem:[#allocation37_spill] sm:$0xff]  ;;  %v7237_v36 = vld [vmem:[#allocation38_spill] sm:$0xff] }
 0x605   :  { %4701 = vmatprep.subr.bf16.mxu0 %v7227_v25  ;;  %4765 = vmatprep.subr.bf16.mxu1 %v7228_v30  ;;  %v7238_v25 = vld [vmem:[#allocation39_spill] sm:$0xff]  ;;  %v7239_v30 = vld [vmem:[#allocation40_spill] sm:$0xff] }
 0x608   :  { %4703 = vmatpush1.bf16.msra.mxu0 %v7229_v42  ;;  %4767 = vmatpush1.bf16.msra.mxu1 %v7230_v41  ;;  %v7240_v42 = vld [vmem:[#allocation41_spill] sm:$0xff]  ;;  %v7241_v41 = vld [vmem:[#allocation42_spill] sm:$0xff] }
 0x609   :  { %4705 = vmatprep.subr.bf16.mxu0 %v7231_v50  ;;  %4769 = vmatprep.subr.bf16.mxu1 %v7232_v12  ;;  %v7242_v50 = vld [vmem:[#allocation43_spill] sm:$0xff]  ;;  %v7243_v12 = vld [vmem:[#allocation44_spill] sm:$0xff] }
 0x60c   :  { %4707 = vmatpush1.bf16.msra.mxu0 %v7233_v61  ;;  %4771 = vmatpush1.bf16.msra.mxu1 %v7234_v31  ;;  %v7244_v61 = vld [vmem:[#allocation45_spill] sm:$0xff]  ;;  %v7245_v31 = vld [vmem:[#allocation46_spill] sm:$0xff] }
 0x60d   :  { %4709 = vmatprep.subr.bf16.mxu0 %v7235_v4  ;;  %4773 = vmatprep.subr.bf16.mxu1 %v7236_v47  ;;  %v7246_v4 = vld [vmem:[#allocation47_spill] sm:$0xff]  ;;  %v7247_v47 = vld [vmem:[#allocation48_spill] sm:$0xff] }
 0x610   :  { %4711 = vmatpush1.bf16.msra.mxu0 %v7237_v36  ;;  %4775 = vmatpush1.bf16.msra.mxu1 %v7238_v25  ;;  %v7248_v36 = vld [vmem:[#allocation49_spill] sm:$0xff]  ;;  %v7249_v25 = vld [vmem:[#allocation50_spill] sm:$0xff] }
 0x611   :  { %4713 = vmatprep.subr.bf16.mxu0 %v7239_v30  ;;  %4777 = vmatprep.subr.bf16.mxu1 %v7240_v42  ;;  %v7250_v30 = vld [vmem:[#allocation51_spill] sm:$0xff]  ;;  %v7251_v42 = vld [vmem:[#allocation52_spill] sm:$0xff] }
 0x614   :  { %4715 = vmatpush1.bf16.msra.mxu0 %v7241_v41  ;;  %4779 = vmatpush1.bf16.msra.mxu1 %v7242_v50  ;;  %v7252_v41 = vld [vmem:[#allocation53_spill] sm:$0xff]  ;;  %v7253_v50 = vld [vmem:[#allocation54_spill] sm:$0xff] }
 0x615   :  { %4717 = vmatprep.subr.bf16.mxu0 %v7243_v12  ;;  %4781 = vmatprep.subr.bf16.mxu1 %v7244_v61  ;;  %v7254_v12 = vld [vmem:[#allocation55_spill] sm:$0xff]  ;;  %v7255_v61 = vld [vmem:[#allocation56_spill] sm:$0xff] }
 0x618   :  { %4719 = vmatpush1.bf16.msra.mxu0 %v7245_v31  ;;  %4783 = vmatpush1.bf16.msra.mxu1 %v7246_v4  ;;  %v7256_v31 = vld [vmem:[#allocation57_spill] sm:$0xff]  ;;  %v7257_v4 = vld [vmem:[#allocation58_spill] sm:$0xff] }
 0x619   :  { %4721 = vmatprep.subr.bf16.mxu0 %v7247_v47  ;;  %4785 = vmatprep.subr.bf16.mxu1 %v7248_v36  ;;  %v7258_v47 = vld [vmem:[#allocation59_spill] sm:$0xff]  ;;  %v7259_v36 = vld [vmem:[#allocation60_spill] sm:$0xff] }
 0x61c   :  { %4723 = vmatpush1.bf16.msra.mxu0 %v7249_v25  ;;  %4787 = vmatpush1.bf16.msra.mxu1 %v7250_v30  ;;  %v7260_v25 = vld [vmem:[#allocation61_spill] sm:$0xff]  ;;  %v7261_v30 = vld [vmem:[#allocation62_spill] sm:$0xff] }
 0x61d   :  { %4725 = vmatprep.subr.bf16.mxu0 %v7251_v42  ;;  %4789 = vmatprep.subr.bf16.mxu1 %v7252_v41  ;;  %v7262_v42 = vld [vmem:[#allocation63_spill] sm:$0xff]  ;;  %v7263_v41 = vld [vmem:[#allocation12_spill] sm:$0xff] }
 0x620   :  { %4727 = vmatpush1.bf16.msra.mxu0 %v7253_v50  ;;  %4791 = vmatpush1.bf16.msra.mxu1 %v7254_v12  ;;  %v7264_v50 = vld [vmem:[#allocation64_spill] sm:$0xff] }
 0x621   :  { %4729 = vmatprep.subr.bf16.mxu0 %v7255_v61  ;;  %4793 = vmatprep.subr.bf16.mxu1 %v7256_v31 }
 0x624   :  { %4731 = vmatpush1.bf16.msra.mxu0 %v7257_v4  ;;  %4795 = vmatpush1.bf16.msra.mxu1 %v7258_v47  ;;  %v7265_v47 = vld [vmem:[#allocation74_spill] sm:$0xff] }
 0x625   :  { %4733 = vmatprep.subr.bf16.mxu0 %v7259_v36  ;;  %4797 = vmatprep.subr.bf16.mxu1 %v7260_v25 }
 0x628   :  { %4735 = vmatpush1.bf16.msra.mxu0 %v7261_v30  ;;  %4799 = vmatpush1.bf16.msra.mxu1 %v7262_v42 }
 0x629   :  { %4801 = vmatprep.subr.bf16.mxu0 %v7263_v41  ;;  %4832 = vmatprep.subr.bf16.mxu1 %v6982_v51 }
 0x69e   :  { %v2033_v12 = vpop.f32.mrb[24].mxu0  ;;  %v2104_v61 = vpop.f32.mrb[26].mxu1 }
 0x69f   :  { %v2034_v31 = vadd.f32 %v2033_v12, %v7264_v50  ;;  %v2035_v0 = vpop.f32.mrb[25].mxu0  ;;  %v2106_v4 = vpop.f32.mrb[27].mxu1  ;;  %v2105_v41 = vadd.f32 %v2104_v61, %v6037_v17 }
 0x6a0   :  { %v2036_v36 = vadd.f32 %v2035_v0, %v7265_v47  ;;  %v2107_v42 = vadd.f32 %v2106_v4, %v6033_v23 }
 0x6a1   :  { %v2109_v29 = vmul.f32 0.5, %v2034_v31 }
 0x6a2   :  { %v2110_v5 = vmul.f32 0.5, %v2036_v36 }
 0x6a3   :  { %5291 = vtanh.f32 %v2109_v29 }
 0x6a4   :  { %5293 = vtanh.f32 %v2110_v5 }
 0x6ad   :  { %v5292_v25 = vpop.eup %5291 }
 0x6ae   :  { %v2113_v43 = vmul.f32 0.5, %v5292_v25  ;;  %v5294_v40 = vpop.eup %5293 }
 0x6af   :  { %v2114_v12 = vmul.f32 0.5, %v5294_v40 }
 0x6b0   :  { %v2115_v30 = vadd.f32 0.5, %v2113_v43 }
 0x6b1   :  { %v2116_v47 = vadd.f32 0.5, %v2114_v12 }
 0x6b2   :  { %v2117_v18 = vmul.f32 %v2115_v30, %v2107_v42 }
 0x6b4   :  { %v2118_v9 = vadd.f32 %v2117_v18, %v2105_v41  ;;  %v7266_v41 = vld [vmem:[#allocation68_spill] sm:$0xff] }
 0x6b6   :  { %5295 = vtanh.f32 %v2118_v9 }
 0x6be   :  { %v2189_v50 = vpop.f32.mrb[10].mxu0  ;;  %v2260_v58 = vpop.f32.mrb[28].mxu1 }
 0x6bf   :  { %v5202_v29 = vadd.f32 %v2189_v50, %v7045_v63  ;;  %v2191_v31 = vpop.f32.mrb[11].mxu0  ;;  %v3582_v0 = vpop.f32.mrb[29].mxu1  ;;  %v2274_v30 = vadd.f32 %v6407_v52, %v2260_v58  ;;  %v7267_v58 = vld [vmem:[#allocation13_spill] sm:$0xff] }
 0x6c0   :  { %v5296_v36 = vpop.eup %5295  ;;  %v5203_v40 = vadd.f32 %v2191_v31, %v7047_v10  ;;  %v7269_v31 = vld [vmem:[#allocation15_spill] sm:$0xff] }
 0x6c1   :  { %v2266_v25 = vmul.f32 0.5, %v5202_v29  ;;  %v2120_v5 = vsub.f32 %v6399_v38, %v5296_v36 }
 0x6c2   :  { %v2267_v9 = vmul.f32 0.5, %v5203_v40  ;;  %v7271_v40 = vld [vmem:[#allocation17_spill] sm:$0xff] }
 0x6c3   :  { %5297 = vtanh.f32 %v2266_v25  ;;  %v2121_v43 = vmul.f32 %v2120_v5, %v2116_v47 }
 0x6c4   :  { %5299 = vtanh.f32 %v2267_v9  ;;  %v7272_v9 = vld [vmem:[#allocation18_spill] sm:$0xff] }
 0x6c5   :  { %v6523_v4 = vadd.f32 %v5296_v36, %v2121_v43  ;;  %v7270_v43 = vld [vmem:[#allocation16_spill] sm:$0xff] }
 0x6c7   :  { %2345 = vmatprep.mubr.f32.mxu0 %v6523_v4  ;;  %2416 = vmatprep.mubr.f32.mxu1 %v6523_v4 }
 0x6cd   :  { %v5298_v18 = vpop.eup %5297 }
 0x6ce   :  { %v2270_v50 = vmul.f32 0.5, %v5298_v18  ;;  %v5300_v47 = vpop.eup %5299  ;;  %v7273_v18 = vld [vmem:[#allocation19_spill] sm:$0xff] }
 0x6cf   :  { %v2271_v12 = vmul.f32 0.5, %v5300_v47  ;;  %v7280_v47 = vld [vmem:[#allocation26_spill] sm:$0xff] }
 0x6d0   :  { %v2272_v61 = vadd.f32 0.5, %v2270_v50  ;;  %v7274_v50 = vld [vmem:[#allocation20_spill] sm:$0xff] }
 0x6d1   :  { %v2273_v0 = vadd.f32 0.5, %v2271_v12  ;;  %v7281_v12 = vld [vmem:[#allocation27_spill] sm:$0xff] }
 0x6d2   :  { %v2275_v42 = vmul.f32 %v2274_v30, %v2272_v61  ;;  %v7275_v61 = vld [vmem:[#allocation21_spill] sm:$0xff]  ;;  %v7276_v30 = vld [vmem:[#allocation22_spill] sm:$0xff] }
 0x6d4   :  { %v2276_v38 = vadd.f32 %v2275_v42, %v7266_v41  ;;  %v7277_v42 = vld [vmem:[#allocation23_spill] sm:$0xff]  ;;  %v7278_v41 = vld [vmem:[#allocation24_spill] sm:$0xff] }
 0x6d6   :  { %5301 = vtanh.f32 %v2276_v38  ;;  %v7279_v38 = vld [vmem:[#allocation25_spill] sm:$0xff] }
 0x6e0   :  { %v5302_v29 = vpop.eup %5301 }
 0x6e1   :  { %v2278_v36 = vsub.f32 %v6412_v53, %v5302_v29  ;;  %v7268_v53 = vld [vmem:[#allocation14_spill] sm:$0xff] }
 0x6e3   :  { %v2279_v25 = vmul.f32 %v2278_v36, %v2273_v0  ;;  %v7283_v0 = vld [vmem:[#allocation29_spill] sm:$0xff]  ;;  %v7284_v36 = vld [vmem:[#allocation30_spill] sm:$0xff] }
 0x6e5   :  { %v6531_v5 = vadd.f32 %v5302_v29, %v2279_v25  ;;  %v7282_v29 = vld [vmem:[#allocation28_spill] sm:$0xff]  ;;  %v7285_v25 = vld [vmem:[#allocation31_spill] sm:$0xff] }
 0x6e7   :  { %2346 = vmatmul.mubr.f32.vlgmr.msra.gmra.mrb[26].mxu0 %v6531_v5  ;;  %2417 = vmatmul.mubr.f32.vlgmr.msra.gmra.mrb[30].mxu1 %v6531_v5 }
 0x6e8   :  { %4803 = vmatpush1.bf16.msra.mxu0 %v5546_v15  ;;  %4834 = vmatpush3.bf16.msra.mxu1 %v5569_v33 }
 0x6e9   :  { %4805 = vmatprep.subr.bf16.mxu0 %v5549_v16  ;;  %4835 = vmatprep.subr.bf16.mxu1 %v6982_v51 }
 0x6ea   :  { %2501 = vmatprep.mubr.f32.mxu0 %v6993_v60  ;;  %3615 = vmatprep.mubr.msk.f32.mxu1 %vm5439_vm1, %v6993_v60 }
 0x6ec   :  { %4807 = vmatpush1.bf16.msra.mxu0 %v5563_v24  ;;  %4837 = vmatpush3.bf16.msra.mxu1 %v5585_v44 }
 0x6ed   :  { %4809 = vmatprep.subr.bf16.mxu0 %v5566_v26  ;;  %4838 = vmatprep.subr.bf16.mxu1 %v6982_v51 }
 0x6f0   :  { %4811 = vmatpush1.bf16.msra.mxu0 %v5576_v35  ;;  %4840 = vmatpush3.bf16.msra.mxu1 %v5601_v54 }
 0x6f1   :  { %4813 = vmatprep.subr.bf16.mxu0 %v5579_v37  ;;  %4841 = vmatprep.subr.bf16.mxu1 %v6982_v51 }
 0x6f4   :  { %4815 = vmatpush1.bf16.msra.mxu0 %v5592_v46  ;;  %4843 = vmatpush3.bf16.msra.mxu1 %v5617_v1 }
 0x6f5   :  { %4817 = vmatprep.subr.bf16.mxu0 %v5595_v49  ;;  %4844 = vmatprep.subr.bf16.mxu1 %v6982_v51 }
 0x6f8   :  { %4819 = vmatpush1.bf16.msra.mxu0 %v5608_v56  ;;  %4846 = vmatpush3.bf16.msra.mxu1 %v5633_v11 }
 0x6f9   :  { %4821 = vmatprep.subr.bf16.mxu0 %v5611_v59  ;;  %4847 = vmatprep.subr.bf16.mxu1 %v6982_v51 }
 0x6fc   :  { %4823 = vmatpush1.bf16.msra.mxu0 %v5624_v3  ;;  %4849 = vmatpush3.bf16.msra.mxu1 %v5649_v22 }
 0x6fd   :  { %4825 = vmatprep.subr.bf16.mxu0 %v5627_v6  ;;  %4850 = vmatprep.subr.bf16.mxu1 %v6982_v51 }
 0x700   :  { %4827 = vmatpush1.bf16.msra.mxu0 %v5640_v14  ;;  %4852 = vmatpush3.bf16.msra.mxu1 %v5665_v39 }
 0x701   :  { %4829 = vmatprep.subr.bf16.mxu0 %v5643_v19  ;;  %4853 = vmatprep.subr.bf16.mxu1 %v6982_v51 }
 0x704   :  { %4831 = vmatpush1.bf16.msra.mxu0 %v5656_v28  ;;  %4855 = vmatpush3.bf16.msra.mxu1 %v5680_v55 }
 0x705   :  { %4857 = vmatprep.subr.bf16.mxu0 %v5661_v34  ;;  %4921 = vmatprep.subr.bf16.mxu1 %v5683_v57 }
 0x707   :  { %2502 = vmatmul.mubr.f32.vlgmr.msra.gmra.mrb[12].mxu0 %v6531_v5  ;;  %3616 = vmatmul.mubr.f32.vlgmr.msra.gmra.mrb[32].mxu1 %v6531_v5 }
 0x708   :  { %4859 = vmatpush1.bf16.msra.mxu0 %v5669_v45  ;;  %4923 = vmatpush1.bf16.msra.mxu1 %v5693_v7 }
 0x709   :  { %4861 = vmatprep.subr.bf16.mxu0 %v5673_v48  ;;  %4925 = vmatprep.subr.bf16.mxu1 %v5696_v8 }
 0x70c   :  { %4863 = vmatpush1.bf16.msra.mxu0 %v5686_v62  ;;  %4927 = vmatpush1.bf16.msra.mxu1 %v5704_v20 }
 0x70d   :  { %4865 = vmatprep.subr.bf16.mxu0 %v5689_v2  ;;  %4929 = vmatprep.subr.bf16.mxu1 %v5708_v21 }
 0x710   :  { %4867 = vmatpush1.bf16.msra.mxu0 %v5699_v13  ;;  %4931 = vmatpush1.bf16.msra.mxu1 %v5712_v27 }
 0x711   :  { %4869 = vmatprep.subr.bf16.mxu0 %v5716_v32  ;;  %4933 = vmatprep.subr.bf16.mxu1 %v7267_v58 }
 0x714   :  { %4871 = vmatpush1.bf16.msra.mxu0 %v7268_v53  ;;  %4935 = vmatpush1.bf16.msra.mxu1 %v7269_v31 }
 0x715   :  { %4873 = vmatprep.subr.bf16.mxu0 %v7270_v43  ;;  %4937 = vmatprep.subr.bf16.mxu1 %v7271_v40 }
 0x718   :  { %4875 = vmatpush1.bf16.msra.mxu0 %v7272_v9  ;;  %4939 = vmatpush1.bf16.msra.mxu1 %v7273_v18 }
 0x719   :  { %4877 = vmatprep.subr.bf16.mxu0 %v7274_v50  ;;  %4941 = vmatprep.subr.bf16.mxu1 %v7275_v61  ;;  %v7286_v61 = vld [vmem:[#allocation32_spill] sm:$0xff] }
 0x71c   :  { %4879 = vmatpush1.bf16.msra.mxu0 %v7276_v30  ;;  %4943 = vmatpush1.bf16.msra.mxu1 %v7277_v42  ;;  %v7287_v30 = vld [vmem:[#allocation33_spill] sm:$0xff]  ;;  %v7288_v42 = vld [vmem:[#allocation34_spill] sm:$0xff] }
 0x71d   :  { %4881 = vmatprep.subr.bf16.mxu0 %v7278_v41  ;;  %4945 = vmatprep.subr.bf16.mxu1 %v7279_v38  ;;  %v7289_v41 = vld [vmem:[#allocation35_spill] sm:$0xff]  ;;  %v7290_v38 = vld [vmem:[#allocation36_spill] sm:$0xff] }
 0x720   :  { %4883 = vmatpush1.bf16.msra.mxu0 %v7280_v47  ;;  %4947 = vmatpush1.bf16.msra.mxu1 %v7281_v12  ;;  %v7291_v47 = vld [vmem:[#allocation37_spill] sm:$0xff]  ;;  %v7292_v12 = vld [vmem:[#allocation38_spill] sm:$0xff] }
 0x721   :  { %4885 = vmatprep.subr.bf16.mxu0 %v7282_v29  ;;  %4949 = vmatprep.subr.bf16.mxu1 %v7283_v0  ;;  %v7293_v29 = vld [vmem:[#allocation39_spill] sm:$0xff]  ;;  %v7294_v0 = vld [vmem:[#allocation40_spill] sm:$0xff] }
 0x724   :  { %4887 = vmatpush1.bf16.msra.mxu0 %v7284_v36  ;;  %4951 = vmatpush1.bf16.msra.mxu1 %v7285_v25  ;;  %v7295_v36 = vld [vmem:[#allocation41_spill] sm:$0xff]  ;;  %v7296_v25 = vld [vmem:[#allocation42_spill] sm:$0xff] }
 0x725   :  { %4889 = vmatprep.subr.bf16.mxu0 %v7286_v61  ;;  %4953 = vmatprep.subr.bf16.mxu1 %v7287_v30  ;;  %v7297_v61 = vld [vmem:[#allocation43_spill] sm:$0xff]  ;;  %v7298_v30 = vld [vmem:[#allocation44_spill] sm:$0xff] }
 0x728   :  { %4891 = vmatpush1.bf16.msra.mxu0 %v7288_v42  ;;  %4955 = vmatpush1.bf16.msra.mxu1 %v7289_v41  ;;  %v7299_v42 = vld [vmem:[#allocation45_spill] sm:$0xff]  ;;  %v7300_v41 = vld [vmem:[#allocation46_spill] sm:$0xff] }
 0x729   :  { %4893 = vmatprep.subr.bf16.mxu0 %v7290_v38  ;;  %4957 = vmatprep.subr.bf16.mxu1 %v7291_v47  ;;  %v7301_v38 = vld [vmem:[#allocation47_spill] sm:$0xff]  ;;  %v7302_v47 = vld [vmem:[#allocation48_spill] sm:$0xff] }
 0x72c   :  { %4895 = vmatpush1.bf16.msra.mxu0 %v7292_v12  ;;  %4959 = vmatpush1.bf16.msra.mxu1 %v7293_v29  ;;  %v7303_v12 = vld [vmem:[#allocation49_spill] sm:$0xff]  ;;  %v7304_v29 = vld [vmem:[#allocation50_spill] sm:$0xff] }
 0x72d   :  { %4897 = vmatprep.subr.bf16.mxu0 %v7294_v0  ;;  %4961 = vmatprep.subr.bf16.mxu1 %v7295_v36  ;;  %v7305_v0 = vld [vmem:[#allocation51_spill] sm:$0xff]  ;;  %v7306_v36 = vld [vmem:[#allocation52_spill] sm:$0xff] }
 0x730   :  { %4899 = vmatpush1.bf16.msra.mxu0 %v7296_v25  ;;  %4963 = vmatpush1.bf16.msra.mxu1 %v7297_v61  ;;  %v7307_v25 = vld [vmem:[#allocation53_spill] sm:$0xff]  ;;  %v7308_v61 = vld [vmem:[#allocation54_spill] sm:$0xff] }
 0x731   :  { %4901 = vmatprep.subr.bf16.mxu0 %v7298_v30  ;;  %4965 = vmatprep.subr.bf16.mxu1 %v7299_v42  ;;  %v7309_v30 = vld [vmem:[#allocation55_spill] sm:$0xff]  ;;  %v7310_v42 = vld [vmem:[#allocation56_spill] sm:$0xff] }
 0x734   :  { %4903 = vmatpush1.bf16.msra.mxu0 %v7300_v41  ;;  %4967 = vmatpush1.bf16.msra.mxu1 %v7301_v38  ;;  %v7311_v41 = vld [vmem:[#allocation57_spill] sm:$0xff]  ;;  %v7312_v38 = vld [vmem:[#allocation58_spill] sm:$0xff] }
 0x735   :  { %4905 = vmatprep.subr.bf16.mxu0 %v7302_v47  ;;  %4969 = vmatprep.subr.bf16.mxu1 %v7303_v12  ;;  %v7313_v47 = vld [vmem:[#allocation59_spill] sm:$0xff]  ;;  %v7314_v12 = vld [vmem:[#allocation60_spill] sm:$0xff] }
 0x738   :  { %4907 = vmatpush1.bf16.msra.mxu0 %v7304_v29  ;;  %4971 = vmatpush1.bf16.msra.mxu1 %v7305_v0  ;;  %v7315_v29 = vld [vmem:[#allocation61_spill] sm:$0xff]  ;;  %v7316_v0 = vld [vmem:[#allocation62_spill] sm:$0xff] }
 0x739   :  { %4909 = vmatprep.subr.bf16.mxu0 %v7306_v36  ;;  %4973 = vmatprep.subr.bf16.mxu1 %v7307_v25  ;;  %v7317_v36 = vld [vmem:[#allocation63_spill] sm:$0xff]  ;;  %v7318_v25 = vld [vmem:[#allocation12_spill] sm:$0xff] }
 0x73c   :  { %4911 = vmatpush1.bf16.msra.mxu0 %v7308_v61  ;;  %4975 = vmatpush1.bf16.msra.mxu1 %v7309_v30  ;;  %v7319_v61 = vld [vmem:[#allocation64_spill] sm:$0xff] }
 0x73d   :  { %4913 = vmatprep.subr.bf16.mxu0 %v7310_v42  ;;  %4977 = vmatprep.subr.bf16.mxu1 %v7311_v41 }
 0x740   :  { %4915 = vmatpush1.bf16.msra.mxu0 %v7312_v38  ;;  %4979 = vmatpush1.bf16.msra.mxu1 %v7313_v47  ;;  %v7320_v47 = vld [vmem:[#allocation74_spill] sm:$0xff] }
 0x741   :  { %4917 = vmatprep.subr.bf16.mxu0 %v7314_v12  ;;  %4981 = vmatprep.subr.bf16.mxu1 %v7315_v29 }
 0x744   :  { %4919 = vmatpush1.bf16.msra.mxu0 %v7316_v0  ;;  %4983 = vmatpush1.bf16.msra.mxu1 %v7317_v36 }
 0x745   :  { %4985 = vmatprep.subr.bf16.mxu0 %v7318_v25  ;;  %5016 = vmatprep.subr.bf16.mxu1 %v6982_v51 }
 0x7ba   :  { %v2347_v30 = vpop.f32.mrb[26].mxu0  ;;  %v2418_v42 = vpop.f32.mrb[30].mxu1 }
 0x7bb   :  { %v2348_v41 = vadd.f32 %v2347_v30, %v7319_v61  ;;  %v2349_v50 = vpop.f32.mrb[27].mxu0  ;;  %v2420_v38 = vpop.f32.mrb[31].mxu1  ;;  %v2419_v25 = vadd.f32 %v2418_v42, %v6037_v17 }
 0x7bc   :  { %v2350_v12 = vadd.f32 %v2349_v50, %v7320_v47  ;;  %v2421_v36 = vadd.f32 %v2420_v38, %v6033_v23 }
 0x7bd   :  { %v2423_v18 = vmul.f32 0.5, %v2348_v41 }
 0x7be   :  { %v2424_v9 = vmul.f32 0.5, %v2350_v12 }
 0x7bf   :  { %5303 = vtanh.f32 %v2423_v18 }
 0x7c0   :  { %5305 = vtanh.f32 %v2424_v9 }
 0x7c9   :  { %v5304_v29 = vpop.eup %5303 }
 0x7ca   :  { %v2427_v40 = vmul.f32 0.5, %v5304_v29  ;;  %v5306_v53 = vpop.eup %5305 }
 0x7cb   :  { %v2428_v30 = vmul.f32 0.5, %v5306_v53 }
 0x7cc   :  { %v2429_v0 = vadd.f32 0.5, %v2427_v40 }
 0x7cd   :  { %v2430_v47 = vadd.f32 0.5, %v2428_v30 }
 0x7ce   :  { %v2431_v43 = vmul.f32 %v2429_v0, %v2421_v36 }
 0x7d0   :  { %v2432_v31 = vadd.f32 %v2431_v43, %v2419_v25  ;;  %v7321_v25 = vld [vmem:[#allocation72_spill] sm:$0xff] }
 0x7d2   :  { %5307 = vtanh.f32 %v2432_v31 }
 0x7da   :  { %v2503_v61 = vpop.f32.mrb[12].mxu0  ;;  %v2574_v58 = vpop.f32.mrb[32].mxu1 }
 0x7db   :  { %v5204_v18 = vadd.f32 %v2503_v61, %v7045_v63  ;;  %v2505_v41 = vpop.f32.mrb[13].mxu0  ;;  %v3617_v50 = vpop.f32.mrb[33].mxu1  ;;  %v2588_v0 = vadd.f32 %v6407_v52, %v2574_v58  ;;  %v7359_v58 = vld [vmem:[#allocation50_spill] sm:$0xff] }
 0x7dc   :  { %v5308_v12 = vpop.eup %5307  ;;  %v5205_v53 = vadd.f32 %v2505_v41, %v7047_v10  ;;  %v7360_v41 = vld [vmem:[#allocation51_spill] sm:$0xff] }
 0x7dd   :  { %v2580_v29 = vmul.f32 0.5, %v5204_v18  ;;  %v2434_v9 = vsub.f32 %v6523_v4, %v5308_v12 }
 0x7de   :  { %v2581_v31 = vmul.f32 0.5, %v5205_v53  ;;  %v7362_v53 = vld [vmem:[#allocation53_spill] sm:$0xff] }
 0x7df   :  { %5309 = vtanh.f32 %v2580_v29  ;;  %v2435_v40 = vmul.f32 %v2434_v9, %v2430_v47 }
 0x7e0   :  { %5311 = vtanh.f32 %v2581_v31  ;;  %v7363_v31 = vld [vmem:[#allocation54_spill] sm:$0xff] }
 0x7e1   :  { %v6642_v38 = vadd.f32 %v5308_v12, %v2435_v40  ;;  %v7361_v40 = vld [vmem:[#allocation52_spill] sm:$0xff] }
 0x7e3   :  { %2659 = vmatprep.mubr.f32.mxu0 %v6642_v38  ;;  %2730 = vmatprep.mubr.f32.mxu1 %v6642_v38 }
 0x7e9   :  { %v5310_v43 = vpop.eup %5309 }
 0x7ea   :  { %v2584_v61 = vmul.f32 0.5, %v5310_v43  ;;  %v5312_v47 = vpop.eup %5311  ;;  %v7364_v43 = vld [vmem:[#allocation55_spill] sm:$0xff] }
 0x7eb   :  { %v2585_v30 = vmul.f32 0.5, %v5312_v47  ;;  %v7371_v47 = vld [vmem:[#allocation62_spill] sm:$0xff] }
 0x7ec   :  { %v2586_v42 = vadd.f32 0.5, %v2584_v61  ;;  %v7365_v61 = vld [vmem:[#allocation56_spill] sm:$0xff] }
 0x7ed   :  { %v2587_v50 = vadd.f32 0.5, %v2585_v30  ;;  %v7372_v30 = vld [vmem:[#allocation63_spill] sm:$0xff] }
 0x7ee   :  { %v2589_v36 = vmul.f32 %v2588_v0, %v2586_v42  ;;  %v7366_v42 = vld [vmem:[#allocation57_spill] sm:$0xff]  ;;  %v7367_v0 = vld [vmem:[#allocation58_spill] sm:$0xff] }
 0x7f0   :  { %v2590_v4 = vadd.f32 %v2589_v36, %v7321_v25  ;;  %v7368_v36 = vld [vmem:[#allocation59_spill] sm:$0xff]  ;;  %v7369_v25 = vld [vmem:[#allocation60_spill] sm:$0xff] }
 0x7f2   :  { %5313 = vtanh.f32 %v2590_v4  ;;  %v7370_v4 = vld [vmem:[#allocation61_spill] sm:$0xff] }
 0x7fc   :  { %v5314_v18 = vpop.eup %5313 }
 0x7fd   :  { %v2592_v12 = vsub.f32 %v6531_v5, %v5314_v18  ;;  %v7358_v5 = vld [vmem:[#allocation49_spill] sm:$0xff] }
 0x7ff   :  { %v2593_v29 = vmul.f32 %v2592_v12, %v2587_v50  ;;  %v7373_v12 = vld [vmem:[#allocation64_spill] sm:$0xff] }
 0x801   :  { %v6650_v9 = vadd.f32 %v5314_v18, %v2593_v29 }
 0x803   :  { %2660 = vmatmul.mubr.f32.vlgmr.msra.gmra.mrb[28].mxu0 %v6650_v9  ;;  %2731 = vmatmul.mubr.f32.vlgmr.msra.gmra.mrb[34].mxu1 %v6650_v9 }
 0x804   :  { %4987 = vmatpush1.bf16.msra.mxu0 %v5546_v15  ;;  %5018 = vmatpush3.bf16.msra.mxu1 %v5569_v33  ;;  %v7322_v15 = vld [vmem:[#allocation13_spill] sm:$0xff] }
 0x805   :  { %4989 = vmatprep.subr.bf16.mxu0 %v5549_v16  ;;  %5019 = vmatprep.subr.bf16.mxu1 %v6982_v51  ;;  %v7323_v16 = vld [vmem:[#allocation14_spill] sm:$0xff]  ;;  %v7326_v33 = vld [vmem:[#allocation17_spill] sm:$0xff] }
 0x806   :  { %2815 = vmatprep.mubr.f32.mxu0 %v6993_v60  ;;  %3650 = vmatprep.mubr.msk.f32.mxu1 %vm5439_vm1, %v6993_v60 }
 0x808   :  { %4991 = vmatpush1.bf16.msra.mxu0 %v5563_v24  ;;  %5021 = vmatpush3.bf16.msra.mxu1 %v5585_v44  ;;  %v7324_v24 = vld [vmem:[#allocation15_spill] sm:$0xff]  ;;  %v7329_v44 = vld [vmem:[#allocation20_spill] sm:$0xff] }
 0x809   :  { %4993 = vmatprep.subr.bf16.mxu0 %v5566_v26  ;;  %5022 = vmatprep.subr.bf16.mxu1 %v6982_v51  ;;  %v7325_v26 = vld [vmem:[#allocation16_spill] sm:$0xff] }
 0x80c   :  { %4995 = vmatpush1.bf16.msra.mxu0 %v5576_v35  ;;  %5024 = vmatpush3.bf16.msra.mxu1 %v5601_v54  ;;  %v7327_v35 = vld [vmem:[#allocation18_spill] sm:$0xff]  ;;  %v7332_v54 = vld [vmem:[#allocation23_spill] sm:$0xff] }
 0x80d   :  { %4997 = vmatprep.subr.bf16.mxu0 %v5579_v37  ;;  %5025 = vmatprep.subr.bf16.mxu1 %v6982_v51  ;;  %v7328_v37 = vld [vmem:[#allocation19_spill] sm:$0xff] }
 0x810   :  { %4999 = vmatpush1.bf16.msra.mxu0 %v5592_v46  ;;  %5027 = vmatpush3.bf16.msra.mxu1 %v5617_v1  ;;  %v7330_v46 = vld [vmem:[#allocation21_spill] sm:$0xff]  ;;  %v7335_v1 = vld [vmem:[#allocation26_spill] sm:$0xff] }
 0x811   :  { %5001 = vmatprep.subr.bf16.mxu0 %v5595_v49  ;;  %5028 = vmatprep.subr.bf16.mxu1 %v6982_v51  ;;  %v7331_v49 = vld [vmem:[#allocation22_spill] sm:$0xff] }
 0x814   :  { %5003 = vmatpush1.bf16.msra.mxu0 %v5608_v56  ;;  %5030 = vmatpush3.bf16.msra.mxu1 %v5633_v11  ;;  %v7333_v56 = vld [vmem:[#allocation24_spill] sm:$0xff]  ;;  %v7338_v11 = vld [vmem:[#allocation29_spill] sm:$0xff] }
 0x815   :  { %5005 = vmatprep.subr.bf16.mxu0 %v5611_v59  ;;  %5031 = vmatprep.subr.bf16.mxu1 %v6982_v51  ;;  %v7334_v59 = vld [vmem:[#allocation25_spill] sm:$0xff] }
 0x818   :  { %5007 = vmatpush1.bf16.msra.mxu0 %v5624_v3  ;;  %5033 = vmatpush3.bf16.msra.mxu1 %v5649_v22  ;;  %v7336_v3 = vld [vmem:[#allocation27_spill] sm:$0xff]  ;;  %v7341_v22 = vld [vmem:[#allocation32_spill] sm:$0xff] }
 0x819   :  { %5009 = vmatprep.subr.bf16.mxu0 %v5627_v6  ;;  %5034 = vmatprep.subr.bf16.mxu1 %v6982_v51  ;;  %v7337_v6 = vld [vmem:[#allocation28_spill] sm:$0xff] }
 0x81c   :  { %5011 = vmatpush1.bf16.msra.mxu0 %v5640_v14  ;;  %5036 = vmatpush3.bf16.msra.mxu1 %v5665_v39  ;;  %v7339_v14 = vld [vmem:[#allocation30_spill] sm:$0xff]  ;;  %v7344_v39 = vld [vmem:[#allocation35_spill] sm:$0xff] }
 0x81d   :  { %5013 = vmatprep.subr.bf16.mxu0 %v5643_v19  ;;  %5037 = vmatprep.subr.bf16.mxu1 %v6982_v51  ;;  %v7340_v19 = vld [vmem:[#allocation31_spill] sm:$0xff] }
 0x820   :  { %5015 = vmatpush1.bf16.msra.mxu0 %v5656_v28  ;;  %5039 = vmatpush3.bf16.msra.mxu1 %v5680_v55  ;;  %v7342_v28 = vld [vmem:[#allocation33_spill] sm:$0xff]  ;;  %v7347_v55 = vld [vmem:[#allocation38_spill] sm:$0xff] }
 0x821   :  { %5041 = vmatprep.subr.bf16.mxu0 %v5661_v34  ;;  %5105 = vmatprep.subr.bf16.mxu1 %v5683_v57  ;;  %v7343_v34 = vld [vmem:[#allocation34_spill] sm:$0xff]  ;;  %v7348_v57 = vld [vmem:[#allocation39_spill] sm:$0xff] }
 0x823   :  { %2816 = vmatmul.mubr.f32.vlgmr.msra.gmra.mrb[14].mxu0 %v6650_v9  ;;  %3651 = vmatmul.mubr.f32.vlgmr.msra.gmra.mrb[36].mxu1 %v6650_v9 }
 0x824   :  { %5043 = vmatpush1.bf16.msra.mxu0 %v5669_v45  ;;  %5107 = vmatpush1.bf16.msra.mxu1 %v5693_v7  ;;  %v7345_v45 = vld [vmem:[#allocation36_spill] sm:$0xff]  ;;  %v7351_v7 = vld [vmem:[#allocation42_spill] sm:$0xff] }
 0x825   :  { %5045 = vmatprep.subr.bf16.mxu0 %v5673_v48  ;;  %5109 = vmatprep.subr.bf16.mxu1 %v5696_v8  ;;  %v7346_v48 = vld [vmem:[#allocation37_spill] sm:$0xff]  ;;  %v7352_v8 = vld [vmem:[#allocation43_spill] sm:$0xff] }
 0x828   :  { %5047 = vmatpush1.bf16.msra.mxu0 %v5686_v62  ;;  %5111 = vmatpush1.bf16.msra.mxu1 %v5704_v20  ;;  %v7349_v62 = vld [vmem:[#allocation40_spill] sm:$0xff]  ;;  %v7354_v20 = vld [vmem:[#allocation45_spill] sm:$0xff] }
 0x829   :  { %5049 = vmatprep.subr.bf16.mxu0 %v5689_v2  ;;  %5113 = vmatprep.subr.bf16.mxu1 %v5708_v21  ;;  %v7350_v2 = vld [vmem:[#allocation41_spill] sm:$0xff]  ;;  %v7355_v21 = vld [vmem:[#allocation46_spill] sm:$0xff] }
 0x82c   :  { %5051 = vmatpush1.bf16.msra.mxu0 %v5699_v13  ;;  %5115 = vmatpush1.bf16.msra.mxu1 %v5712_v27  ;;  %v7353_v13 = vld [vmem:[#allocation44_spill] sm:$0xff]  ;;  %v7356_v27 = vld [vmem:[#allocation47_spill] sm:$0xff] }
 0x82d   :  { %5053 = vmatprep.subr.bf16.mxu0 %v5716_v32  ;;  %5117 = vmatprep.subr.bf16.mxu1 %v7322_v15  ;;  %v7357_v32 = vld [vmem:[#allocation48_spill] sm:$0xff] }
 0x830   :  { %5055 = vmatpush1.bf16.msra.mxu0 %v7323_v16  ;;  %5119 = vmatpush1.bf16.msra.mxu1 %v7324_v24 }
 0x831   :  { %5057 = vmatprep.subr.bf16.mxu0 %v7325_v26  ;;  %5121 = vmatprep.subr.bf16.mxu1 %v7326_v33  ;;  %v7374_v26 = vld [vmem:[#allocation74_spill] sm:$0xff] }
 0x834   :  { %5059 = vmatpush1.bf16.msra.mxu0 %v7327_v35  ;;  %5123 = vmatpush1.bf16.msra.mxu1 %v7328_v37 }
 0x835   :  { %5061 = vmatprep.subr.bf16.mxu0 %v7329_v44  ;;  %5125 = vmatprep.subr.bf16.mxu1 %v7330_v46 }
 0x838   :  { %5063 = vmatpush1.bf16.msra.mxu0 %v7331_v49  ;;  %5127 = vmatpush1.bf16.msra.mxu1 %v7332_v54 }
 0x839   :  { %5065 = vmatprep.subr.bf16.mxu0 %v7333_v56  ;;  %5129 = vmatprep.subr.bf16.mxu1 %v7334_v59 }
 0x83c   :  { %5067 = vmatpush1.bf16.msra.mxu0 %v7335_v1  ;;  %5131 = vmatpush1.bf16.msra.mxu1 %v7336_v3 }
 0x83d   :  { %5069 = vmatprep.subr.bf16.mxu0 %v7337_v6  ;;  %5133 = vmatprep.subr.bf16.mxu1 %v7338_v11 }
 0x840   :  { %5071 = vmatpush1.bf16.msra.mxu0 %v7339_v14  ;;  %5135 = vmatpush1.bf16.msra.mxu1 %v7340_v19 }
 0x841   :  { %5073 = vmatprep.subr.bf16.mxu0 %v7341_v22  ;;  %5137 = vmatprep.subr.bf16.mxu1 %v7342_v28 }
 0x844   :  { %5075 = vmatpush1.bf16.msra.mxu0 %v7343_v34  ;;  %5139 = vmatpush1.bf16.msra.mxu1 %v7344_v39 }
 0x845   :  { %5077 = vmatprep.subr.bf16.mxu0 %v7345_v45  ;;  %5141 = vmatprep.subr.bf16.mxu1 %v7346_v48 }
 0x848   :  { %5079 = vmatpush1.bf16.msra.mxu0 %v7347_v55  ;;  %5143 = vmatpush1.bf16.msra.mxu1 %v7348_v57 }
 0x849   :  { %5081 = vmatprep.subr.bf16.mxu0 %v7349_v62  ;;  %5145 = vmatprep.subr.bf16.mxu1 %v7350_v2 }
 0x84c   :  { %5083 = vmatpush1.bf16.msra.mxu0 %v7351_v7  ;;  %5147 = vmatpush1.bf16.msra.mxu1 %v7352_v8 }
 0x84d   :  { %5085 = vmatprep.subr.bf16.mxu0 %v7353_v13  ;;  %5149 = vmatprep.subr.bf16.mxu1 %v7354_v20  ;;  %v7375_v20 = vld [vmem:[#allocation71_spill] sm:$0xff] }
 0x850   :  { %5087 = vmatpush1.bf16.msra.mxu0 %v7355_v21  ;;  %5151 = vmatpush1.bf16.msra.mxu1 %v7356_v27 }
 0x851   :  { %5089 = vmatprep.subr.bf16.mxu0 %v7357_v32  ;;  %5153 = vmatprep.subr.bf16.mxu1 %v7358_v5 }
 0x854   :  { %5091 = vmatpush1.bf16.msra.mxu0 %v7359_v58  ;;  %5155 = vmatpush1.bf16.msra.mxu1 %v7360_v41 }
 0x855   :  { %5093 = vmatprep.subr.bf16.mxu0 %v7361_v40  ;;  %5157 = vmatprep.subr.bf16.mxu1 %v7362_v53 }
 0x858   :  { %5095 = vmatpush1.bf16.msra.mxu0 %v7363_v31  ;;  %5159 = vmatpush1.bf16.msra.mxu1 %v7364_v43  ;;  %v3068_v31 = vld [vmem:[#allocation7 + $0x10] sm:$0xff]  ;;  %v3069_v43 = vld [vmem:[#allocation7 + $0x18] sm:$0xff] }
 0x859   :  { %5097 = vmatprep.subr.bf16.mxu0 %v7365_v61  ;;  %5161 = vmatprep.subr.bf16.mxu1 %v7366_v42  ;;  %v5172_v61 = vpack.c.bf16 %v3069_v43, %v3068_v31  ;;  %v3071_v42 = vld [vmem:[#allocation7 + $0x28] sm:$0xff] }
 0x85c   :  { %5099 = vmatpush1.bf16.msra.mxu0 %v7367_v0  ;;  %5163 = vmatpush1.bf16.msra.mxu1 %v7368_v36  ;;  %v3072_v36 = vld [vmem:[#allocation7 + $0x30] sm:$0xff] }
 0x85d   :  { %5101 = vmatprep.subr.bf16.mxu0 %v7369_v25  ;;  %5165 = vmatprep.subr.bf16.mxu1 %v7370_v4  ;;  %v3074_v4 = vld [vmem:[#allocation7 + $0x40] sm:$0xff] }
 0x860   :  { %5103 = vmatpush1.bf16.msra.mxu0 %v7371_v47  ;;  %5167 = vmatpush1.bf16.msra.mxu1 %v7372_v30  ;;  %v3075_v47 = vld [vmem:[#allocation7 + $0x48] sm:$0xff] }
 0x861   :  { %5168 = vmatprep.subr.bf16.mxu0 %v6982_v51  ;;  %v5181_v30 = vpack.c.bf16 %v3075_v47, %v3074_v4 }
 0x8d6   :  { %v2661_v18 = vpop.f32.mrb[28].mxu0  ;;  %v2732_v50 = vpop.f32.mrb[34].mxu1 }
 0x8d7   :  { %v2662_v29 = vadd.f32 %v2661_v18, %v7373_v12  ;;  %v2663_v15 = vpop.f32.mrb[29].mxu0  ;;  %v2734_v16 = vpop.f32.mrb[35].mxu1  ;;  %v2733_v54 = vadd.f32 %v2732_v50, %v6037_v17  ;;  %v3076_v18 = vld [vmem:[#allocation7 + $0x50] sm:$0xff]  ;;  %v3077_v50 = vld [vmem:[#allocation7 + $0x58] sm:$0xff] }
 0x8d8   :  { %v2664_v33 = vadd.f32 %v2663_v15, %v7374_v26  ;;  %v2735_v46 = vadd.f32 %v2734_v16, %v6033_v23  ;;  %v3078_v15 = vld [vmem:[#allocation7 + $0x60] sm:$0xff]  ;;  %v3079_v16 = vld [vmem:[#allocation7 + $0x68] sm:$0xff] }
 0x8d9   :  { %v2737_v24 = vmul.f32 0.5, %v2662_v29  ;;  %v5184_v29 = vpack.c.bf16 %v3077_v50, %v3076_v18 }
 0x8da   :  { %v2738_v35 = vmul.f32 0.5, %v2664_v33  ;;  %v3080_v33 = vld [vmem:[#allocation7 + $0x70] sm:$0xff] }
 0x8db   :  { %5315 = vtanh.f32 %v2737_v24  ;;  %v5187_v24 = vpack.c.bf16 %v3079_v16, %v3078_v15 }
 0x8dc   :  { %5317 = vtanh.f32 %v2738_v35  ;;  %v3081_v35 = vld [vmem:[#allocation7 + $0x78] sm:$0xff] }
 0x8e5   :  { %v5316_v37 = vpop.eup %5315 }
 0x8e6   :  { %v2741_v44 = vmul.f32 0.5, %v5316_v37  ;;  %v5318_v1 = vpop.eup %5317  ;;  %v5190_v37 = vpack.c.bf16 %v3081_v35, %v3080_v33 }
 0x8e7   :  { %v2742_v3 = vmul.f32 0.5, %v5318_v1 }
 0x8e8   :  { %v2743_v49 = vadd.f32 0.5, %v2741_v44 }
 0x8e9   :  { %v2744_v34 = vadd.f32 0.5, %v2742_v3 }
 0x8ea   :  { %v2745_v56 = vmul.f32 %v2743_v49, %v2735_v46 }
 0x8ec   :  { %v2746_v59 = vadd.f32 %v2745_v56, %v2733_v54 }
 0x8ee   :  { %5319 = vtanh.f32 %v2746_v59 }
 0x8f6   :  { %v2817_v6 = vpop.f32.mrb[14].mxu0  ;;  %v2888_v11 = vpop.f32.mrb[36].mxu1 }
 0x8f7   :  { %v5206_v14 = vadd.f32 %v2817_v6, %v7045_v63  ;;  %v2819_v19 = vpop.f32.mrb[15].mxu0  ;;  %v3652_v22 = vpop.f32.mrb[37].mxu1  ;;  %v2902_v8 = vadd.f32 %v6407_v52, %v2888_v11  ;;  %v3067_v52 = vld [vmem:[#allocation7 + $0x8] sm:$0xff] }
 0x8f8   :  { %v5320_v28 = vpop.eup %5319  ;;  %v5207_v57 = vadd.f32 %v2819_v19, %v7047_v10  ;;  %v3066_v10 = vld [vmem:[#allocation7] sm:$0xff] }
 0x8f9   :  { %v2894_v39 = vmul.f32 0.5, %v5206_v14  ;;  %v2748_v45 = vsub.f32 %v6642_v38, %v5320_v28  ;;  %v5169_v53 = vpack.c.bf16 %v3067_v52, %v3066_v10 }
 0x8fa   :  { %v2895_v62 = vmul.f32 0.5, %v5207_v57 }
 0x8fb   :  { %5321 = vtanh.f32 %v2894_v39  ;;  %v2749_v48 = vmul.f32 %v2748_v45, %v2744_v34 }
 0x8fc   :  { %5323 = vtanh.f32 %v2895_v62 }
 0x8fd   :  { %v6760_v55 = vadd.f32 %v5320_v28, %v2749_v48 }
 0x8ff   :  { %2973 = vmatprep.mubr.f32.mxu0 %v6760_v55  ;;  %3044 = vmatprep.mubr.f32.mxu1 %v6760_v55 }
 0x905   :  { %v5322_v2 = vpop.eup %5321 }
 0x906   :  { %v2898_v63 = vmul.f32 0.5, %v5322_v2  ;;  %v5324_v21 = vpop.eup %5323 }
 0x907   :  { %v2899_v27 = vmul.f32 0.5, %v5324_v21 }
 0x908   :  { %v2900_v7 = vadd.f32 0.5, %v2898_v63 }
 0x909   :  { %v2901_v5 = vadd.f32 0.5, %v2899_v27 }
 0x90a   :  { %v2903_v13 = vmul.f32 %v2902_v8, %v2900_v7 }
 0x90c   :  { %v2904_v38 = vadd.f32 %v2903_v13, %v7375_v20 }
 0x90e   :  { %5325 = vtanh.f32 %v2904_v38 }
 0x918   :  { %v5326_v32 = vpop.eup %5325 }
 0x919   :  { %v2906_v58 = vsub.f32 %v6650_v9, %v5326_v32  ;;  %v3070_v9 = vld [vmem:[#allocation7 + $0x20] sm:$0xff] }
 0x91a   :  { %v5175_v0 = vpack.c.bf16 %v3071_v42, %v3070_v9 }
 0x91b   :  { %v2907_v41 = vmul.f32 %v2906_v58, %v2901_v5 }
 0x91d   :  { %v2908_v40 = vadd.f32 %v5326_v32, %v2907_v41 }
 0x91f   :  { %2974 = vmatmul.mubr.f32.vlgmr.msra.gmra.mrb[30].mxu0 %v2908_v40  ;;  %3045 = vmatmul.mubr.f32.vlgmr.msra.gmra.mrb[38].mxu1 %v2908_v40 }
 0x920   :  { %3685 = vmatprep.mubr.msk.f32.mxu0 %vm5439_vm1, %v6993_v60  ;;  %5170 = vmatpush3.bf16.msra.mxu0 %v5169_v53  ;;  %v3073_v60 = vld [vmem:[#allocation7 + $0x38] sm:$0xff] }
 0x921   :  { %5171 = vmatprep.subr.bf16.mxu0 %v6982_v51  ;;  %v5178_v25 = vpack.c.bf16 %v3073_v60, %v3072_v36 }
 0x924   :  { %5173 = vmatpush3.bf16.msra.mxu0 %v5172_v61 }
 0x925   :  { %5174 = vmatprep.subr.bf16.mxu0 %v6982_v51 }
 0x928   :  { %5176 = vmatpush3.bf16.msra.mxu0 %v5175_v0 }
 0x929   :  { %5177 = vmatprep.subr.bf16.mxu0 %v6982_v51 }
 0x92c   :  { %5179 = vmatpush3.bf16.msra.mxu0 %v5178_v25 }
 0x92d   :  { %5180 = vmatprep.subr.bf16.mxu0 %v6982_v51 }
 0x930   :  { %5182 = vmatpush3.bf16.msra.mxu0 %v5181_v30 }
 0x931   :  { %5183 = vmatprep.subr.bf16.mxu0 %v6982_v51 }
 0x934   :  { %5185 = vmatpush3.bf16.msra.mxu0 %v5184_v29 }
 0x935   :  { %5186 = vmatprep.subr.bf16.mxu0 %v6982_v51 }
 0x938   :  { %5188 = vmatpush3.bf16.msra.mxu0 %v5187_v24 }
 0x939   :  { %5189 = vmatprep.subr.bf16.mxu0 %v6982_v51 }
 0x93c   :  { %5191 = vmatpush3.bf16.msra.mxu0 %v5190_v37 }
 0x9f2   :  { %v2975_v44 = vpop.f32.mrb[30].mxu0  ;;  %v3046_v46 = vpop.f32.mrb[38].mxu1 }
 0x9f3   :  { %v2976_v49 = vadd.f32 %v2975_v44, %v7373_v12  ;;  %v2977_v54 = vpop.f32.mrb[31].mxu0  ;;  %v3048_v56 = vpop.f32.mrb[39].mxu1  ;;  %v3047_v51 = vadd.f32 %v3046_v46, %v6037_v17 }
 0x9f4   :  { %v2978_v1 = vadd.f32 %v2977_v54, %v7374_v26  ;;  %v3049_v14 = vadd.f32 %v3048_v56, %v6033_v23  ;;  %v3193_v23 = vld [vmem:[%s6805_s8] ss:$0 sm:$0xff] }
 0x9f5   :  { %v3051_v59 = vmul.f32 0.5, %v2976_v49 }
 0x9f6   :  { %v3052_v3 = vmul.f32 0.5, %v2978_v1 }
 0x9f7   :  { %5327 = vtanh.f32 %v3051_v59 }
 0x9f8   :  { %5329 = vtanh.f32 %v3052_v3 }
 0xa01   :  { %v5328_v6 = vpop.eup %5327 }
 0xa02   :  { %v3055_v11 = vmul.f32 0.5, %v5328_v6  ;;  %v5330_v34 = vpop.eup %5329 }
 0xa03   :  { %v3056_v12 = vmul.f32 0.5, %v5330_v34 }
 0xa04   :  { %v3057_v19 = vadd.f32 0.5, %v3055_v11 }
 0xa05   :  { %v3058_v45 = vadd.f32 0.5, %v3056_v12 }
 0xa06   :  { %v3059_v22 = vmul.f32 %v3057_v19, %v3049_v14 }
 0xa08   :  { %v3060_v28 = vadd.f32 %v3059_v22, %v3047_v51 }
 0xa0a   :  { %5331 = vtanh.f32 %v3060_v28 }
 0xa14   :  { %v5332_v39 = vpop.eup %5331 }
 0xa15   :  { %v3062_v48 = vsub.f32 %v6760_v55, %v5332_v39 }
 0xa17   :  { %v3063_v57 = vmul.f32 %v3062_v48, %v3058_v45 }
 0xa19   :  { %v3064_v26 = vadd.f32 %v5332_v39, %v3063_v57 }
 0xa1b   :  { %v3065_v62 = vmax.f32 %v3064_v26, 0.0 }
 0xa1d   :  { %3686 = vmatmul.mubr.f32.vlgmr.msra.gmra.mrb[32].mxu0 %v3065_v62 }
 0xaf0   :  { %v3155_v17 = vpop.f32.mrb[32].mxu0 }
 0xaf1   :  { %v3156_v2 = vadd.f32 %v3193_v23, %v3155_v17  ;;  %v3687_v63 = vpop.f32.mrb[33].mxu0 }
 0xaf3   :  { %3159 = vst [vmem:[#allocation8] sm:$0xff] %v3156_v2 }
 0xaf4   :  { %5411 = shalt.err (!%p5408_p0)
}
 0xaf5   :  { %s5412_s19 = scalar_lea.hbm %s6806_s9, 128 }
 0xaf6   :  { %p5413_p1 = scmp.ne.s32.totalorder %s6806_s9, %s5412_s19  ;;  %p5416_p2 = scmp.lt.u32.totalorder %s5412_s19, %s6806_s9 }
 0xaf8   :  { %p5418_p3 = pnand %p5416_p2, %p5413_p1 }
 0xafa   :  { %5421 = shalt.err (!%p5418_p3)
}
 0xafb   :  { %3169 = dma.vmem_to_hbm [thread:$0]  %s3167_s15, 128, %s6806_s9, [#allocation4]  }
 0xafc   :  { %5426 = dma.done.wait [#allocation4], 128  }
 0xafd   :  { %5427 = vsyncadd [#allocation4], 4294967168 }
 0xafe   :  { %3173 = vsyncpa [#allocation3], 1 }
 0xaff   :  { %3174 = vsyncpa [#allocation6], 1 }
 0xb00   :  { %3175 = vsyncpa [#allocation4], 1 }

</bundles_post_ra>
